<compile_context>
chip_gen: v7x
topology: tpu7x:2x2x1
jax: 0.10.0
libtpu: 0.0.40
codegen_flags: <defaults>
</compile_context>

<pallas_src>
import functools

import jax
import jax.numpy as jnp
from jax import lax
from jax.experimental import pallas as pl
from jax.experimental.pallas import tpu as pltpu


# ------------------------------ spec helpers --------------------------------

def _const_spec(a):
    """Full-array block, same block for every grid step (weights)."""
    nd = a.ndim
    return pl.BlockSpec(a.shape, lambda b, _nd=nd: (0,) * _nd)


def _batch_spec(a):
    """Block = one batch slice along the leading axis."""
    nd = a.ndim
    return pl.BlockSpec((1,) + tuple(a.shape[1:]),
                        lambda b, _nd=nd: (b,) + (0,) * (_nd - 1))


# --------------------------- in-kernel small math ----------------------------

def _softmax_last(t):
    m = jnp.max(t, axis=-1, keepdims=True)
    e = jnp.exp(t - m)
    return e / jnp.sum(e, axis=-1, keepdims=True)      # exact divide (parity)


def _layer_norm(t, g, b, eps=1e-5):
    mu = jnp.mean(t, axis=-1, keepdims=True)
    var = jnp.mean(jnp.square(t - mu), axis=-1, keepdims=True)
    return (t - mu) * lax.rsqrt(var + eps) * g + b


# dot_general dimension numbers: contract the LEADING dim of both operands
# (i.e. "A^T @ B" without materializing a transpose).
_TN_DIMS = (((0,), (0,)), ((), ()))


# ------------------------------ fused kernel --------------------------------

def _fused_kernel(x_ref, xs_ref, adj_ref, *refs, num_gcn, depth, heads):
    # ---- unpack refs (inputs ..., outputs at the end) ----
    idx = 0
    feat_gcn = []
    for _ in range(num_gcn):
        feat_gcn.append((refs[idx], refs[idx + 1])); idx += 2
    feat_wc, feat_bc = refs[idx], refs[idx + 1]; idx += 2
    str_gcn = []
    for _ in range(num_gcn):
        str_gcn.append((refs[idx], refs[idx + 1])); idx += 2
    str_wc, str_bc = refs[idx], refs[idx + 1]; idx += 2
    wfuse, bfuse, zg = refs[idx], refs[idx + 1], refs[idx + 2]; idx += 3
    (wq, bq, wk, bk, wv, bv, wo, bo,
     ln1g, ln1b, ff1w, ff1b, ff2w, ff2b, ln2g, ln2b) = refs[idx:idx + 16]
    idx += 16
    pw1, pb1, pw2, pb2 = refs[idx:idx + 4]; idx += 4
    z_ref, sf_ref, ss_ref = refs[idx:idx + 3]

    adj = adj_ref[0]                                    # (N, N)

    # ---- SoftClustering branch (feature / structure share this code) ----
    # TODO(synk): raw 0/1 adjacency, no self-loops / degree norm; un-normalized
    #             pooling — SoftClustering internals assumed.
    def gcn_branch(h, gcn, wc_ref, bc_ref):
        for (w_ref, b_ref) in gcn:
            ah = jnp.dot(adj, h, preferred_element_type=jnp.float32)
            h = jnp.maximum(
                jnp.dot(ah, w_ref[...], preferred_element_type=jnp.float32)
                + b_ref[...], 0.0)
        logits = (jnp.dot(h, wc_ref[...], preferred_element_type=jnp.float32)
                  + bc_ref[...])                        # (N, C)
        s = _softmax_last(logits)                       # (N, C)
        # pooled = S^T @ H, expressed via dimension_numbers (no .T / XLU push).
        return lax.dot_general(s, h, _TN_DIMS,
                               preferred_element_type=jnp.float32)   # (C, hid)

    sfb = gcn_branch(x_ref[0], feat_gcn, feat_wc, feat_bc)            # (C, D)
    ssb = gcn_branch(xs_ref[0], str_gcn, str_wc, str_bc)              # (C, D)
    sf_ref[0] = sfb
    ss_ref[0] = ssb

    # ---- fusion linear: one matmul on the lane-concatenated substructures ----
    cat = jnp.concatenate([sfb, ssb], axis=1)                         # (C, 2D)
    xf = (jnp.dot(cat, wfuse[...], preferred_element_type=jnp.float32)
          + bfuse[...])                                               # (C, D)

    # ---- [z_g ; x_fusion] assembled in registers (no scratch round-trip) ----
    x2 = jnp.concatenate([zg[...], xf], axis=0)                       # (S, D)
    # TODO(synk): dropout is identity (inference mode).

    S, D = x2.shape
    Dh = D // heads

    # ---- post-norm transformer encoder stack ----
    for l in range(depth):
        xb = jnp.broadcast_to(x2[None], (heads, S, D))                # hoisted
        # Head-batched projections (per-head weight slices prepared in wrapper;
        # 1/sqrt(Dh) already folded into wq / bq). No activation lane-slicing.
        q = jnp.einsum('hsd,hde->hse', xb, wq[l],
                       preferred_element_type=jnp.float32) + bq[l]    # (H,S,Dh)
        k = jnp.einsum('hsd,hde->hse', xb, wk[l],
                       preferred_element_type=jnp.float32) + bk[l]
        v = jnp.einsum('hsd,hde->hse', xb, wv[l],
                       preferred_element_type=jnp.float32) + bv[l]
        sc = jnp.einsum('hqe,hke->hqk', q, k,
                        preferred_element_type=jnp.float32)           # (H,S,S)
        p = _softmax_last(sc)
        hv = jnp.einsum('hqk,hke->hqe', p, v,
                        preferred_element_type=jnp.float32)           # (H,S,Dh)
        # Output projection: one batched dot over heads, then sum of the
        # per-head contributions (concat_h(hv) @ Wo == sum_h hv_h @ Wo_h).
        attn = jnp.sum(
            jnp.einsum('hse,hed->hsd', hv, wo[l],
                       preferred_element_type=jnp.float32), axis=0) + bo[l]
        x2 = _layer_norm(x2 + attn, ln1g[l], ln1b[l])

        ff = jnp.maximum(
            jnp.dot(x2, ff1w[l], preferred_element_type=jnp.float32)
            + ff1b[l], 0.0)
        ff = jnp.dot(ff, ff2w[l], preferred_element_type=jnp.float32) + ff2b[l]
        x2 = _layer_norm(x2 + ff, ln2g[l], ln2b[l])

    # ---- z_g token -> projection head ----
    cls = x2[0:1, :]                                                  # (1, D)
    h1 = jnp.maximum(
        jnp.dot(cls, pw1[...], preferred_element_type=jnp.float32)
        + pb1[...], 0.0)
    zb = jnp.dot(h1, pw2[...], preferred_element_type=jnp.float32) + pb2[...]
    z_ref[0] = zb                                                     # (1, D)


# ------------------------- weight preparation (host) -------------------------

def _stack_encoder(layers, heads):
    """Stack per-layer encoder weights with per-head slices pre-split."""
    D = layers[0]["wq"][0].shape[0]
    Dh = D // heads
    scale = 1.0 / (Dh ** 0.5)

    def heads_in(w):      # (D, D) -> (heads, D, Dh): per-head output columns
        return jnp.stack([w[:, h * Dh:(h + 1) * Dh] for h in range(heads)])

    def heads_bias(b):    # (D,) -> (heads, 1, Dh)
        return jnp.stack([b[h * Dh:(h + 1) * Dh].reshape(1, Dh)
                          for h in range(heads)])

    def heads_out(w):     # (D, D) -> (heads, Dh, D): per-head input rows of Wo
        return jnp.stack([w[h * Dh:(h + 1) * Dh, :] for h in range(heads)])

    wq = jnp.stack([heads_in(lp["wq"][0]) * scale for lp in layers])
    bq = jnp.stack([heads_bias(lp["wq"][1]) * scale for lp in layers])
    wk = jnp.stack([heads_in(lp["wk"][0]) for lp in layers])
    bk = jnp.stack([heads_bias(lp["wk"][1]) for lp in layers])
    wv = jnp.stack([heads_in(lp["wv"][0]) for lp in layers])
    bv = jnp.stack([heads_bias(lp["wv"][1]) for lp in layers])
    wo = jnp.stack([heads_out(lp["wo"][0]) for lp in layers])
    bo = jnp.stack([lp["wo"][1].reshape(1, D) for lp in layers])
    ln1g = jnp.stack([lp["ln1"][0].reshape(1, D) for lp in layers])
    ln1b = jnp.stack([lp["ln1"][1].reshape(1, D) for lp in layers])
    ff1w = jnp.stack([lp["ff1"][0] for lp in layers])
    ff1b = jnp.stack([lp["ff1"][1].reshape(1, -1) for lp in layers])
    ff2w = jnp.stack([lp["ff2"][0] for lp in layers])
    ff2b = jnp.stack([lp["ff2"][1].reshape(1, D) for lp in layers])
    ln2g = jnp.stack([lp["ln2"][0].reshape(1, D) for lp in layers])
    ln2b = jnp.stack([lp["ln2"][1].reshape(1, D) for lp in layers])
    return (wq, bq, wk, bk, wv, bv, wo, bo, ln1g, ln1b,
            ff1w, ff1b, ff2w, ff2b, ln2g, ln2b)


# ---------------------------------- forward ----------------------------------

def outlier_model_forward(params, x, x_s, adj, heads):
    B, N, _ = x.shape
    D = params["z_g"].shape[-1]
    C = params["softgcn_feat"]["assign"][0].shape[1]
    layers = params["encoder_feat"]
    depth = len(layers)
    num_gcn = len(params["softgcn_feat"]["gcn"])

    args = [x, x_s, adj]
    for (w, b) in params["softgcn_feat"]["gcn"]:
        args += [w, b.reshape(1, -1)]
    wc, bc = params["softgcn_feat"]["assign"]
    args += [wc, bc.reshape(1, -1)]
    for (w, b) in params["softgcn_str"]["gcn"]:
        args += [w, b.reshape(1, -1)]
    wc, bc = params["softgcn_str"]["assign"]
    args += [wc, bc.reshape(1, -1)]
    wfuse, bfuse = params["linear"]
    args += [wfuse, bfuse.reshape(1, -1), params["z_g"].reshape(1, D)]
    args += list(_stack_encoder(layers, heads))
    (pw1, pb1), (pw2, pb2) = params["proj_head"]
    args += [pw1, pb1.reshape(1, -1), pw2, pb2.reshape(1, -1)]

    in_specs = [_batch_spec(a) for a in args[:3]] + \
               [_const_spec(a) for a in args[3:]]

    out_shape = (jax.ShapeDtypeStruct((B, 1, D), jnp.float32),   # z (per token)
                 jax.ShapeDtypeStruct((B, C, D), jnp.float32),   # substr_f
                 jax.ShapeDtypeStruct((B, C, D), jnp.float32))   # substr_s
    out_specs = (pl.BlockSpec((1, 1, D), lambda b: (b, 0, 0)),
                 pl.BlockSpec((1, C, D), lambda b: (b, 0, 0)),
                 pl.BlockSpec((1, C, D), lambda b: (b, 0, 0)))

    kernel = functools.partial(_fused_kernel, num_gcn=num_gcn,
                               depth=depth, heads=heads)
    z3, sf, ss = pl.pallas_call(
        kernel,
        out_shape=out_shape,
        grid=(B,),
        in_specs=in_specs,
        out_specs=out_specs,
        compiler_params=pltpu.CompilerParams(
            dimension_semantics=("parallel",)),
    )(*args)
    return z3[:, 0, :], sf, ss


# ------------------------------ parameter init -------------------------------

def init_linear(key, din, dout):
    k1, k2 = jax.random.split(key)
    scale = 1.0 / (din ** 0.5)
    w = jax.random.uniform(k1, (din, dout), jnp.float32, -scale, scale)
    b = jax.random.uniform(k2, (dout,), jnp.float32, -scale, scale)
    return w, b


def init_soft_clustering(key, num_gcn_layer, in_dim, hid1_dim, hid_dim, cluster_dim):
    keys = jax.random.split(key, num_gcn_layer + 1)
    dims = [in_dim, hid1_dim] + [hid_dim] * (num_gcn_layer - 1)
    gcn = [init_linear(keys[i], dims[i], dims[i + 1])
           for i in range(num_gcn_layer)]
    assign = init_linear(keys[-1], dims[-1], cluster_dim)
    return {"gcn": gcn, "assign": assign}


def init_encoder_layer(key, d, dff):
    ks = jax.random.split(key, 6)
    return {
        "wq": init_linear(ks[0], d, d),
        "wk": init_linear(ks[1], d, d),
        "wv": init_linear(ks[2], d, d),
        "wo": init_linear(ks[3], d, d),
        "ff1": init_linear(ks[4], d, dff),
        "ff2": init_linear(ks[5], dff, d),
        "ln1": (jnp.ones((d,), jnp.float32), jnp.zeros((d,), jnp.float32)),
        "ln2": (jnp.ones((d,), jnp.float32), jnp.zeros((d,), jnp.float32)),
    }


# ----------------------------------- main ------------------------------------

if __name__ == "__main__":
    B, N = 2, 8
    in_dim, str_dim = 16, 18            # softgcn_str input dim is hard-coded 18
    hid1_dim, hid_dim, dff = 32, 32, 64
    cluster_dim, depth, heads = 4, 2, 4
    num_gcn_layer = 2

    key = jax.random.PRNGKey(0)
    kp, kx = jax.random.split(key)
    pk = jax.random.split(kp, 8)

    params = {
        "softgcn_feat": init_soft_clustering(pk[0], num_gcn_layer, in_dim,
                                             hid1_dim, hid_dim, cluster_dim),
        "softgcn_str": init_soft_clustering(pk[1], num_gcn_layer, str_dim,
                                            hid1_dim, hid_dim, cluster_dim),
        "z_g": jax.random.normal(pk[2], (1, 1, hid_dim), jnp.float32),
        "linear": init_linear(pk[3], 2 * hid_dim, hid_dim),
        "encoder_feat": [init_encoder_layer(k, hid_dim, dff)
                         for k in jax.random.split(pk[4], depth)],
        "proj_head": [init_linear(pk[5], hid_dim, hid_dim),
                      init_linear(pk[6], hid_dim, hid_dim)],
    }

    kx1, kx2, kx3 = jax.random.split(kx, 3)
    x = jax.random.normal(kx1, (B, N, in_dim), jnp.float32)
    x_s = jax.random.normal(kx2, (B, N, str_dim), jnp.float32)
    adj = (jax.random.uniform(kx3, (B, N, N)) > 0.5).astype(jnp.float32)
    adj = jnp.maximum(adj, jnp.swapaxes(adj, 1, 2))     # symmetric adjacency

    fwd = jax.jit(functools.partial(outlier_model_forward, heads=heads))
    z, sf, ss = fwd(params, x, x_s, adj)
    jax.block_until_ready((z, sf, ss))

    assert z.shape == (B, hid_dim)
    assert sf.shape == (B, cluster_dim, hid_dim)
    assert ss.shape == (B, cluster_dim, hid_dim)
    assert bool(jnp.all(jnp.isfinite(z)))
    print("KERNEL_OK")
</pallas_src>

<mosaic_0001>
module attributes {stable_mosaic.version = 11 : i64} {
  func.func @_fused_kernel(%arg0: i32, %arg1: memref<1x8x16xf32, #tpu.memory_space<vmem>>, %arg2: memref<1x8x18xf32, #tpu.memory_space<vmem>>, %arg3: memref<1x8x8xf32, #tpu.memory_space<vmem>>, %arg4: memref<16x32xf32, #tpu.memory_space<vmem>>, %arg5: memref<1x32xf32, #tpu.memory_space<vmem>>, %arg6: memref<32x32xf32, #tpu.memory_space<vmem>>, %arg7: memref<1x32xf32, #tpu.memory_space<vmem>>, %arg8: memref<32x4xf32, #tpu.memory_space<vmem>>, %arg9: memref<1x4xf32, #tpu.memory_space<vmem>>, %arg10: memref<18x32xf32, #tpu.memory_space<vmem>>, %arg11: memref<1x32xf32, #tpu.memory_space<vmem>>, %arg12: memref<32x32xf32, #tpu.memory_space<vmem>>, %arg13: memref<1x32xf32, #tpu.memory_space<vmem>>, %arg14: memref<32x4xf32, #tpu.memory_space<vmem>>, %arg15: memref<1x4xf32, #tpu.memory_space<vmem>>, %arg16: memref<64x32xf32, #tpu.memory_space<vmem>>, %arg17: memref<1x32xf32, #tpu.memory_space<vmem>>, %arg18: memref<1x32xf32, #tpu.memory_space<vmem>>, %arg19: memref<2x4x32x8xf32, #tpu.memory_space<vmem>>, %arg20: memref<2x4x1x8xf32, #tpu.memory_space<vmem>>, %arg21: memref<2x4x32x8xf32, #tpu.memory_space<vmem>>, %arg22: memref<2x4x1x8xf32, #tpu.memory_space<vmem>>, %arg23: memref<2x4x32x8xf32, #tpu.memory_space<vmem>>, %arg24: memref<2x4x1x8xf32, #tpu.memory_space<vmem>>, %arg25: memref<2x4x8x32xf32, #tpu.memory_space<vmem>>, %arg26: memref<2x1x32xf32, #tpu.memory_space<vmem>>, %arg27: memref<2x1x32xf32, #tpu.memory_space<vmem>>, %arg28: memref<2x1x32xf32, #tpu.memory_space<vmem>>, %arg29: memref<2x32x64xf32, #tpu.memory_space<vmem>>, %arg30: memref<2x1x64xf32, #tpu.memory_space<vmem>>, %arg31: memref<2x64x32xf32, #tpu.memory_space<vmem>>, %arg32: memref<2x1x32xf32, #tpu.memory_space<vmem>>, %arg33: memref<2x1x32xf32, #tpu.memory_space<vmem>>, %arg34: memref<2x1x32xf32, #tpu.memory_space<vmem>>, %arg35: memref<32x32xf32, #tpu.memory_space<vmem>>, %arg36: memref<1x32xf32, #tpu.memory_space<vmem>>, %arg37: memref<32x32xf32, #tpu.memory_space<vmem>>, %arg38: memref<1x32xf32, #tpu.memory_space<vmem>>, %arg39: memref<1x1x32xf32, #tpu.memory_space<vmem>>, %arg40: memref<1x4x32xf32, #tpu.memory_space<vmem>>, %arg41: memref<1x4x32xf32, #tpu.memory_space<vmem>>) attributes {dimension_semantics = [#tpu.dimension_semantics<parallel>], iteration_bounds = array<i64: 2>, scalar_prefetch = 0 : i64, scratch_operands = 0 : i64, tpu.core_type = #tpu.core_type<tc>, window_params = [{transform_indices = @transform_0, window_bounds = array<i64: 1, 8, 16>}, {transform_indices = @transform_1, window_bounds = array<i64: 1, 8, 18>}, {transform_indices = @transform_2, window_bounds = array<i64: 1, 8, 8>}, {pipeline_mode = #tpu.pipeline_mode<synchronous>, transform_indices = @transform_3, window_bounds = array<i64: 16, 32>}, {pipeline_mode = #tpu.pipeline_mode<synchronous>, transform_indices = @transform_4, window_bounds = array<i64: 1, 32>}, {pipeline_mode = #tpu.pipeline_mode<synchronous>, transform_indices = @transform_5, window_bounds = array<i64: 32, 32>}, {pipeline_mode = #tpu.pipeline_mode<synchronous>, transform_indices = @transform_6, window_bounds = array<i64: 1, 32>}, {pipeline_mode = #tpu.pipeline_mode<synchronous>, transform_indices = @transform_7, window_bounds = array<i64: 32, 4>}, {pipeline_mode = #tpu.pipeline_mode<synchronous>, transform_indices = @transform_8, window_bounds = array<i64: 1, 4>}, {pipeline_mode = #tpu.pipeline_mode<synchronous>, transform_indices = @transform_9, window_bounds = array<i64: 18, 32>}, {pipeline_mode = #tpu.pipeline_mode<synchronous>, transform_indices = @transform_10, window_bounds = array<i64: 1, 32>}, {pipeline_mode = #tpu.pipeline_mode<synchronous>, transform_indices = @transform_11, window_bounds = array<i64: 32, 32>}, {pipeline_mode = #tpu.pipeline_mode<synchronous>, transform_indices = @transform_12, window_bounds = array<i64: 1, 32>}, {pipeline_mode = #tpu.pipeline_mode<synchronous>, transform_indices = @transform_13, window_bounds = array<i64: 32, 4>}, {pipeline_mode = #tpu.pipeline_mode<synchronous>, transform_indices = @transform_14, window_bounds = array<i64: 1, 4>}, {pipeline_mode = #tpu.pipeline_mode<synchronous>, transform_indices = @transform_15, window_bounds = array<i64: 64, 32>}, {pipeline_mode = #tpu.pipeline_mode<synchronous>, transform_indices = @transform_16, window_bounds = array<i64: 1, 32>}, {pipeline_mode = #tpu.pipeline_mode<synchronous>, transform_indices = @transform_17, window_bounds = array<i64: 1, 32>}, {pipeline_mode = #tpu.pipeline_mode<synchronous>, transform_indices = @transform_18, window_bounds = array<i64: 2, 4, 32, 8>}, {pipeline_mode = #tpu.pipeline_mode<synchronous>, transform_indices = @transform_19, window_bounds = array<i64: 2, 4, 1, 8>}, {pipeline_mode = #tpu.pipeline_mode<synchronous>, transform_indices = @transform_20, window_bounds = array<i64: 2, 4, 32, 8>}, {pipeline_mode = #tpu.pipeline_mode<synchronous>, transform_indices = @transform_21, window_bounds = array<i64: 2, 4, 1, 8>}, {pipeline_mode = #tpu.pipeline_mode<synchronous>, transform_indices = @transform_22, window_bounds = array<i64: 2, 4, 32, 8>}, {pipeline_mode = #tpu.pipeline_mode<synchronous>, transform_indices = @transform_23, window_bounds = array<i64: 2, 4, 1, 8>}, {pipeline_mode = #tpu.pipeline_mode<synchronous>, transform_indices = @transform_24, window_bounds = array<i64: 2, 4, 8, 32>}, {pipeline_mode = #tpu.pipeline_mode<synchronous>, transform_indices = @transform_25, window_bounds = array<i64: 2, 1, 32>}, {pipeline_mode = #tpu.pipeline_mode<synchronous>, transform_indices = @transform_26, window_bounds = array<i64: 2, 1, 32>}, {pipeline_mode = #tpu.pipeline_mode<synchronous>, transform_indices = @transform_27, window_bounds = array<i64: 2, 1, 32>}, {pipeline_mode = #tpu.pipeline_mode<synchronous>, transform_indices = @transform_28, window_bounds = array<i64: 2, 32, 64>}, {pipeline_mode = #tpu.pipeline_mode<synchronous>, transform_indices = @transform_29, window_bounds = array<i64: 2, 1, 64>}, {pipeline_mode = #tpu.pipeline_mode<synchronous>, transform_indices = @transform_30, window_bounds = array<i64: 2, 64, 32>}, {pipeline_mode = #tpu.pipeline_mode<synchronous>, transform_indices = @transform_31, window_bounds = array<i64: 2, 1, 32>}, {pipeline_mode = #tpu.pipeline_mode<synchronous>, transform_indices = @transform_32, window_bounds = array<i64: 2, 1, 32>}, {pipeline_mode = #tpu.pipeline_mode<synchronous>, transform_indices = @transform_33, window_bounds = array<i64: 2, 1, 32>}, {pipeline_mode = #tpu.pipeline_mode<synchronous>, transform_indices = @transform_34, window_bounds = array<i64: 32, 32>}, {pipeline_mode = #tpu.pipeline_mode<synchronous>, transform_indices = @transform_35, window_bounds = array<i64: 1, 32>}, {pipeline_mode = #tpu.pipeline_mode<synchronous>, transform_indices = @transform_36, window_bounds = array<i64: 32, 32>}, {pipeline_mode = #tpu.pipeline_mode<synchronous>, transform_indices = @transform_37, window_bounds = array<i64: 1, 32>}, {transform_indices = @transform_38, window_bounds = array<i64: 1, 1, 32>}, {transform_indices = @transform_39, window_bounds = array<i64: 1, 4, 32>}, {transform_indices = @transform_40, window_bounds = array<i64: 1, 4, 32>}]} {
    %c0 = arith.constant 0 : index
    %c0_0 = arith.constant 0 : index
    %c0_1 = arith.constant 0 : index
    %0 = vector.load %arg3[%c0, %c0_0, %c0_1] : memref<1x8x8xf32, #tpu.memory_space<vmem>>, vector<1x8x8xf32>
    %1 = vector.shape_cast %0 : vector<1x8x8xf32> to vector<8x8xf32>
    %c0_2 = arith.constant 0 : index
    %c0_3 = arith.constant 0 : index
    %c0_4 = arith.constant 0 : index
    %2 = vector.load %arg1[%c0_2, %c0_3, %c0_4] : memref<1x8x16xf32, #tpu.memory_space<vmem>>, vector<1x8x16xf32>
    %3 = vector.shape_cast %2 : vector<1x8x16xf32> to vector<8x16xf32>
    %cst = arith.constant dense<0.000000e+00> : vector<8x16xf32>
    %4 = tpu.matmul %1, %3, %cst {dimension_numbers = #tpu.dot_dimension_numbers<[1], [0], [0], [1], [0, 0, 1, 1], [], []>} : vector<8x8xf32>, vector<8x16xf32>, vector<8x16xf32> -> vector<8x16xf32>
    %c0_5 = arith.constant 0 : index
    %c0_6 = arith.constant 0 : index
    %5 = vector.load %arg4[%c0_5, %c0_6] : memref<16x32xf32, #tpu.memory_space<vmem>>, vector<16x32xf32>
    %cst_7 = arith.constant dense<0.000000e+00> : vector<8x32xf32>
    %6 = tpu.matmul %4, %5, %cst_7 {dimension_numbers = #tpu.dot_dimension_numbers<[1], [0], [0], [1], [0, 0, 1, 1], [], []>} : vector<8x16xf32>, vector<16x32xf32>, vector<8x32xf32> -> vector<8x32xf32>
    %c0_8 = arith.constant 0 : index
    %c0_9 = arith.constant 0 : index
    %7 = vector.load %arg5[%c0_8, %c0_9] : memref<1x32xf32, #tpu.memory_space<vmem>>, vector<1x32xf32>
    %8 = vector.broadcast %7 : vector<1x32xf32> to vector<8x32xf32>
    %9 = arith.addf %6, %8 : vector<8x32xf32>
    %cst_10 = arith.constant 0.000000e+00 : f32
    %10 = vector.broadcast %cst_10 : f32 to vector<8x32xf32>
    %11 = arith.maximumf %9, %10 : vector<8x32xf32>
    %cst_11 = arith.constant dense<0.000000e+00> : vector<8x32xf32>
    %12 = tpu.matmul %1, %11, %cst_11 {dimension_numbers = #tpu.dot_dimension_numbers<[1], [0], [0], [1], [0, 0, 1, 1], [], []>} : vector<8x8xf32>, vector<8x32xf32>, vector<8x32xf32> -> vector<8x32xf32>
    %c0_12 = arith.constant 0 : index
    %c0_13 = arith.constant 0 : index
    %13 = vector.load %arg6[%c0_12, %c0_13] : memref<32x32xf32, #tpu.memory_space<vmem>>, vector<32x32xf32>
    %cst_14 = arith.constant dense<0.000000e+00> : vector<8x32xf32>
    %14 = tpu.matmul %12, %13, %cst_14 {dimension_numbers = #tpu.dot_dimension_numbers<[1], [0], [0], [1], [0, 0, 1, 1], [], []>} : vector<8x32xf32>, vector<32x32xf32>, vector<8x32xf32> -> vector<8x32xf32>
    %c0_15 = arith.constant 0 : index
    %c0_16 = arith.constant 0 : index
    %15 = vector.load %arg7[%c0_15, %c0_16] : memref<1x32xf32, #tpu.memory_space<vmem>>, vector<1x32xf32>
    %16 = vector.broadcast %15 : vector<1x32xf32> to vector<8x32xf32>
    %17 = arith.addf %14, %16 : vector<8x32xf32>
    %cst_17 = arith.constant 0.000000e+00 : f32
    %18 = vector.broadcast %cst_17 : f32 to vector<8x32xf32>
    %19 = arith.maximumf %17, %18 : vector<8x32xf32>
    %c0_18 = arith.constant 0 : index
    %c0_19 = arith.constant 0 : index
    %20 = vector.load %arg8[%c0_18, %c0_19] : memref<32x4xf32, #tpu.memory_space<vmem>>, vector<32x4xf32>
    %cst_20 = arith.constant dense<0.000000e+00> : vector<8x4xf32>
    %21 = tpu.matmul %19, %20, %cst_20 {dimension_numbers = #tpu.dot_dimension_numbers<[1], [0], [0], [1], [0, 0, 1, 1], [], []>} : vector<8x32xf32>, vector<32x4xf32>, vector<8x4xf32> -> vector<8x4xf32>
    %c0_21 = arith.constant 0 : index
    %c0_22 = arith.constant 0 : index
    %22 = vector.load %arg9[%c0_21, %c0_22] : memref<1x4xf32, #tpu.memory_space<vmem>>, vector<1x4xf32>
    %23 = vector.broadcast %22 : vector<1x4xf32> to vector<8x4xf32>
    %24 = arith.addf %21, %23 : vector<8x4xf32>
    %cst_23 = arith.constant dense<0xFF800000> : vector<8xf32>
    %25 = vector.multi_reduction <maximumf>, %24, %cst_23 [1] : vector<8x4xf32> to vector<8xf32>
    %26 = vector.shape_cast %25 : vector<8xf32> to vector<8x1xf32>
    %27 = vector.broadcast %26 : vector<8x1xf32> to vector<8x4xf32>
    %28 = arith.subf %24, %27 : vector<8x4xf32>
    %29 = math.exp %28 : vector<8x4xf32>
    %cst_24 = arith.constant dense<0.000000e+00> : vector<8xf32>
    %30 = vector.multi_reduction <add>, %29, %cst_24 [1] : vector<8x4xf32> to vector<8xf32>
    %31 = vector.shape_cast %30 : vector<8xf32> to vector<8x1xf32>
    %32 = vector.broadcast %31 : vector<8x1xf32> to vector<8x4xf32>
    %33 = arith.divf %29, %32 : vector<8x4xf32>
    %cst_25 = arith.constant dense<0.000000e+00> : vector<4x32xf32>
    %34 = tpu.matmul %33, %19, %cst_25 {dimension_numbers = #tpu.dot_dimension_numbers<[0], [0], [1], [1], [0, 1, 1, 1], [], []>} : vector<8x4xf32>, vector<8x32xf32>, vector<4x32xf32> -> vector<4x32xf32>
    %c0_26 = arith.constant 0 : index
    %c0_27 = arith.constant 0 : index
    %c0_28 = arith.constant 0 : index
    %35 = vector.load %arg2[%c0_26, %c0_27, %c0_28] : memref<1x8x18xf32, #tpu.memory_space<vmem>>, vector<1x8x18xf32>
    %36 = vector.shape_cast %35 : vector<1x8x18xf32> to vector<8x18xf32>
    %cst_29 = arith.constant dense<0.000000e+00> : vector<8x18xf32>
    %37 = tpu.matmul %1, %36, %cst_29 {dimension_numbers = #tpu.dot_dimension_numbers<[1], [0], [0], [1], [0, 0, 1, 1], [], []>} : vector<8x8xf32>, vector<8x18xf32>, vector<8x18xf32> -> vector<8x18xf32>
    %c0_30 = arith.constant 0 : index
    %c0_31 = arith.constant 0 : index
    %38 = vector.load %arg10[%c0_30, %c0_31] : memref<18x32xf32, #tpu.memory_space<vmem>>, vector<18x32xf32>
    %cst_32 = arith.constant dense<0.000000e+00> : vector<8x32xf32>
    %39 = tpu.matmul %37, %38, %cst_32 {dimension_numbers = #tpu.dot_dimension_numbers<[1], [0], [0], [1], [0, 0, 1, 1], [], []>} : vector<8x18xf32>, vector<18x32xf32>, vector<8x32xf32> -> vector<8x32xf32>
    %c0_33 = arith.constant 0 : index
    %c0_34 = arith.constant 0 : index
    %40 = vector.load %arg11[%c0_33, %c0_34] : memref<1x32xf32, #tpu.memory_space<vmem>>, vector<1x32xf32>
    %41 = vector.broadcast %40 : vector<1x32xf32> to vector<8x32xf32>
    %42 = arith.addf %39, %41 : vector<8x32xf32>
    %cst_35 = arith.constant 0.000000e+00 : f32
    %43 = vector.broadcast %cst_35 : f32 to vector<8x32xf32>
    %44 = arith.maximumf %42, %43 : vector<8x32xf32>
    %cst_36 = arith.constant dense<0.000000e+00> : vector<8x32xf32>
    %45 = tpu.matmul %1, %44, %cst_36 {dimension_numbers = #tpu.dot_dimension_numbers<[1], [0], [0], [1], [0, 0, 1, 1], [], []>} : vector<8x8xf32>, vector<8x32xf32>, vector<8x32xf32> -> vector<8x32xf32>
    %c0_37 = arith.constant 0 : index
    %c0_38 = arith.constant 0 : index
    %46 = vector.load %arg12[%c0_37, %c0_38] : memref<32x32xf32, #tpu.memory_space<vmem>>, vector<32x32xf32>
    %cst_39 = arith.constant dense<0.000000e+00> : vector<8x32xf32>
    %47 = tpu.matmul %45, %46, %cst_39 {dimension_numbers = #tpu.dot_dimension_numbers<[1], [0], [0], [1], [0, 0, 1, 1], [], []>} : vector<8x32xf32>, vector<32x32xf32>, vector<8x32xf32> -> vector<8x32xf32>
    %c0_40 = arith.constant 0 : index
    %c0_41 = arith.constant 0 : index
    %48 = vector.load %arg13[%c0_40, %c0_41] : memref<1x32xf32, #tpu.memory_space<vmem>>, vector<1x32xf32>
    %49 = vector.broadcast %48 : vector<1x32xf32> to vector<8x32xf32>
    %50 = arith.addf %47, %49 : vector<8x32xf32>
    %cst_42 = arith.constant 0.000000e+00 : f32
    %51 = vector.broadcast %cst_42 : f32 to vector<8x32xf32>
    %52 = arith.maximumf %50, %51 : vector<8x32xf32>
    %c0_43 = arith.constant 0 : index
    %c0_44 = arith.constant 0 : index
    %53 = vector.load %arg14[%c0_43, %c0_44] : memref<32x4xf32, #tpu.memory_space<vmem>>, vector<32x4xf32>
    %cst_45 = arith.constant dense<0.000000e+00> : vector<8x4xf32>
    %54 = tpu.matmul %52, %53, %cst_45 {dimension_numbers = #tpu.dot_dimension_numbers<[1], [0], [0], [1], [0, 0, 1, 1], [], []>} : vector<8x32xf32>, vector<32x4xf32>, vector<8x4xf32> -> vector<8x4xf32>
    %c0_46 = arith.constant 0 : index
    %c0_47 = arith.constant 0 : index
    %55 = vector.load %arg15[%c0_46, %c0_47] : memref<1x4xf32, #tpu.memory_space<vmem>>, vector<1x4xf32>
    %56 = vector.broadcast %55 : vector<1x4xf32> to vector<8x4xf32>
    %57 = arith.addf %54, %56 : vector<8x4xf32>
    %cst_48 = arith.constant dense<0xFF800000> : vector<8xf32>
    %58 = vector.multi_reduction <maximumf>, %57, %cst_48 [1] : vector<8x4xf32> to vector<8xf32>
    %59 = vector.shape_cast %58 : vector<8xf32> to vector<8x1xf32>
    %60 = vector.broadcast %59 : vector<8x1xf32> to vector<8x4xf32>
    %61 = arith.subf %57, %60 : vector<8x4xf32>
    %62 = math.exp %61 : vector<8x4xf32>
    %cst_49 = arith.constant dense<0.000000e+00> : vector<8xf32>
    %63 = vector.multi_reduction <add>, %62, %cst_49 [1] : vector<8x4xf32> to vector<8xf32>
    %64 = vector.shape_cast %63 : vector<8xf32> to vector<8x1xf32>
    %65 = vector.broadcast %64 : vector<8x1xf32> to vector<8x4xf32>
    %66 = arith.divf %62, %65 : vector<8x4xf32>
    %cst_50 = arith.constant dense<0.000000e+00> : vector<4x32xf32>
    %67 = tpu.matmul %66, %52, %cst_50 {dimension_numbers = #tpu.dot_dimension_numbers<[0], [0], [1], [1], [0, 1, 1, 1], [], []>} : vector<8x4xf32>, vector<8x32xf32>, vector<4x32xf32> -> vector<4x32xf32>
    %c0_51 = arith.constant 0 : index
    %c0_52 = arith.constant 0 : index
    %c0_53 = arith.constant 0 : index
    %68 = vector.load %arg40[%c0_51, %c0_52, %c0_53] : memref<1x4x32xf32, #tpu.memory_space<vmem>>, vector<1x4x32xf32>
    %69 = vector.shape_cast %68 : vector<1x4x32xf32> to vector<4x32xf32>
    %70 = vector.shape_cast %34 : vector<4x32xf32> to vector<1x4x32xf32>
    tpu.vector_store %arg40[%c0_51, %c0_52, %c0_53], %70 {strides = array<i32>} : memref<1x4x32xf32, #tpu.memory_space<vmem>>, vector<1x4x32xf32>,
    %c0_54 = arith.constant 0 : index
    %c0_55 = arith.constant 0 : index
    %c0_56 = arith.constant 0 : index
    %71 = vector.load %arg41[%c0_54, %c0_55, %c0_56] : memref<1x4x32xf32, #tpu.memory_space<vmem>>, vector<1x4x32xf32>
    %72 = vector.shape_cast %71 : vector<1x4x32xf32> to vector<4x32xf32>
    %73 = vector.shape_cast %67 : vector<4x32xf32> to vector<1x4x32xf32>
    tpu.vector_store %arg41[%c0_54, %c0_55, %c0_56], %73 {strides = array<i32>} : memref<1x4x32xf32, #tpu.memory_space<vmem>>, vector<1x4x32xf32>,
    %74 = tpu.concatenate %34, %67 in 1 : vector<4x32xf32>, vector<4x32xf32> -> vector<4x64xf32>
    %c0_57 = arith.constant 0 : index
    %c0_58 = arith.constant 0 : index
    %75 = vector.load %arg16[%c0_57, %c0_58] : memref<64x32xf32, #tpu.memory_space<vmem>>, vector<64x32xf32>
    %cst_59 = arith.constant dense<0.000000e+00> : vector<4x32xf32>
    %76 = tpu.matmul %74, %75, %cst_59 {dimension_numbers = #tpu.dot_dimension_numbers<[1], [0], [0], [1], [0, 0, 1, 1], [], []>} : vector<4x64xf32>, vector<64x32xf32>, vector<4x32xf32> -> vector<4x32xf32>
    %c0_60 = arith.constant 0 : index
    %c0_61 = arith.constant 0 : index
    %77 = vector.load %arg17[%c0_60, %c0_61] : memref<1x32xf32, #tpu.memory_space<vmem>>, vector<1x32xf32>
    %78 = vector.broadcast %77 : vector<1x32xf32> to vector<4x32xf32>
    %79 = arith.addf %76, %78 : vector<4x32xf32>
    %c0_62 = arith.constant 0 : index
    %c0_63 = arith.constant 0 : index
    %80 = vector.load %arg18[%c0_62, %c0_63] : memref<1x32xf32, #tpu.memory_space<vmem>>, vector<1x32xf32>
    %81 = tpu.concatenate %80, %79 in 0 : vector<1x32xf32>, vector<4x32xf32> -> vector<5x32xf32>
    %82 = vector.shape_cast %81 : vector<5x32xf32> to vector<1x5x32xf32>
    %83 = vector.shape_cast %82 : vector<1x5x32xf32> to vector<1x5x32xf32>
    %84 = vector.broadcast %83 : vector<1x5x32xf32> to vector<4x5x32xf32>
    %c0_64 = arith.constant 0 : index
    %c0_65 = arith.constant 0 : index
    %c0_66 = arith.constant 0 : index
    %c0_67 = arith.constant 0 : index
    %85 = vector.load %arg19[%c0_64, %c0_65, %c0_66, %c0_67] : memref<2x4x32x8xf32, #tpu.memory_space<vmem>>, vector<1x4x32x8xf32>
    %86 = vector.shape_cast %85 : vector<1x4x32x8xf32> to vector<4x32x8xf32>
    "tpu.trace_start"() <{level = 10 : i32, message = "hsd,hde->hse"}> : () -> ()
    %cst_68 = arith.constant dense<0.000000e+00> : vector<4x5x8xf32>
    %87 = tpu.matmul %84, %86, %cst_68 {dimension_numbers = #tpu.dot_dimension_numbers<[2], [1], [1], [2], [0, 0, 0, 1, 1, 2], [0], [0]>} : vector<4x5x32xf32>, vector<4x32x8xf32>, vector<4x5x8xf32> -> vector<4x5x8xf32>
    "tpu.trace_stop"() : () -> ()
    %c0_69 = arith.constant 0 : index
    %c0_70 = arith.constant 0 : index
    %c0_71 = arith.constant 0 : index
    %c0_72 = arith.constant 0 : index
    %88 = vector.load %arg20[%c0_69, %c0_70, %c0_71, %c0_72] : memref<2x4x1x8xf32, #tpu.memory_space<vmem>>, vector<1x4x1x8xf32>
    %89 = vector.shape_cast %88 : vector<1x4x1x8xf32> to vector<4x1x8xf32>
    %90 = vector.broadcast %89 : vector<4x1x8xf32> to vector<4x5x8xf32>
    %91 = arith.addf %87, %90 : vector<4x5x8xf32>
    %c0_73 = arith.constant 0 : index
    %c0_74 = arith.constant 0 : index
    %c0_75 = arith.constant 0 : index
    %c0_76 = arith.constant 0 : index
    %92 = vector.load %arg21[%c0_73, %c0_74, %c0_75, %c0_76] : memref<2x4x32x8xf32, #tpu.memory_space<vmem>>, vector<1x4x32x8xf32>
    %93 = vector.shape_cast %92 : vector<1x4x32x8xf32> to vector<4x32x8xf32>
    "tpu.trace_start"() <{level = 10 : i32, message = "hsd,hde->hse"}> : () -> ()
    %cst_77 = arith.constant dense<0.000000e+00> : vector<4x5x8xf32>
    %94 = tpu.matmul %84, %93, %cst_77 {dimension_numbers = #tpu.dot_dimension_numbers<[2], [1], [1], [2], [0, 0, 0, 1, 1, 2], [0], [0]>} : vector<4x5x32xf32>, vector<4x32x8xf32>, vector<4x5x8xf32> -> vector<4x5x8xf32>
    "tpu.trace_stop"() : () -> ()
    %c0_78 = arith.constant 0 : index
    %c0_79 = arith.constant 0 : index
    %c0_80 = arith.constant 0 : index
    %c0_81 = arith.constant 0 : index
    %95 = vector.load %arg22[%c0_78, %c0_79, %c0_80, %c0_81] : memref<2x4x1x8xf32, #tpu.memory_space<vmem>>, vector<1x4x1x8xf32>
    %96 = vector.shape_cast %95 : vector<1x4x1x8xf32> to vector<4x1x8xf32>
    %97 = vector.broadcast %96 : vector<4x1x8xf32> to vector<4x5x8xf32>
    %98 = arith.addf %94, %97 : vector<4x5x8xf32>
    %c0_82 = arith.constant 0 : index
    %c0_83 = arith.constant 0 : index
    %c0_84 = arith.constant 0 : index
    %c0_85 = arith.constant 0 : index
    %99 = vector.load %arg23[%c0_82, %c0_83, %c0_84, %c0_85] : memref<2x4x32x8xf32, #tpu.memory_space<vmem>>, vector<1x4x32x8xf32>
    %100 = vector.shape_cast %99 : vector<1x4x32x8xf32> to vector<4x32x8xf32>
    "tpu.trace_start"() <{level = 10 : i32, message = "hsd,hde->hse"}> : () -> ()
    %cst_86 = arith.constant dense<0.000000e+00> : vector<4x5x8xf32>
    %101 = tpu.matmul %84, %100, %cst_86 {dimension_numbers = #tpu.dot_dimension_numbers<[2], [1], [1], [2], [0, 0, 0, 1, 1, 2], [0], [0]>} : vector<4x5x32xf32>, vector<4x32x8xf32>, vector<4x5x8xf32> -> vector<4x5x8xf32>
    "tpu.trace_stop"() : () -> ()
    %c0_87 = arith.constant 0 : index
    %c0_88 = arith.constant 0 : index
    %c0_89 = arith.constant 0 : index
    %c0_90 = arith.constant 0 : index
    %102 = vector.load %arg24[%c0_87, %c0_88, %c0_89, %c0_90] : memref<2x4x1x8xf32, #tpu.memory_space<vmem>>, vector<1x4x1x8xf32>
    %103 = vector.shape_cast %102 : vector<1x4x1x8xf32> to vector<4x1x8xf32>
    %104 = vector.broadcast %103 : vector<4x1x8xf32> to vector<4x5x8xf32>
    %105 = arith.addf %101, %104 : vector<4x5x8xf32>
    "tpu.trace_start"() <{level = 10 : i32, message = "hqe,hke->hqk"}> : () -> ()
    %cst_91 = arith.constant dense<0.000000e+00> : vector<4x5x5xf32>
    %106 = tpu.matmul %91, %98, %cst_91 {dimension_numbers = #tpu.dot_dimension_numbers<[2], [2], [1], [1], [0, 0, 0, 1, 1, 1], [0], [0]>} : vector<4x5x8xf32>, vector<4x5x8xf32>, vector<4x5x5xf32> -> vector<4x5x5xf32>
    "tpu.trace_stop"() : () -> ()
    %cst_92 = arith.constant dense<0xFF800000> : vector<4x5xf32>
    %107 = vector.multi_reduction <maximumf>, %106, %cst_92 [2] : vector<4x5x5xf32> to vector<4x5xf32>
    %108 = vector.shape_cast %107 : vector<4x5xf32> to vector<4x5x1xf32>
    %109 = vector.broadcast %108 : vector<4x5x1xf32> to vector<4x5x5xf32>
    %110 = arith.subf %106, %109 : vector<4x5x5xf32>
    %111 = math.exp %110 : vector<4x5x5xf32>
    %cst_93 = arith.constant dense<0.000000e+00> : vector<4x5xf32>
    %112 = vector.multi_reduction <add>, %111, %cst_93 [2] : vector<4x5x5xf32> to vector<4x5xf32>
    %113 = vector.shape_cast %112 : vector<4x5xf32> to vector<4x5x1xf32>
    %114 = vector.broadcast %113 : vector<4x5x1xf32> to vector<4x5x5xf32>
    %115 = arith.divf %111, %114 : vector<4x5x5xf32>
    "tpu.trace_start"() <{level = 10 : i32, message = "hqk,hke->hqe"}> : () -> ()
    %cst_94 = arith.constant dense<0.000000e+00> : vector<4x5x8xf32>
    %116 = tpu.matmul %115, %105, %cst_94 {dimension_numbers = #tpu.dot_dimension_numbers<[2], [1], [1], [2], [0, 0, 0, 1, 1, 2], [0], [0]>} : vector<4x5x5xf32>, vector<4x5x8xf32>, vector<4x5x8xf32> -> vector<4x5x8xf32>
    "tpu.trace_stop"() : () -> ()
    %c0_95 = arith.constant 0 : index
    %c0_96 = arith.constant 0 : index
    %c0_97 = arith.constant 0 : index
    %c0_98 = arith.constant 0 : index
    %117 = vector.load %arg25[%c0_95, %c0_96, %c0_97, %c0_98] : memref<2x4x8x32xf32, #tpu.memory_space<vmem>>, vector<1x4x8x32xf32>
    %118 = vector.shape_cast %117 : vector<1x4x8x32xf32> to vector<4x8x32xf32>
    "tpu.trace_start"() <{level = 10 : i32, message = "hse,hed->hsd"}> : () -> ()
    %cst_99 = arith.constant dense<0.000000e+00> : vector<4x5x32xf32>
    %119 = tpu.matmul %116, %118, %cst_99 {dimension_numbers = #tpu.dot_dimension_numbers<[2], [1], [1], [2], [0, 0, 0, 1, 1, 2], [0], [0]>} : vector<4x5x8xf32>, vector<4x8x32xf32>, vector<4x5x32xf32> -> vector<4x5x32xf32>
    "tpu.trace_stop"() : () -> ()
    %cst_100 = arith.constant dense<0.000000e+00> : vector<5x32xf32>
    %120 = vector.multi_reduction <add>, %119, %cst_100 [0] : vector<4x5x32xf32> to vector<5x32xf32>
    %c0_101 = arith.constant 0 : index
    %c0_102 = arith.constant 0 : index
    %c0_103 = arith.constant 0 : index
    %121 = vector.load %arg26[%c0_101, %c0_102, %c0_103] : memref<2x1x32xf32, #tpu.memory_space<vmem>>, vector<1x1x32xf32>
    %122 = vector.shape_cast %121 : vector<1x1x32xf32> to vector<1x32xf32>
    %123 = vector.broadcast %122 : vector<1x32xf32> to vector<5x32xf32>
    %124 = arith.addf %120, %123 : vector<5x32xf32>
    %125 = arith.addf %81, %124 : vector<5x32xf32>
    %c0_104 = arith.constant 0 : index
    %c0_105 = arith.constant 0 : index
    %c0_106 = arith.constant 0 : index
    %126 = vector.load %arg27[%c0_104, %c0_105, %c0_106] : memref<2x1x32xf32, #tpu.memory_space<vmem>>, vector<1x1x32xf32>
    %127 = vector.shape_cast %126 : vector<1x1x32xf32> to vector<1x32xf32>
    %c0_107 = arith.constant 0 : index
    %c0_108 = arith.constant 0 : index
    %c0_109 = arith.constant 0 : index
    %128 = vector.load %arg28[%c0_107, %c0_108, %c0_109] : memref<2x1x32xf32, #tpu.memory_space<vmem>>, vector<1x1x32xf32>
    %129 = vector.shape_cast %128 : vector<1x1x32xf32> to vector<1x32xf32>
    %cst_110 = arith.constant dense<0.000000e+00> : vector<5xf32>
    %130 = vector.multi_reduction <add>, %125, %cst_110 [1] : vector<5x32xf32> to vector<5xf32>
    %131 = vector.shape_cast %130 : vector<5xf32> to vector<5x1xf32>
    %cst_111 = arith.constant 3.200000e+01 : f32
    %132 = vector.broadcast %cst_111 : f32 to vector<5x1xf32>
    %133 = arith.divf %131, %132 : vector<5x1xf32>
    %134 = vector.broadcast %133 : vector<5x1xf32> to vector<5x32xf32>
    %135 = arith.subf %125, %134 : vector<5x32xf32>
    %136 = arith.mulf %135, %135 : vector<5x32xf32>
    %cst_112 = arith.constant dense<0.000000e+00> : vector<5xf32>
    %137 = vector.multi_reduction <add>, %136, %cst_112 [1] : vector<5x32xf32> to vector<5xf32>
    %138 = vector.shape_cast %137 : vector<5xf32> to vector<5x1xf32>
    %cst_113 = arith.constant 3.200000e+01 : f32
    %139 = vector.broadcast %cst_113 : f32 to vector<5x1xf32>
    %140 = arith.divf %138, %139 : vector<5x1xf32>
    %141 = vector.broadcast %133 : vector<5x1xf32> to vector<5x32xf32>
    %142 = arith.subf %125, %141 : vector<5x32xf32>
    %cst_114 = arith.constant 9.99999974E-6 : f32
    %143 = vector.broadcast %cst_114 : f32 to vector<5x1xf32>
    %144 = arith.addf %140, %143 : vector<5x1xf32>
    %145 = math.rsqrt %144 : vector<5x1xf32>
    %146 = vector.broadcast %145 : vector<5x1xf32> to vector<5x32xf32>
    %147 = arith.mulf %142, %146 : vector<5x32xf32>
    %148 = vector.broadcast %127 : vector<1x32xf32> to vector<5x32xf32>
    %149 = arith.mulf %147, %148 : vector<5x32xf32>
    %150 = vector.broadcast %129 : vector<1x32xf32> to vector<5x32xf32>
    %151 = arith.addf %149, %150 : vector<5x32xf32>
    %c0_115 = arith.constant 0 : index
    %c0_116 = arith.constant 0 : index
    %c0_117 = arith.constant 0 : index
    %152 = vector.load %arg29[%c0_115, %c0_116, %c0_117] : memref<2x32x64xf32, #tpu.memory_space<vmem>>, vector<1x32x64xf32>
    %153 = vector.shape_cast %152 : vector<1x32x64xf32> to vector<32x64xf32>
    %cst_118 = arith.constant dense<0.000000e+00> : vector<5x64xf32>
    %154 = tpu.matmul %151, %153, %cst_118 {dimension_numbers = #tpu.dot_dimension_numbers<[1], [0], [0], [1], [0, 0, 1, 1], [], []>} : vector<5x32xf32>, vector<32x64xf32>, vector<5x64xf32> -> vector<5x64xf32>
    %c0_119 = arith.constant 0 : index
    %c0_120 = arith.constant 0 : index
    %c0_121 = arith.constant 0 : index
    %155 = vector.load %arg30[%c0_119, %c0_120, %c0_121] : memref<2x1x64xf32, #tpu.memory_space<vmem>>, vector<1x1x64xf32>
    %156 = vector.shape_cast %155 : vector<1x1x64xf32> to vector<1x64xf32>
    %157 = vector.broadcast %156 : vector<1x64xf32> to vector<5x64xf32>
    %158 = arith.addf %154, %157 : vector<5x64xf32>
    %cst_122 = arith.constant 0.000000e+00 : f32
    %159 = vector.broadcast %cst_122 : f32 to vector<5x64xf32>
    %160 = arith.maximumf %158, %159 : vector<5x64xf32>
    %c0_123 = arith.constant 0 : index
    %c0_124 = arith.constant 0 : index
    %c0_125 = arith.constant 0 : index
    %161 = vector.load %arg31[%c0_123, %c0_124, %c0_125] : memref<2x64x32xf32, #tpu.memory_space<vmem>>, vector<1x64x32xf32>
    %162 = vector.shape_cast %161 : vector<1x64x32xf32> to vector<64x32xf32>
    %cst_126 = arith.constant dense<0.000000e+00> : vector<5x32xf32>
    %163 = tpu.matmul %160, %162, %cst_126 {dimension_numbers = #tpu.dot_dimension_numbers<[1], [0], [0], [1], [0, 0, 1, 1], [], []>} : vector<5x64xf32>, vector<64x32xf32>, vector<5x32xf32> -> vector<5x32xf32>
    %c0_127 = arith.constant 0 : index
    %c0_128 = arith.constant 0 : index
    %c0_129 = arith.constant 0 : index
    %164 = vector.load %arg32[%c0_127, %c0_128, %c0_129] : memref<2x1x32xf32, #tpu.memory_space<vmem>>, vector<1x1x32xf32>
    %165 = vector.shape_cast %164 : vector<1x1x32xf32> to vector<1x32xf32>
    %166 = vector.broadcast %165 : vector<1x32xf32> to vector<5x32xf32>
    %167 = arith.addf %163, %166 : vector<5x32xf32>
    %168 = arith.addf %151, %167 : vector<5x32xf32>
    %c0_130 = arith.constant 0 : index
    %c0_131 = arith.constant 0 : index
    %c0_132 = arith.constant 0 : index
    %169 = vector.load %arg33[%c0_130, %c0_131, %c0_132] : memref<2x1x32xf32, #tpu.memory_space<vmem>>, vector<1x1x32xf32>
    %170 = vector.shape_cast %169 : vector<1x1x32xf32> to vector<1x32xf32>
    %c0_133 = arith.constant 0 : index
    %c0_134 = arith.constant 0 : index
    %c0_135 = arith.constant 0 : index
    %171 = vector.load %arg34[%c0_133, %c0_134, %c0_135] : memref<2x1x32xf32, #tpu.memory_space<vmem>>, vector<1x1x32xf32>
    %172 = vector.shape_cast %171 : vector<1x1x32xf32> to vector<1x32xf32>
    %cst_136 = arith.constant dense<0.000000e+00> : vector<5xf32>
    %173 = vector.multi_reduction <add>, %168, %cst_136 [1] : vector<5x32xf32> to vector<5xf32>
    %174 = vector.shape_cast %173 : vector<5xf32> to vector<5x1xf32>
    %cst_137 = arith.constant 3.200000e+01 : f32
    %175 = vector.broadcast %cst_137 : f32 to vector<5x1xf32>
    %176 = arith.divf %174, %175 : vector<5x1xf32>
    %177 = vector.broadcast %176 : vector<5x1xf32> to vector<5x32xf32>
    %178 = arith.subf %168, %177 : vector<5x32xf32>
    %179 = arith.mulf %178, %178 : vector<5x32xf32>
    %cst_138 = arith.constant dense<0.000000e+00> : vector<5xf32>
    %180 = vector.multi_reduction <add>, %179, %cst_138 [1] : vector<5x32xf32> to vector<5xf32>
    %181 = vector.shape_cast %180 : vector<5xf32> to vector<5x1xf32>
    %cst_139 = arith.constant 3.200000e+01 : f32
    %182 = vector.broadcast %cst_139 : f32 to vector<5x1xf32>
    %183 = arith.divf %181, %182 : vector<5x1xf32>
    %184 = vector.broadcast %176 : vector<5x1xf32> to vector<5x32xf32>
    %185 = arith.subf %168, %184 : vector<5x32xf32>
    %cst_140 = arith.constant 9.99999974E-6 : f32
    %186 = vector.broadcast %cst_140 : f32 to vector<5x1xf32>
    %187 = arith.addf %183, %186 : vector<5x1xf32>
    %188 = math.rsqrt %187 : vector<5x1xf32>
    %189 = vector.broadcast %188 : vector<5x1xf32> to vector<5x32xf32>
    %190 = arith.mulf %185, %189 : vector<5x32xf32>
    %191 = vector.broadcast %170 : vector<1x32xf32> to vector<5x32xf32>
    %192 = arith.mulf %190, %191 : vector<5x32xf32>
    %193 = vector.broadcast %172 : vector<1x32xf32> to vector<5x32xf32>
    %194 = arith.addf %192, %193 : vector<5x32xf32>
    %195 = vector.shape_cast %194 : vector<5x32xf32> to vector<1x5x32xf32>
    %196 = vector.shape_cast %195 : vector<1x5x32xf32> to vector<1x5x32xf32>
    %197 = vector.broadcast %196 : vector<1x5x32xf32> to vector<4x5x32xf32>
    %c1 = arith.constant 1 : index
    %c0_141 = arith.constant 0 : index
    %c0_142 = arith.constant 0 : index
    %c0_143 = arith.constant 0 : index
    %198 = vector.load %arg19[%c1, %c0_141, %c0_142, %c0_143] : memref<2x4x32x8xf32, #tpu.memory_space<vmem>>, vector<1x4x32x8xf32>
    %199 = vector.shape_cast %198 : vector<1x4x32x8xf32> to vector<4x32x8xf32>
    "tpu.trace_start"() <{level = 10 : i32, message = "hsd,hde->hse"}> : () -> ()
    %cst_144 = arith.constant dense<0.000000e+00> : vector<4x5x8xf32>
    %200 = tpu.matmul %197, %199, %cst_144 {dimension_numbers = #tpu.dot_dimension_numbers<[2], [1], [1], [2], [0, 0, 0, 1, 1, 2], [0], [0]>} : vector<4x5x32xf32>, vector<4x32x8xf32>, vector<4x5x8xf32> -> vector<4x5x8xf32>
    "tpu.trace_stop"() : () -> ()
    %c1_145 = arith.constant 1 : index
    %c0_146 = arith.constant 0 : index
    %c0_147 = arith.constant 0 : index
    %c0_148 = arith.constant 0 : index
    %201 = vector.load %arg20[%c1_145, %c0_146, %c0_147, %c0_148] : memref<2x4x1x8xf32, #tpu.memory_space<vmem>>, vector<1x4x1x8xf32>
    %202 = vector.shape_cast %201 : vector<1x4x1x8xf32> to vector<4x1x8xf32>
    %203 = vector.broadcast %202 : vector<4x1x8xf32> to vector<4x5x8xf32>
    %204 = arith.addf %200, %203 : vector<4x5x8xf32>
    %c1_149 = arith.constant 1 : index
    %c0_150 = arith.constant 0 : index
    %c0_151 = arith.constant 0 : index
    %c0_152 = arith.constant 0 : index
    %205 = vector.load %arg21[%c1_149, %c0_150, %c0_151, %c0_152] : memref<2x4x32x8xf32, #tpu.memory_space<vmem>>, vector<1x4x32x8xf32>
    %206 = vector.shape_cast %205 : vector<1x4x32x8xf32> to vector<4x32x8xf32>
    "tpu.trace_start"() <{level = 10 : i32, message = "hsd,hde->hse"}> : () -> ()
    %cst_153 = arith.constant dense<0.000000e+00> : vector<4x5x8xf32>
    %207 = tpu.matmul %197, %206, %cst_153 {dimension_numbers = #tpu.dot_dimension_numbers<[2], [1], [1], [2], [0, 0, 0, 1, 1, 2], [0], [0]>} : vector<4x5x32xf32>, vector<4x32x8xf32>, vector<4x5x8xf32> -> vector<4x5x8xf32>
    "tpu.trace_stop"() : () -> ()
    %c1_154 = arith.constant 1 : index
    %c0_155 = arith.constant 0 : index
    %c0_156 = arith.constant 0 : index
    %c0_157 = arith.constant 0 : index
    %208 = vector.load %arg22[%c1_154, %c0_155, %c0_156, %c0_157] : memref<2x4x1x8xf32, #tpu.memory_space<vmem>>, vector<1x4x1x8xf32>
    %209 = vector.shape_cast %208 : vector<1x4x1x8xf32> to vector<4x1x8xf32>
    %210 = vector.broadcast %209 : vector<4x1x8xf32> to vector<4x5x8xf32>
    %211 = arith.addf %207, %210 : vector<4x5x8xf32>
    %c1_158 = arith.constant 1 : index
    %c0_159 = arith.constant 0 : index
    %c0_160 = arith.constant 0 : index
    %c0_161 = arith.constant 0 : index
    %212 = vector.load %arg23[%c1_158, %c0_159, %c0_160, %c0_161] : memref<2x4x32x8xf32, #tpu.memory_space<vmem>>, vector<1x4x32x8xf32>
    %213 = vector.shape_cast %212 : vector<1x4x32x8xf32> to vector<4x32x8xf32>
    "tpu.trace_start"() <{level = 10 : i32, message = "hsd,hde->hse"}> : () -> ()
    %cst_162 = arith.constant dense<0.000000e+00> : vector<4x5x8xf32>
    %214 = tpu.matmul %197, %213, %cst_162 {dimension_numbers = #tpu.dot_dimension_numbers<[2], [1], [1], [2], [0, 0, 0, 1, 1, 2], [0], [0]>} : vector<4x5x32xf32>, vector<4x32x8xf32>, vector<4x5x8xf32> -> vector<4x5x8xf32>
    "tpu.trace_stop"() : () -> ()
    %c1_163 = arith.constant 1 : index
    %c0_164 = arith.constant 0 : index
    %c0_165 = arith.constant 0 : index
    %c0_166 = arith.constant 0 : index
    %215 = vector.load %arg24[%c1_163, %c0_164, %c0_165, %c0_166] : memref<2x4x1x8xf32, #tpu.memory_space<vmem>>, vector<1x4x1x8xf32>
    %216 = vector.shape_cast %215 : vector<1x4x1x8xf32> to vector<4x1x8xf32>
    %217 = vector.broadcast %216 : vector<4x1x8xf32> to vector<4x5x8xf32>
    %218 = arith.addf %214, %217 : vector<4x5x8xf32>
    "tpu.trace_start"() <{level = 10 : i32, message = "hqe,hke->hqk"}> : () -> ()
    %cst_167 = arith.constant dense<0.000000e+00> : vector<4x5x5xf32>
    %219 = tpu.matmul %204, %211, %cst_167 {dimension_numbers = #tpu.dot_dimension_numbers<[2], [2], [1], [1], [0, 0, 0, 1, 1, 1], [0], [0]>} : vector<4x5x8xf32>, vector<4x5x8xf32>, vector<4x5x5xf32> -> vector<4x5x5xf32>
    "tpu.trace_stop"() : () -> ()
    %cst_168 = arith.constant dense<0xFF800000> : vector<4x5xf32>
    %220 = vector.multi_reduction <maximumf>, %219, %cst_168 [2] : vector<4x5x5xf32> to vector<4x5xf32>
    %221 = vector.shape_cast %220 : vector<4x5xf32> to vector<4x5x1xf32>
    %222 = vector.broadcast %221 : vector<4x5x1xf32> to vector<4x5x5xf32>
    %223 = arith.subf %219, %222 : vector<4x5x5xf32>
    %224 = math.exp %223 : vector<4x5x5xf32>
    %cst_169 = arith.constant dense<0.000000e+00> : vector<4x5xf32>
    %225 = vector.multi_reduction <add>, %224, %cst_169 [2] : vector<4x5x5xf32> to vector<4x5xf32>
    %226 = vector.shape_cast %225 : vector<4x5xf32> to vector<4x5x1xf32>
    %227 = vector.broadcast %226 : vector<4x5x1xf32> to vector<4x5x5xf32>
    %228 = arith.divf %224, %227 : vector<4x5x5xf32>
    "tpu.trace_start"() <{level = 10 : i32, message = "hqk,hke->hqe"}> : () -> ()
    %cst_170 = arith.constant dense<0.000000e+00> : vector<4x5x8xf32>
    %229 = tpu.matmul %228, %218, %cst_170 {dimension_numbers = #tpu.dot_dimension_numbers<[2], [1], [1], [2], [0, 0, 0, 1, 1, 2], [0], [0]>} : vector<4x5x5xf32>, vector<4x5x8xf32>, vector<4x5x8xf32> -> vector<4x5x8xf32>
    "tpu.trace_stop"() : () -> ()
    %c1_171 = arith.constant 1 : index
    %c0_172 = arith.constant 0 : index
    %c0_173 = arith.constant 0 : index
    %c0_174 = arith.constant 0 : index
    %230 = vector.load %arg25[%c1_171, %c0_172, %c0_173, %c0_174] : memref<2x4x8x32xf32, #tpu.memory_space<vmem>>, vector<1x4x8x32xf32>
    %231 = vector.shape_cast %230 : vector<1x4x8x32xf32> to vector<4x8x32xf32>
    "tpu.trace_start"() <{level = 10 : i32, message = "hse,hed->hsd"}> : () -> ()
    %cst_175 = arith.constant dense<0.000000e+00> : vector<4x5x32xf32>
    %232 = tpu.matmul %229, %231, %cst_175 {dimension_numbers = #tpu.dot_dimension_numbers<[2], [1], [1], [2], [0, 0, 0, 1, 1, 2], [0], [0]>} : vector<4x5x8xf32>, vector<4x8x32xf32>, vector<4x5x32xf32> -> vector<4x5x32xf32>
    "tpu.trace_stop"() : () -> ()
    %cst_176 = arith.constant dense<0.000000e+00> : vector<5x32xf32>
    %233 = vector.multi_reduction <add>, %232, %cst_176 [0] : vector<4x5x32xf32> to vector<5x32xf32>
    %c1_177 = arith.constant 1 : index
    %c0_178 = arith.constant 0 : index
    %c0_179 = arith.constant 0 : index
    %234 = vector.load %arg26[%c1_177, %c0_178, %c0_179] : memref<2x1x32xf32, #tpu.memory_space<vmem>>, vector<1x1x32xf32>
    %235 = vector.shape_cast %234 : vector<1x1x32xf32> to vector<1x32xf32>
    %236 = vector.broadcast %235 : vector<1x32xf32> to vector<5x32xf32>
    %237 = arith.addf %233, %236 : vector<5x32xf32>
    %238 = arith.addf %194, %237 : vector<5x32xf32>
    %c1_180 = arith.constant 1 : index
    %c0_181 = arith.constant 0 : index
    %c0_182 = arith.constant 0 : index
    %239 = vector.load %arg27[%c1_180, %c0_181, %c0_182] : memref<2x1x32xf32, #tpu.memory_space<vmem>>, vector<1x1x32xf32>
    %240 = vector.shape_cast %239 : vector<1x1x32xf32> to vector<1x32xf32>
    %c1_183 = arith.constant 1 : index
    %c0_184 = arith.constant 0 : index
    %c0_185 = arith.constant 0 : index
    %241 = vector.load %arg28[%c1_183, %c0_184, %c0_185] : memref<2x1x32xf32, #tpu.memory_space<vmem>>, vector<1x1x32xf32>
    %242 = vector.shape_cast %241 : vector<1x1x32xf32> to vector<1x32xf32>
    %cst_186 = arith.constant dense<0.000000e+00> : vector<5xf32>
    %243 = vector.multi_reduction <add>, %238, %cst_186 [1] : vector<5x32xf32> to vector<5xf32>
    %244 = vector.shape_cast %243 : vector<5xf32> to vector<5x1xf32>
    %cst_187 = arith.constant 3.200000e+01 : f32
    %245 = vector.broadcast %cst_187 : f32 to vector<5x1xf32>
    %246 = arith.divf %244, %245 : vector<5x1xf32>
    %247 = vector.broadcast %246 : vector<5x1xf32> to vector<5x32xf32>
    %248 = arith.subf %238, %247 : vector<5x32xf32>
    %249 = arith.mulf %248, %248 : vector<5x32xf32>
    %cst_188 = arith.constant dense<0.000000e+00> : vector<5xf32>
    %250 = vector.multi_reduction <add>, %249, %cst_188 [1] : vector<5x32xf32> to vector<5xf32>
    %251 = vector.shape_cast %250 : vector<5xf32> to vector<5x1xf32>
    %cst_189 = arith.constant 3.200000e+01 : f32
    %252 = vector.broadcast %cst_189 : f32 to vector<5x1xf32>
    %253 = arith.divf %251, %252 : vector<5x1xf32>
    %254 = vector.broadcast %246 : vector<5x1xf32> to vector<5x32xf32>
    %255 = arith.subf %238, %254 : vector<5x32xf32>
    %cst_190 = arith.constant 9.99999974E-6 : f32
    %256 = vector.broadcast %cst_190 : f32 to vector<5x1xf32>
    %257 = arith.addf %253, %256 : vector<5x1xf32>
    %258 = math.rsqrt %257 : vector<5x1xf32>
    %259 = vector.broadcast %258 : vector<5x1xf32> to vector<5x32xf32>
    %260 = arith.mulf %255, %259 : vector<5x32xf32>
    %261 = vector.broadcast %240 : vector<1x32xf32> to vector<5x32xf32>
    %262 = arith.mulf %260, %261 : vector<5x32xf32>
    %263 = vector.broadcast %242 : vector<1x32xf32> to vector<5x32xf32>
    %264 = arith.addf %262, %263 : vector<5x32xf32>
    %c1_191 = arith.constant 1 : index
    %c0_192 = arith.constant 0 : index
    %c0_193 = arith.constant 0 : index
    %265 = vector.load %arg29[%c1_191, %c0_192, %c0_193] : memref<2x32x64xf32, #tpu.memory_space<vmem>>, vector<1x32x64xf32>
    %266 = vector.shape_cast %265 : vector<1x32x64xf32> to vector<32x64xf32>
    %cst_194 = arith.constant dense<0.000000e+00> : vector<5x64xf32>
    %267 = tpu.matmul %264, %266, %cst_194 {dimension_numbers = #tpu.dot_dimension_numbers<[1], [0], [0], [1], [0, 0, 1, 1], [], []>} : vector<5x32xf32>, vector<32x64xf32>, vector<5x64xf32> -> vector<5x64xf32>
    %c1_195 = arith.constant 1 : index
    %c0_196 = arith.constant 0 : index
    %c0_197 = arith.constant 0 : index
    %268 = vector.load %arg30[%c1_195, %c0_196, %c0_197] : memref<2x1x64xf32, #tpu.memory_space<vmem>>, vector<1x1x64xf32>
    %269 = vector.shape_cast %268 : vector<1x1x64xf32> to vector<1x64xf32>
    %270 = vector.broadcast %269 : vector<1x64xf32> to vector<5x64xf32>
    %271 = arith.addf %267, %270 : vector<5x64xf32>
    %cst_198 = arith.constant 0.000000e+00 : f32
    %272 = vector.broadcast %cst_198 : f32 to vector<5x64xf32>
    %273 = arith.maximumf %271, %272 : vector<5x64xf32>
    %c1_199 = arith.constant 1 : index
    %c0_200 = arith.constant 0 : index
    %c0_201 = arith.constant 0 : index
    %274 = vector.load %arg31[%c1_199, %c0_200, %c0_201] : memref<2x64x32xf32, #tpu.memory_space<vmem>>, vector<1x64x32xf32>
    %275 = vector.shape_cast %274 : vector<1x64x32xf32> to vector<64x32xf32>
    %cst_202 = arith.constant dense<0.000000e+00> : vector<5x32xf32>
    %276 = tpu.matmul %273, %275, %cst_202 {dimension_numbers = #tpu.dot_dimension_numbers<[1], [0], [0], [1], [0, 0, 1, 1], [], []>} : vector<5x64xf32>, vector<64x32xf32>, vector<5x32xf32> -> vector<5x32xf32>
    %c1_203 = arith.constant 1 : index
    %c0_204 = arith.constant 0 : index
    %c0_205 = arith.constant 0 : index
    %277 = vector.load %arg32[%c1_203, %c0_204, %c0_205] : memref<2x1x32xf32, #tpu.memory_space<vmem>>, vector<1x1x32xf32>
    %278 = vector.shape_cast %277 : vector<1x1x32xf32> to vector<1x32xf32>
    %279 = vector.broadcast %278 : vector<1x32xf32> to vector<5x32xf32>
    %280 = arith.addf %276, %279 : vector<5x32xf32>
    %281 = arith.addf %264, %280 : vector<5x32xf32>
    %c1_206 = arith.constant 1 : index
    %c0_207 = arith.constant 0 : index
    %c0_208 = arith.constant 0 : index
    %282 = vector.load %arg33[%c1_206, %c0_207, %c0_208] : memref<2x1x32xf32, #tpu.memory_space<vmem>>, vector<1x1x32xf32>
    %283 = vector.shape_cast %282 : vector<1x1x32xf32> to vector<1x32xf32>
    %c1_209 = arith.constant 1 : index
    %c0_210 = arith.constant 0 : index
    %c0_211 = arith.constant 0 : index
    %284 = vector.load %arg34[%c1_209, %c0_210, %c0_211] : memref<2x1x32xf32, #tpu.memory_space<vmem>>, vector<1x1x32xf32>
    %285 = vector.shape_cast %284 : vector<1x1x32xf32> to vector<1x32xf32>
    %cst_212 = arith.constant dense<0.000000e+00> : vector<5xf32>
    %286 = vector.multi_reduction <add>, %281, %cst_212 [1] : vector<5x32xf32> to vector<5xf32>
    %287 = vector.shape_cast %286 : vector<5xf32> to vector<5x1xf32>
    %cst_213 = arith.constant 3.200000e+01 : f32
    %288 = vector.broadcast %cst_213 : f32 to vector<5x1xf32>
    %289 = arith.divf %287, %288 : vector<5x1xf32>
    %290 = vector.broadcast %289 : vector<5x1xf32> to vector<5x32xf32>
    %291 = arith.subf %281, %290 : vector<5x32xf32>
    %292 = arith.mulf %291, %291 : vector<5x32xf32>
    %cst_214 = arith.constant dense<0.000000e+00> : vector<5xf32>
    %293 = vector.multi_reduction <add>, %292, %cst_214 [1] : vector<5x32xf32> to vector<5xf32>
    %294 = vector.shape_cast %293 : vector<5xf32> to vector<5x1xf32>
    %cst_215 = arith.constant 3.200000e+01 : f32
    %295 = vector.broadcast %cst_215 : f32 to vector<5x1xf32>
    %296 = arith.divf %294, %295 : vector<5x1xf32>
    %297 = vector.broadcast %289 : vector<5x1xf32> to vector<5x32xf32>
    %298 = arith.subf %281, %297 : vector<5x32xf32>
    %cst_216 = arith.constant 9.99999974E-6 : f32
    %299 = vector.broadcast %cst_216 : f32 to vector<5x1xf32>
    %300 = arith.addf %296, %299 : vector<5x1xf32>
    %301 = math.rsqrt %300 : vector<5x1xf32>
    %302 = vector.broadcast %301 : vector<5x1xf32> to vector<5x32xf32>
    %303 = arith.mulf %298, %302 : vector<5x32xf32>
    %304 = vector.broadcast %283 : vector<1x32xf32> to vector<5x32xf32>
    %305 = arith.mulf %303, %304 : vector<5x32xf32>
    %306 = vector.broadcast %285 : vector<1x32xf32> to vector<5x32xf32>
    %307 = arith.addf %305, %306 : vector<5x32xf32>
    %308 = vector.extract_strided_slice %307 {offsets = [0, 0], sizes = [1, 32], strides = [1, 1]} : vector<5x32xf32> to vector<1x32xf32>
    %c0_217 = arith.constant 0 : index
    %c0_218 = arith.constant 0 : index
    %309 = vector.load %arg35[%c0_217, %c0_218] : memref<32x32xf32, #tpu.memory_space<vmem>>, vector<32x32xf32>
    %cst_219 = arith.constant dense<0.000000e+00> : vector<1x32xf32>
    %310 = tpu.matmul %308, %309, %cst_219 {dimension_numbers = #tpu.dot_dimension_numbers<[1], [0], [0], [1], [0, 0, 1, 1], [], []>} : vector<1x32xf32>, vector<32x32xf32>, vector<1x32xf32> -> vector<1x32xf32>
    %c0_220 = arith.constant 0 : index
    %c0_221 = arith.constant 0 : index
    %311 = vector.load %arg36[%c0_220, %c0_221] : memref<1x32xf32, #tpu.memory_space<vmem>>, vector<1x32xf32>
    %312 = arith.addf %310, %311 : vector<1x32xf32>
    %cst_222 = arith.constant 0.000000e+00 : f32
    %313 = vector.broadcast %cst_222 : f32 to vector<1x32xf32>
    %314 = arith.maximumf %312, %313 : vector<1x32xf32>
    %c0_223 = arith.constant 0 : index
    %c0_224 = arith.constant 0 : index
    %315 = vector.load %arg37[%c0_223, %c0_224] : memref<32x32xf32, #tpu.memory_space<vmem>>, vector<32x32xf32>
    %cst_225 = arith.constant dense<0.000000e+00> : vector<1x32xf32>
    %316 = tpu.matmul %314, %315, %cst_225 {dimension_numbers = #tpu.dot_dimension_numbers<[1], [0], [0], [1], [0, 0, 1, 1], [], []>} : vector<1x32xf32>, vector<32x32xf32>, vector<1x32xf32> -> vector<1x32xf32>
    %c0_226 = arith.constant 0 : index
    %c0_227 = arith.constant 0 : index
    %317 = vector.load %arg38[%c0_226, %c0_227] : memref<1x32xf32, #tpu.memory_space<vmem>>, vector<1x32xf32>
    %318 = arith.addf %316, %317 : vector<1x32xf32>
    %c0_228 = arith.constant 0 : index
    %c0_229 = arith.constant 0 : index
    %c0_230 = arith.constant 0 : index
    %319 = vector.load %arg39[%c0_228, %c0_229, %c0_230] : memref<1x1x32xf32, #tpu.memory_space<vmem>>, vector<1x1x32xf32>
    %320 = vector.shape_cast %319 : vector<1x1x32xf32> to vector<1x32xf32>
    %321 = vector.shape_cast %318 : vector<1x32xf32> to vector<1x1x32xf32>
    tpu.vector_store %arg39[%c0_228, %c0_229, %c0_230], %321 {strides = array<i32>} : memref<1x1x32xf32, #tpu.memory_space<vmem>>, vector<1x1x32xf32>,
    return
  }
  func.func @transform_0(%arg0: i32) -> (i32, i32, i32) {
    %c0_i32 = arith.constant 0 : i32
    %c0_i32_0 = arith.constant 0 : i32
    %c0_i32_1 = arith.constant 0 : i32
    return %arg0, %c0_i32, %c0_i32_0 : i32, i32, i32
  }
  func.func @transform_1(%arg0: i32) -> (i32, i32, i32) {
    %c0_i32 = arith.constant 0 : i32
    %c0_i32_0 = arith.constant 0 : i32
    %c0_i32_1 = arith.constant 0 : i32
    return %arg0, %c0_i32, %c0_i32_0 : i32, i32, i32
  }
  func.func @transform_2(%arg0: i32) -> (i32, i32, i32) {
    %c0_i32 = arith.constant 0 : i32
    %c0_i32_0 = arith.constant 0 : i32
    %c0_i32_1 = arith.constant 0 : i32
    return %arg0, %c0_i32, %c0_i32_0 : i32, i32, i32
  }
  func.func @transform_3(%arg0: i32) -> (i32, i32) {
    %c0_i32 = arith.constant 0 : i32
    %c0_i32_0 = arith.constant 0 : i32
    %c0_i32_1 = arith.constant 0 : i32
    return %c0_i32, %c0_i32_0 : i32, i32
  }
  func.func @transform_4(%arg0: i32) -> (i32, i32) {
    %c0_i32 = arith.constant 0 : i32
    %c0_i32_0 = arith.constant 0 : i32
    %c0_i32_1 = arith.constant 0 : i32
    return %c0_i32, %c0_i32_0 : i32, i32
  }
  func.func @transform_5(%arg0: i32) -> (i32, i32) {
    %c0_i32 = arith.constant 0 : i32
    %c0_i32_0 = arith.constant 0 : i32
    %c0_i32_1 = arith.constant 0 : i32
    return %c0_i32, %c0_i32_0 : i32, i32
  }
  func.func @transform_6(%arg0: i32) -> (i32, i32) {
    %c0_i32 = arith.constant 0 : i32
    %c0_i32_0 = arith.constant 0 : i32
    %c0_i32_1 = arith.constant 0 : i32
    return %c0_i32, %c0_i32_0 : i32, i32
  }
  func.func @transform_7(%arg0: i32) -> (i32, i32) {
    %c0_i32 = arith.constant 0 : i32
    %c0_i32_0 = arith.constant 0 : i32
    %c0_i32_1 = arith.constant 0 : i32
    return %c0_i32, %c0_i32_0 : i32, i32
  }
  func.func @transform_8(%arg0: i32) -> (i32, i32) {
    %c0_i32 = arith.constant 0 : i32
    %c0_i32_0 = arith.constant 0 : i32
    %c0_i32_1 = arith.constant 0 : i32
    return %c0_i32, %c0_i32_0 : i32, i32
  }
  func.func @transform_9(%arg0: i32) -> (i32, i32) {
    %c0_i32 = arith.constant 0 : i32
    %c0_i32_0 = arith.constant 0 : i32
    %c0_i32_1 = arith.constant 0 : i32
    return %c0_i32, %c0_i32_0 : i32, i32
  }
  func.func @transform_10(%arg0: i32) -> (i32, i32) {
    %c0_i32 = arith.constant 0 : i32
    %c0_i32_0 = arith.constant 0 : i32
    %c0_i32_1 = arith.constant 0 : i32
    return %c0_i32, %c0_i32_0 : i32, i32
  }
  func.func @transform_11(%arg0: i32) -> (i32, i32) {
    %c0_i32 = arith.constant 0 : i32
    %c0_i32_0 = arith.constant 0 : i32
    %c0_i32_1 = arith.constant 0 : i32
    return %c0_i32, %c0_i32_0 : i32, i32
  }
  func.func @transform_12(%arg0: i32) -> (i32, i32) {
    %c0_i32 = arith.constant 0 : i32
    %c0_i32_0 = arith.constant 0 : i32
    %c0_i32_1 = arith.constant 0 : i32
    return %c0_i32, %c0_i32_0 : i32, i32
  }
  func.func @transform_13(%arg0: i32) -> (i32, i32) {
    %c0_i32 = arith.constant 0 : i32
    %c0_i32_0 = arith.constant 0 : i32
    %c0_i32_1 = arith.constant 0 : i32
    return %c0_i32, %c0_i32_0 : i32, i32
  }
  func.func @transform_14(%arg0: i32) -> (i32, i32) {
    %c0_i32 = arith.constant 0 : i32
    %c0_i32_0 = arith.constant 0 : i32
    %c0_i32_1 = arith.constant 0 : i32
    return %c0_i32, %c0_i32_0 : i32, i32
  }
  func.func @transform_15(%arg0: i32) -> (i32, i32) {
    %c0_i32 = arith.constant 0 : i32
    %c0_i32_0 = arith.constant 0 : i32
    %c0_i32_1 = arith.constant 0 : i32
    return %c0_i32, %c0_i32_0 : i32, i32
  }
  func.func @transform_16(%arg0: i32) -> (i32, i32) {
    %c0_i32 = arith.constant 0 : i32
    %c0_i32_0 = arith.constant 0 : i32
    %c0_i32_1 = arith.constant 0 : i32
    return %c0_i32, %c0_i32_0 : i32, i32
  }
  func.func @transform_17(%arg0: i32) -> (i32, i32) {
    %c0_i32 = arith.constant 0 : i32
    %c0_i32_0 = arith.constant 0 : i32
    %c0_i32_1 = arith.constant 0 : i32
    return %c0_i32, %c0_i32_0 : i32, i32
  }
  func.func @transform_18(%arg0: i32) -> (i32, i32, i32, i32) {
    %c0_i32 = arith.constant 0 : i32
    %c0_i32_0 = arith.constant 0 : i32
    %c0_i32_1 = arith.constant 0 : i32
    %c0_i32_2 = arith.constant 0 : i32
    %c0_i32_3 = arith.constant 0 : i32
    return %c0_i32, %c0_i32_0, %c0_i32_1, %c0_i32_2 : i32, i32, i32, i32
  }
  func.func @transform_19(%arg0: i32) -> (i32, i32, i32, i32) {
    %c0_i32 = arith.constant 0 : i32
    %c0_i32_0 = arith.constant 0 : i32
    %c0_i32_1 = arith.constant 0 : i32
    %c0_i32_2 = arith.constant 0 : i32
    %c0_i32_3 = arith.constant 0 : i32
    return %c0_i32, %c0_i32_0, %c0_i32_1, %c0_i32_2 : i32, i32, i32, i32
  }
  func.func @transform_20(%arg0: i32) -> (i32, i32, i32, i32) {
    %c0_i32 = arith.constant 0 : i32
    %c0_i32_0 = arith.constant 0 : i32
    %c0_i32_1 = arith.constant 0 : i32
    %c0_i32_2 = arith.constant 0 : i32
    %c0_i32_3 = arith.constant 0 : i32
    return %c0_i32, %c0_i32_0, %c0_i32_1, %c0_i32_2 : i32, i32, i32, i32
  }
  func.func @transform_21(%arg0: i32) -> (i32, i32, i32, i32) {
    %c0_i32 = arith.constant 0 : i32
    %c0_i32_0 = arith.constant 0 : i32
    %c0_i32_1 = arith.constant 0 : i32
    %c0_i32_2 = arith.constant 0 : i32
    %c0_i32_3 = arith.constant 0 : i32
    return %c0_i32, %c0_i32_0, %c0_i32_1, %c0_i32_2 : i32, i32, i32, i32
  }
  func.func @transform_22(%arg0: i32) -> (i32, i32, i32, i32) {
    %c0_i32 = arith.constant 0 : i32
    %c0_i32_0 = arith.constant 0 : i32
    %c0_i32_1 = arith.constant 0 : i32
    %c0_i32_2 = arith.constant 0 : i32
    %c0_i32_3 = arith.constant 0 : i32
    return %c0_i32, %c0_i32_0, %c0_i32_1, %c0_i32_2 : i32, i32, i32, i32
  }
  func.func @transform_23(%arg0: i32) -> (i32, i32, i32, i32) {
    %c0_i32 = arith.constant 0 : i32
    %c0_i32_0 = arith.constant 0 : i32
    %c0_i32_1 = arith.constant 0 : i32
    %c0_i32_2 = arith.constant 0 : i32
    %c0_i32_3 = arith.constant 0 : i32
    return %c0_i32, %c0_i32_0, %c0_i32_1, %c0_i32_2 : i32, i32, i32, i32
  }
  func.func @transform_24(%arg0: i32) -> (i32, i32, i32, i32) {
    %c0_i32 = arith.constant 0 : i32
    %c0_i32_0 = arith.constant 0 : i32
    %c0_i32_1 = arith.constant 0 : i32
    %c0_i32_2 = arith.constant 0 : i32
    %c0_i32_3 = arith.constant 0 : i32
    return %c0_i32, %c0_i32_0, %c0_i32_1, %c0_i32_2 : i32, i32, i32, i32
  }
  func.func @transform_25(%arg0: i32) -> (i32, i32, i32) {
    %c0_i32 = arith.constant 0 : i32
    %c0_i32_0 = arith.constant 0 : i32
    %c0_i32_1 = arith.constant 0 : i32
    %c0_i32_2 = arith.constant 0 : i32
    return %c0_i32, %c0_i32_0, %c0_i32_1 : i32, i32, i32
  }
  func.func @transform_26(%arg0: i32) -> (i32, i32, i32) {
    %c0_i32 = arith.constant 0 : i32
    %c0_i32_0 = arith.constant 0 : i32
    %c0_i32_1 = arith.constant 0 : i32
    %c0_i32_2 = arith.constant 0 : i32
    return %c0_i32, %c0_i32_0, %c0_i32_1 : i32, i32, i32
  }
  func.func @transform_27(%arg0: i32) -> (i32, i32, i32) {
    %c0_i32 = arith.constant 0 : i32
    %c0_i32_0 = arith.constant 0 : i32
    %c0_i32_1 = arith.constant 0 : i32
    %c0_i32_2 = arith.constant 0 : i32
    return %c0_i32, %c0_i32_0, %c0_i32_1 : i32, i32, i32
  }
  func.func @transform_28(%arg0: i32) -> (i32, i32, i32) {
    %c0_i32 = arith.constant 0 : i32
    %c0_i32_0 = arith.constant 0 : i32
    %c0_i32_1 = arith.constant 0 : i32
    %c0_i32_2 = arith.constant 0 : i32
    return %c0_i32, %c0_i32_0, %c0_i32_1 : i32, i32, i32
  }
  func.func @transform_29(%arg0: i32) -> (i32, i32, i32) {
    %c0_i32 = arith.constant 0 : i32
    %c0_i32_0 = arith.constant 0 : i32
    %c0_i32_1 = arith.constant 0 : i32
    %c0_i32_2 = arith.constant 0 : i32
    return %c0_i32, %c0_i32_0, %c0_i32_1 : i32, i32, i32
  }
  func.func @transform_30(%arg0: i32) -> (i32, i32, i32) {
    %c0_i32 = arith.constant 0 : i32
    %c0_i32_0 = arith.constant 0 : i32
    %c0_i32_1 = arith.constant 0 : i32
    %c0_i32_2 = arith.constant 0 : i32
    return %c0_i32, %c0_i32_0, %c0_i32_1 : i32, i32, i32
  }
  func.func @transform_31(%arg0: i32) -> (i32, i32, i32) {
    %c0_i32 = arith.constant 0 : i32
    %c0_i32_0 = arith.constant 0 : i32
    %c0_i32_1 = arith.constant 0 : i32
    %c0_i32_2 = arith.constant 0 : i32
    return %c0_i32, %c0_i32_0, %c0_i32_1 : i32, i32, i32
  }
  func.func @transform_32(%arg0: i32) -> (i32, i32, i32) {
    %c0_i32 = arith.constant 0 : i32
    %c0_i32_0 = arith.constant 0 : i32
    %c0_i32_1 = arith.constant 0 : i32
    %c0_i32_2 = arith.constant 0 : i32
    return %c0_i32, %c0_i32_0, %c0_i32_1 : i32, i32, i32
  }
  func.func @transform_33(%arg0: i32) -> (i32, i32, i32) {
    %c0_i32 = arith.constant 0 : i32
    %c0_i32_0 = arith.constant 0 : i32
    %c0_i32_1 = arith.constant 0 : i32
    %c0_i32_2 = arith.constant 0 : i32
    return %c0_i32, %c0_i32_0, %c0_i32_1 : i32, i32, i32
  }
  func.func @transform_34(%arg0: i32) -> (i32, i32) {
    %c0_i32 = arith.constant 0 : i32
    %c0_i32_0 = arith.constant 0 : i32
    %c0_i32_1 = arith.constant 0 : i32
    return %c0_i32, %c0_i32_0 : i32, i32
  }
  func.func @transform_35(%arg0: i32) -> (i32, i32) {
    %c0_i32 = arith.constant 0 : i32
    %c0_i32_0 = arith.constant 0 : i32
    %c0_i32_1 = arith.constant 0 : i32
    return %c0_i32, %c0_i32_0 : i32, i32
  }
  func.func @transform_36(%arg0: i32) -> (i32, i32) {
    %c0_i32 = arith.constant 0 : i32
    %c0_i32_0 = arith.constant 0 : i32
    %c0_i32_1 = arith.constant 0 : i32
    return %c0_i32, %c0_i32_0 : i32, i32
  }
  func.func @transform_37(%arg0: i32) -> (i32, i32) {
    %c0_i32 = arith.constant 0 : i32
    %c0_i32_0 = arith.constant 0 : i32
    %c0_i32_1 = arith.constant 0 : i32
    return %c0_i32, %c0_i32_0 : i32, i32
  }
  func.func @transform_38(%arg0: i32) -> (i32, i32, i32) {
    %c0_i32 = arith.constant 0 : i32
    %c0_i32_0 = arith.constant 0 : i32
    %c0_i32_1 = arith.constant 0 : i32
    return %arg0, %c0_i32, %c0_i32_0 : i32, i32, i32
  }
  func.func @transform_39(%arg0: i32) -> (i32, i32, i32) {
    %c0_i32 = arith.constant 0 : i32
    %c0_i32_0 = arith.constant 0 : i32
    %c0_i32_1 = arith.constant 0 : i32
    return %arg0, %c0_i32, %c0_i32_0 : i32, i32, i32
  }
  func.func @transform_40(%arg0: i32) -> (i32, i32, i32) {
    %c0_i32 = arith.constant 0 : i32
    %c0_i32_0 = arith.constant 0 : i32
    %c0_i32_1 = arith.constant 0 : i32
    return %arg0, %c0_i32, %c0_i32_0 : i32, i32, i32
  }
}

</mosaic_0001>

<bundles_post_ra>
// kernel: outlier_model_forward.1
= control target key start
LH: loop header
LB: loop body
LE: loop exit
PB: predicated region body
PF: predicated region fallthrough
CT: control target
= control target key end

     0   :  { %s8699_s6 = smov 1   ;;  %s8700_s10 = smov 2   ;;  %s9741_s0 = inlined_call_operand.smem [shape: u32[41], index: -1, kind: input, shape index: {}] }
   0x1   :  { %s8754_s5 = sld [smem:[%s9741_s0]]   ;;  %s8701_s14 = smov 3  }
   0x2   :  { %s8759_s9 = sld [smem:[%s9741_s0 + %s8699_s6]]   ;;  %s8702_s18 = smov 4  }
   0x3   :  { %s8764_s13 = sld [smem:[%s9741_s0 + %s8700_s10]]   ;;  %s8703_s22 = smov 5  }
   0x4   :  { %s8769_s17 = sld [smem:[%s9741_s0 + %s8701_s14]]   ;;  %s8704_s26 = smov 6  }
   0x5   :  { %s8774_s21 = sld [smem:[%s9741_s0 + %s8702_s18]]   ;;  %s8705_s30 = smov 7  }
   0x6   :  { %s8779_s25 = sld [smem:[%s9741_s0 + %s8703_s22]]   ;;  %s8706_s4 = smov 8  }
   0x7   :  { %9782 = sst [smem:[#allocation9_spill]] %s8754_s5  ;;  %s8707_s10 = smov 9  }
   0x8   :  { %9783 = sst [smem:[#allocation10_spill]] %s8759_s9  ;;  %s8708_s15 = smov 10  }
   0x9   :  { %9784 = sst [smem:[#allocation11_spill]] %s8764_s13  ;;  %s8709_s20 = smov 11  }
   0xa   :  { %9785 = sst [smem:[#allocation12_spill]] %s8769_s17  ;;  %s8711_s1 = smov 13  }
   0xb   :  { %9786 = sst [smem:[#allocation13_spill]] %s8774_s21  ;;  %s8712_s7 = smov 14  }
   0xc   :  { %9787 = sst [smem:[#allocation14_spill]] %s8779_s25  ;;  %s8714_s22 = smov 16  }
   0xd   :  { %s8784_s29 = sld [smem:[%s9741_s0 + %s8704_s26]]   ;;  %s8710_s26 = smov 12  }
   0xe   :  { %s8789_s3 = sld [smem:[%s9741_s0 + %s8705_s30]]   ;;  %s8715_s28 = smov 17  }
   0xf   :  { %s8794_s8 = sld [smem:[%s9741_s0 + %s8706_s4]]  }
  0x10   :  { %s8799_s14 = sld [smem:[%s9741_s0 + %s8707_s10]]  }
  0x11   :  { %s8804_s19 = sld [smem:[%s9741_s0 + %s8708_s15]]   ;;  %s8713_s15 = smov 15  }
  0x12   :  { %s8809_s24 = sld [smem:[%s9741_s0 + %s8709_s20]]  }
  0x13   :  { %9788 = sst [smem:[#allocation15_spill]] %s8784_s29 }
  0x14   :  { %9789 = sst [smem:[#allocation16_spill]] %s8789_s3 }
  0x15   :  { %9790 = sst [smem:[#allocation17_spill]] %s8794_s8 }
  0x16   :  { %9791 = sst [smem:[#allocation18_spill]] %s8799_s14 }
  0x17   :  { %9792 = sst [smem:[#allocation19_spill]] %s8804_s19 }
  0x18   :  { %9793 = sst [smem:[#allocation20_spill]] %s8809_s24 }
  0x19   :  { %s8814_s30 = sld [smem:[%s9741_s0 + %s8710_s26]]  }
  0x1a   :  { %s8819_s6 = sld [smem:[%s9741_s0 + %s8711_s1]]  }
  0x1b   :  { %s8824_s12 = sld [smem:[%s9741_s0 + %s8712_s7]]   ;;  %s8716_s7 = smov 18  }
  0x1c   :  { %s8829_s20 = sld [smem:[%s9741_s0 + %s8713_s15]]   ;;  %s8717_s15 = smov 19  }
  0x1d   :  { %s8834_s27 = sld [smem:[%s9741_s0 + %s8714_s22]]   ;;  %s8718_s22 = smov 20  }
  0x1e   :  { %s8839_s4 = sld [smem:[%s9741_s0 + %s8715_s28]]   ;;  %s8719_s28 = smov 21  }
  0x1f   :  { %9794 = sst [smem:[#allocation21_spill]] %s8814_s30 }
  0x20   :  { %9795 = sst [smem:[#allocation22_spill]] %s8819_s6 }
  0x21   :  { %9796 = sst [smem:[#allocation23_spill]] %s8824_s12 }
  0x22   :  { %9797 = sst [smem:[#allocation24_spill]] %s8829_s20 }
  0x23   :  { %9798 = sst [smem:[#allocation25_spill]] %s8834_s27 }
  0x24   :  { %9799 = sst [smem:[#allocation26_spill]] %s8839_s4 }
  0x25   :  { %s8844_s12 = sld [smem:[%s9741_s0 + %s8716_s7]]   ;;  %s8720_s7 = smov 22  }
  0x26   :  { %s8849_s20 = sld [smem:[%s9741_s0 + %s8717_s15]]   ;;  %s8721_s15 = smov 23  }
  0x27   :  { %s8854_s27 = sld [smem:[%s9741_s0 + %s8718_s22]]   ;;  %s8722_s22 = smov 24  }
  0x28   :  { %s8859_s4 = sld [smem:[%s9741_s0 + %s8719_s28]]   ;;  %s8723_s28 = smov 25  }
  0x2b   :  { %9800 = sst [smem:[#allocation27_spill]] %s8844_s12 }
  0x2c   :  { %9801 = sst [smem:[#allocation28_spill]] %s8849_s20 }
  0x2d   :  { %9802 = sst [smem:[#allocation29_spill]] %s8854_s27 }
  0x2e   :  { %9803 = sst [smem:[#allocation30_spill]] %s8859_s4 }
  0x2f   :  { %s8864_s12 = sld [smem:[%s9741_s0 + %s8720_s7]]   ;;  %s8724_s7 = smov 26  }
  0x30   :  { %s8869_s20 = sld [smem:[%s9741_s0 + %s8721_s15]]   ;;  %s8725_s15 = smov 27  }
  0x31   :  { %s8874_s27 = sld [smem:[%s9741_s0 + %s8722_s22]]   ;;  %s8726_s22 = smov 28  }
  0x32   :  { %s8879_s4 = sld [smem:[%s9741_s0 + %s8723_s28]]   ;;  %s8727_s28 = smov 29  }
  0x35   :  { %9804 = sst [smem:[#allocation31_spill]] %s8864_s12 }
  0x36   :  { %9805 = sst [smem:[#allocation32_spill]] %s8869_s20 }
  0x37   :  { %9806 = sst [smem:[#allocation33_spill]] %s8874_s27 }
  0x38   :  { %9807 = sst [smem:[#allocation34_spill]] %s8879_s4 }
  0x39   :  { %s8884_s12 = sld [smem:[%s9741_s0 + %s8724_s7]]   ;;  %s8728_s7 = smov 30  }
  0x3a   :  { %s8889_s20 = sld [smem:[%s9741_s0 + %s8725_s15]]   ;;  %s8729_s15 = smov 31  }
  0x3b   :  { %s8894_s27 = sld [smem:[%s9741_s0 + %s8726_s22]]   ;;  %s8730_s22 = smov 32  }
  0x3c   :  { %s8899_s4 = sld [smem:[%s9741_s0 + %s8727_s28]]   ;;  %s8731_s28 = smov 33  }
  0x3f   :  { %9808 = sst [smem:[#allocation35_spill]] %s8884_s12 }
  0x40   :  { %9809 = sst [smem:[#allocation36_spill]] %s8889_s20 }
  0x41   :  { %9810 = sst [smem:[#allocation37_spill]] %s8894_s27 }
  0x42   :  { %9811 = sst [smem:[#allocation38_spill]] %s8899_s4 }
  0x43   :  { %s8904_s12 = sld [smem:[%s9741_s0 + %s8728_s7]]   ;;  %s8732_s7 = smov 34  }
  0x44   :  { %s8909_s20 = sld [smem:[%s9741_s0 + %s8729_s15]]   ;;  %s8733_s15 = smov 35  }
  0x45   :  { %s8914_s27 = sld [smem:[%s9741_s0 + %s8730_s22]]   ;;  %s8734_s22 = smov 36  }
  0x46   :  { %s8919_s4 = sld [smem:[%s9741_s0 + %s8731_s28]]   ;;  %s8735_s28 = smov 37  }
  0x49   :  { %9812 = sst [smem:[#allocation39_spill]] %s8904_s12 }
  0x4a   :  { %9813 = sst [smem:[#allocation40_spill]] %s8909_s20 }
  0x4b   :  { %9814 = sst [smem:[#allocation41_spill]] %s8914_s27 }
  0x4c   :  { %9815 = sst [smem:[#allocation42_spill]] %s8919_s4 }
  0x4d   :  { %s8924_s12 = sld [smem:[%s9741_s0 + %s8732_s7]]   ;;  %s8736_s7 = smov 38  }
  0x4e   :  { %s8929_s20 = sld [smem:[%s9741_s0 + %s8733_s15]]   ;;  %s8737_s15 = smov 39  }
  0x4f   :  { %s8934_s27 = sld [smem:[%s9741_s0 + %s8734_s22]]   ;;  %s8738_s22 = smov 40  }
  0x50   :  { %s8939_s4 = sld [smem:[%s9741_s0 + %s8735_s28]]  }
  0x53   :  { %9816 = sst [smem:[#allocation43_spill]] %s8924_s12 }
  0x54   :  { %9817 = sst [smem:[#allocation44_spill]] %s8929_s20 }
  0x55   :  { %9818 = sst [smem:[#allocation45_spill]] %s8934_s27 }
  0x56   :  { %s8944_s12 = sld [smem:[%s9741_s0 + %s8736_s7]]  }
  0x57   :  { %s8949_s20 = sld [smem:[%s9741_s0 + %s8737_s15]]  }
  0x58   :  { %s8954_s27 = sld [smem:[%s9741_s0 + %s8738_s22]]  }
  0x59   :  { %87 = vsyncpa [#allocation3], 0 }
  0x5a   :  { %89 = vsyncpa [#allocation3 + $0x1], 0 }
  0x5b   :  { %90 = vsyncpa [#allocation5], 0 }
  0x5c   :  { %92 = vsyncpa [#allocation5 + $0x1], 0  ;;  %s8956_s28 = smov 0   ;;  %s8958_s1 = smov 0  }
  0x5d   :  { %s8960_s2 = smov 0   ;;  %s8962_s7 = smov 0  }
  0x5e LB: > { %s9819_s25 = sld [smem:[#allocation14_spill]]  ;;  %s9820_s24 = sld [smem:[#allocation20_spill]]  ;;  %s8689_s1 = sphi %s8958_s1, %s9864_s1   ;;  %s8685_s28 = sphi %s8956_s28, %s9863_s28   ;;  %s8697_s7 = sphi %s8962_s7, %s9866_s7   ;;  %s8693_s2 = sphi %s8960_s2, %s9865_s2  }
  0x5f   : > { %s9821_s17 = sld [smem:[#allocation12_spill]]  ;;  %s9822_s14 = sld [smem:[#allocation18_spill]] }
  0x60   : > { %s9823_s6 = sld [smem:[#allocation22_spill]]  ;;  %s9824_s3 = sld [smem:[#allocation16_spill]] }
  0x61   : > { %s8977_s0 = sadd.s32 4294967295, %s8697_s7   ;;  %s9761_s10 = sadd.s32 4294967294, %s8697_s7  }
  0x62   : > { %s8981_s11 = sadd.s32 1, %s8697_s7   ;;  %s918_s15 = sadd.s32 1, %s8693_s2 }
  0x63   : > { %s915_s16 = ssub.s32 %s8697_s7, %s8981_s11  ;;  %p928_p0 = scmp.ne.s32.totalorder %s8693_s2, %s8689_s1 }
  0x64   : > { %p916_p1 = scmp.eq.s32.totalorder %s915_s16, 0  ;;  %p929_p2 = scmp.eq.s32.totalorder %s8977_s0, 1 }
  0x65   : > { %p934_p3 = scmp.ne.s32.totalorder %s8689_s1, %s8685_s28  ;;  %p935_p4 = scmp.eq.s32.totalorder %s9761_s10, 1 }
  0x66   : > { %s8994_s18 = scalar_select %p916_p1, %s8693_s2, %s918_s15  }
  0x67   : > { %p8996_p5 = por %p929_p2, %p928_p0  ;;  %p9000_p6 = por %p935_p4, %p934_p3 }
  0x68   : > { %9825 = sst [smem:[#allocation46_spill]] %s8994_s18  ;;  %p7146_p7 = scmp.ge.s32.totalorder %s8697_s7, 1 }
  0x69   : > { %s9827_s23 = scalar_select %p9000_p6, 1, 0 }
  0x6a   : > { %p1131_p8 = scmp.lt.s32.totalorder %s8697_s7, 3 }
  0x6c   : > { %p1132_p9 = pnand %p7146_p7, %p1131_p8 }
  0x6d   : > { %s9828_s5 = sld [smem:[#allocation9_spill]] (!%p1132_p9)  ;;  %s9829_s13 = sld [smem:[#allocation11_spill]] (!%p1132_p9)  ;;  %v1333_v0 = vld [vmem:[%s9821_s17] sm:$0xff] (!%p1132_p9)  ;;  %v8739_v1 = vmov (!%p1132_p9), 0.0   ;;  %vm8740_vm0 = vmmov (!%p1132_p9), 0   ;;  %v1334_v2 = vld [vmem:[%s9821_s17 + $0x8] sm:$0xff] (!%p1132_p9) }
  0x6e   : > { %1135 = sbr.rel (%p1132_p9) target bundleno = 8462 (0x210e), region = 172  ;;  %p1245_p10 = scmp.lt.s32.totalorder (!%p1132_p9), %s8977_s0, 1  ;;  %7625 = vmatprep.subr.mxu0 (!%p1132_p9), %v8739_v1  ;;  %7627 = vmatprep.mubr.msk.f32.mxu0 (!%p1132_p9), %vm8740_vm0, %v8739_v1  ;;  %v8741_v3 = vmov (!%p1132_p9), 0.0|0.0   ;;  %v8201_v4 = vpack.c.bf16 (!%p1132_p9), %v1334_v2, %v1333_v0  ;;  %vm1259_vm1 = vcmask (!%p1132_p9), 64512   ;;  %vm1342_vm2 = vcmask (!%p1132_p9), 130048   ;;  %v1487_v9 = vld [vmem:[%s9819_s25] sm:$0xff] (!%p1132_p9) }
  0x6f   : > { %8200 = vmatprep.subr.bf16.mxu1 (!%p1132_p9), %v8741_v3  ;;  %7634 = vmatprep.mubr.msk.f32.mxu1 (!%p1132_p9), %vm8740_vm0, %v8739_v1  ;;  %s9830_s21 = sld [smem:[#allocation13_spill]] (!%p1132_p9)  ;;  %v1488_v10 = vld [vmem:[%s9819_s25 + $0x8] sm:$0xff] (!%p1132_p9)  ;;  %v1489_v11 = vld [vmem:[%s9819_s25 + $0x10] sm:$0xff] (!%p1132_p9)  ;;  %v1490_v13 = vld [vmem:[%s9819_s25 + $0x18] sm:$0xff] (!%p1132_p9)  ;;  %s9831_s29 = sld [smem:[#allocation15_spill]] (!%p1132_p9)  ;;  %vm1498_vm3 = vcmask (!%p1132_p9), 261120  }
  0x70   : > { %8202 = vmatpush3.bf16.msra.mxu1 (!%p1132_p9), %v8201_v4  ;;  %v8204_v12 = vpack.c.bf16 (!%p1132_p9), %v1488_v10, %v1487_v9  ;;  %v8207_v14 = vpack.c.bf16 (!%p1132_p9), %v1490_v13, %v1489_v11  ;;  %v1573_v20 = vld [vmem:[%s9824_s3] sm:$0xff] (!%p1132_p9)  ;;  %v1574_v21 = vld [vmem:[%s9824_s3 + $0x8] sm:$0xff] (!%p1132_p9)  ;;  %s9832_s8 = sld [smem:[#allocation17_spill]] (!%p1132_p9)  ;;  %v1575_v25 = vld [vmem:[%s9824_s3 + $0x10] sm:$0xff] (!%p1132_p9)  ;;  %s9833_s9 = sld [smem:[#allocation10_spill]] (!%p1132_p9)  ;;  %vm1657_vm4 = vcmask (!%p1132_p9), 31744  }
  0x71   : > { %8203 = vmatprep.subr.bf16.mxu1 (!%p1132_p9), %v8741_v3  ;;  %v8210_v22 = vpack.c.bf16 (!%p1132_p9), %v1574_v21, %v1573_v20  ;;  %v1576_v26 = vld [vmem:[%s9824_s3 + $0x18] sm:$0xff] (!%p1132_p9)  ;;  %v1845_v49 = vld [vmem:[%s9822_s14] sm:$0xff] (!%p1132_p9)  ;;  %v1846_v50 = vld [vmem:[%s9822_s14 + $0x8] sm:$0xff] (!%p1132_p9)  ;;  %s9834_s19 = sld [smem:[#allocation19_spill]] (!%p1132_p9)  ;;  %vm1859_vm5 = vcmask (!%p1132_p9), 1041408   ;;  %vm1855_vm6 = vcmask (!%p1132_p9), 146432  }
  0x72   : > { %v8213_v27 = vpack.c.bf16 (!%p1132_p9), %v1576_v26, %v1575_v25  ;;  %v8216_v51 = vpack.c.bf16 (!%p1132_p9), %v1846_v50, %v1845_v49  ;;  %v1847_v53 = vld [vmem:[%s9822_s14 + $0x10] sm:$0x3] (!%p1132_p9)  ;;  %vm2289_vm7 = vcmask (!%p1132_p9), 257024   ;;  %v2004_v58 = vld [vmem:[%s9820_s24] sm:$0xff] (!%p1132_p9)  ;;  %v2005_v59 = vld [vmem:[%s9820_s24 + $0x8] sm:$0xff] (!%p1132_p9)  ;;  %s9835_s30 = sld [smem:[#allocation21_spill]] (!%p1132_p9) }
  0x73   : > { %v8219_v63 = vpack.c.bf16 (!%p1132_p9), %v2005_v59, %v2004_v58  ;;  %v2006_v0 = vld [vmem:[%s9820_s24 + $0x10] sm:$0xff] (!%p1132_p9)  ;;  %v2007_v2 = vld [vmem:[%s9820_s24 + $0x18] sm:$0xff] (!%p1132_p9)  ;;  %vm2312_vm8 = vcmask (!%p1132_p9), 523264   ;;  %vm2390_vm9 = vcmask (!%p1132_p9), 1040384   ;;  %vm3720_vm10 = vcmask (!%p1132_p9), 1044480   ;;  %s9847_s14 = sld [smem:[#allocation33_spill]] (!%p1132_p9) }
  0x74   : > { %v8222_v4 = vpack.c.bf16 (!%p1132_p9), %v2007_v2, %v2006_v0  ;;  %v2091_v10 = vld [vmem:[%s9823_s6 + $0x10] sm:$0xff] (!%p1132_p9)  ;;  %v2092_v11 = vld [vmem:[%s9823_s6 + $0x18] sm:$0xff] (!%p1132_p9)  ;;  %vm3671_vm11 = vcmask (!%p1132_p9), 36864   ;;  %vm3716_vm12 = vcmask (!%p1132_p9), 39936   ;;  %vm4318_vm13 = vcmask (!%p1132_p9), 258048   ;;  %s9849_s17 = sld [smem:[#allocation37_spill]] (!%p1132_p9) }
  0x75   : > { %s1246_s26 = scalar_select %p1245_p10, %s8977_s0, 1  ;;  %v7153_v15 = vld [vmem:[%s9830_s21] ss:$0 sm:$0xff] }
  0x76   : > { %v7156_v28 = vld [vmem:[%s9831_s29] ss:$0 sm:$0xff]  ;;  %s9851_s21 = sld [smem:[#allocation35_spill]]  ;;  %s9852_s24 = sld [smem:[#allocation36_spill]] }
  0x77   : > { %s9016_s15 = sshll.u32 %s1246_s26, 3  ;;  %v7158_v33 = vld [vmem:[%s9832_s8] ss:$0 sm:$0xff]  ;;  %s9079_s26 = sand.u32 1, %s8689_s1  }
  0x78   : > { %s1248_s16 = scalar_lea.vmem %s9828_s5, %s9016_s15  ;;  %s1256_s10 = scalar_lea.vmem %s9829_s13, %s9016_s15  ;;  %v7162_v56 = vld [vmem:[%s9834_s19] ss:$0 sm:$0xff] }
  0x79   : > { %v1258_v5 = vld [vmem:[%s1248_s16] sm:$0xff]  ;;  %s9839_s3 = sshll.u32 %s9079_s26, 2  ;;  %s9840_s8 = sld [smem:[#allocation25_spill]] }
  0x7a   : > { %v9023_v6 = vld [vmem:[%s1256_s10] sm:$0xff]  ;;  %7626 = vmatpush3.msra.mxu0 %v1258_v5  ;;  %s1252_s10 = scalar_lea.vmem %s9833_s9, %s9016_s15  ;;  %s9762_s15 = sshll.u32 %s9079_s26, 2 }
  0x7b   : > { %7628 = vmatmul.mubr.msk.f32.vlgmr.msra.gmra.mrb[0].mxu0 %vm1259_vm1, %v9023_v6  ;;  %7637 = vmatprep.subr.mxu0 %v8739_v1  ;;  %v1774_v38 = vld [vmem:[%s1252_s10] sm:$0xff]  ;;  %s9086_s16 = scalar_lea.vmem [#allocation4], %s9762_s15  ;;  %s9836_s10 = sld [smem:[#allocation23_spill]] }
  0x7c   : > { %7639 = vmatprep.mubr.msk.f32.mxu0 %vm8740_vm0, %v8739_v1  ;;  %v2089_v5 = vld [vmem:[%s9823_s6] sm:$0xff]  ;;  %s9837_s15 = sld [smem:[#allocation24_spill]]  ;;  %s9140_s5 = scalar_lea.vmem [#allocation6], %s9839_s3 }
  0x7d   : > { %v7166_v13 = vld [vmem:[%s9835_s30] ss:$0 sm:$0xff]  ;;  %s9841_s3 = sld [smem:[#allocation29_spill]]  ;;  %s9845_s9 = sld [smem:[#allocation28_spill]] }
  0x7e   : > { %s9846_s13 = sld [smem:[#allocation32_spill]]  ;;  %s9850_s19 = sld [smem:[#allocation39_spill]] }
  0x7f   : > { %s9853_s25 = sld [smem:[#allocation38_spill]]  ;;  %s9854_s29 = sld [smem:[#allocation40_spill]] }
  0x80   : > { %s9855_s30 = sld [smem:[#allocation41_spill]]  ;;  %s9856_s18 = sld [smem:[#allocation42_spill]] }
  0x83   : > { %v2719_v0 = vld [vmem:[%s9841_s3] sm:$0xff]  ;;  %v2720_v2 = vld [vmem:[%s9841_s3 + $0x8] sm:$0xff] }
 0x14e   : > { %v1329_v7 = vpop.f32.mrb[0].mxu0 }
 0x14f   : > { %v7629_v8 = vpop.f32.mrb[1].mxu0  ;;  %7635 = vmatmul.mubr.msk.f32.vlgmr.msra.gmra.mrb[0].mxu1 %vm1342_vm2, %v1329_v7  ;;  %v2090_v7 = vld [vmem:[%s9823_s6 + $0x8] sm:$0xff]  ;;  %s8742_s6 = smov 32  }
 0x150   : > { %7650 = vmatprep.mubr.msk.f32.mxu1 %vm8740_vm0, %v8739_v1  ;;  %8205 = vmatpush3.bf16.msra.mxu1 %v8204_v12  ;;  %v8225_v8 = vpack.c.bf16 %v2090_v7, %v2089_v5  ;;  %v8228_v12 = vpack.c.bf16 %v2092_v11, %v2091_v10 }
 0x151   : > { %8206 = vmatprep.subr.bf16.mxu1 %v8741_v3 }
 0x154   : > { %8208 = vmatpush3.bf16.msra.mxu1 %v8207_v14 }
 0x155   : > { %7664 = vmatprep.subr.mxu1 %v8739_v1 }
 0x222   : > { %v1412_v16 = vpop.f32.mrb[0].mxu1 }
 0x223   : > { %v1413_v17 = vadd.f32 %v7153_v15, %v1412_v16  ;;  %v7636_v18 = vpop.f32.mrb[1].mxu1 }
 0x224   : > { %v7168_v18 = vld [vmem:[%s9836_s10] ss:$0 sm:$0xff]  ;;  %s9838_s10 = sld [smem:[#allocation27_spill]] }
 0x225   : > { %v1416_v19 = vmax.f32 %v1413_v17, 0.0 }
 0x227   : > { %7638 = vmatpush3.msra.mxu0 %v1416_v19 }
 0x228   : > { %7640 = vmatmul.mubr.msk.f32.vlgmr.msra.gmra.mrb[2].mxu0 %vm1259_vm1, %v9023_v6  ;;  %8209 = vmatprep.subr.bf16.mxu0 %v8741_v3 }
 0x229   : > { %7661 = vmatprep.mubr.msk.f32.mxu0 %vm8740_vm0, %v8739_v1  ;;  %8211 = vmatpush3.bf16.msra.mxu0 %v8210_v22 }
 0x22a   : > { %8212 = vmatprep.subr.bf16.mxu0 %v8741_v3  ;;  %v2400_v49 = vld [vmem:[%s9838_s10 + $0x40] sm:$0xff]  ;;  %v2401_v50 = vld [vmem:[%s9838_s10 + $0x48] sm:$0xff]  ;;  %v2403_v59 = vld [vmem:[%s9838_s10 + $0x58] sm:$0xff] }
 0x22b   : > { %v2398_v10 = vld [vmem:[%s9838_s10 + $0x30] sm:$0xff]  ;;  %v2399_v11 = vld [vmem:[%s9838_s10 + $0x38] sm:$0xff] }
 0x22d   : > { %8214 = vmatpush3.bf16.msra.mxu0 %v8213_v27 }
 0x22e   : > { %7669 = vmatprep.subr.mxu0 %v8739_v1 }
 0x2fb   : > { %v1483_v23 = vpop.f32.mrb[2].mxu0 }
 0x2fc   : > { %v7641_v24 = vpop.f32.mrb[3].mxu0  ;;  %7651 = vmatmul.mubr.msk.f32.vlgmr.msra.gmra.mrb[2].mxu1 %vm1498_vm3, %v1483_v23 }
 0x2fd   : > { %7666 = vmatprep.mubr.msk.f32.mxu1 %vm8740_vm0, %v8739_v1 }
 0x3cf   : > { %v1568_v29 = vpop.f32.mrb[2].mxu1 }
 0x3d0   : > { %v1569_v30 = vadd.f32 %v7156_v28, %v1568_v29  ;;  %v7652_v31 = vpop.f32.mrb[3].mxu1 }
 0x3d2   : > { %v1572_v32 = vmax.f32 %v1569_v30, 0.0 }
 0x3d4   : > { %7662 = vmatmul.mubr.msk.f32.vlgmr.msra.gmra.mrb[4].mxu0 %vm1498_vm3, %v1572_v32  ;;  %7665 = vmatpush3.msra.mxu1 %v1572_v32  ;;  %v2297_v32 = vld [vmem:[%s9837_s15] sm:$0xff] }
 0x3d5   : > { %7671 = vmatprep.mubr.msk.f32.mxu0 %vm8740_vm0, %v8739_v1  ;;  %8215 = vmatprep.subr.bf16.mxu1 %v8741_v3 }
 0x3d6   : > { %7670 = vmatpush3.msra.mxu0 %v1774_v38  ;;  %v2301_v38 = vld [vmem:[%s9837_s15 + $0x20] sm:$0xff] }
 0x3d7   : > { %7683 = vmatprep.subr.mxu0 %v8739_v1 }
 0x3d8   : > { %7672 = vmatmul.mubr.msk.f32.vlgmr.msra.gmra.mrb[6].mxu0 %vm1259_vm1, %v9023_v6 }
 0x3d9   : > { %7685 = vmatprep.mubr.msk.f32.mxu0 %vm8740_vm0, %v8739_v1 }
 0x4a7   : > { %v1653_v34 = vpop.f32.mrb[4].mxu0 }
 0x4a8   : > { %v1654_v35 = vadd.f32 %v7158_v33, %v1653_v34  ;;  %v7663_v36 = vpop.f32.mrb[5].mxu0  ;;  %v2298_v33 = vld [vmem:[%s9837_s15 + $0x8] sm:$0xff]  ;;  %v2299_v34 = vld [vmem:[%s9837_s15 + $0x10] sm:$0xff] }
 0x4a9   : > { %v2300_v36 = vld [vmem:[%s9837_s15 + $0x18] sm:$0xff] }
 0x4aa   : > { %v1658_v37 = vsel %vm1657_vm4, %v1654_v35, -inf }
 0x4ab   : > { %1659 = vmax.xlane.f32.xlu0 %v1658_v37  ;;  %v1841_v47 = vpop.f32.mrb[6].mxu0  ;;  %v8234_v37 = vpack.c.bf16 %v2300_v36, %v2299_v34  ;;  %v2726_v36 = vld [vmem:[%s9841_s3 + $0x38] sm:$0xff] }
 0x4ac   : > { %v7673_v48 = vpop.f32.mrb[7].mxu0 }
 0x538   : > { %v1660_v39 = vpop.xlane.xlu0 %1659 }
 0x539   : > { %v1661_v40 = vsub.f32 %v1654_v35, %v1660_v39  ;;  %v8231_v35 = vpack.c.bf16 %v2298_v33, %v2297_v32  ;;  %v2302_v39 = vld [vmem:[%s9837_s15 + $0x28] sm:$0xff] }
 0x53b   : > { %v1662_v41 = vmul.f32 1.442695, %v1661_v40  ;;  %v8237_v40 = vpack.c.bf16 %v2302_v39, %v2301_v38 }
 0x53d   : > { %8527 = vpow2.f32 %v1662_v41  ;;  %v2303_v41 = vld [vmem:[%s9837_s15 + $0x30] sm:$0xff] }
 0x547   : > { %v8528_v42 = vpop.eup %8527 }
 0x548   : > { %v1664_v43 = vsel %vm1657_vm4, %v8528_v42, 0.0 }
 0x549   : > { %1665 = vadd.xlane.f32.xlu0 %v1664_v43 }
 0x5d6   : > { %v1666_v44 = vpop.xlane.xlu0 %1665 }
 0x5d7   : > { %8529 = vrcp.f32 %v1666_v44  ;;  %v2392_v44 = vld [vmem:[%s9838_s10] sm:$0xff] }
 0x5e1   : > { %v8530_v45 = vpop.eup %8529 }
 0x5e2   : > { %v1668_v46 = vmul.f32 %v8530_v45, %v8528_v42  ;;  %v2304_v42 = vld [vmem:[%s9837_s15 + $0x38] sm:$0xff]  ;;  %v2393_v45 = vld [vmem:[%s9838_s10 + $0x8] sm:$0xff]  ;;  %s9848_s15 = sld [smem:[#allocation34_spill]] }
 0x5e3   : > { %v8240_v43 = vpack.c.bf16 %v2304_v42, %v2303_v41  ;;  %v2731_v41 = vld [vmem:[%s9841_s3 + $0x60] sm:$0xff]  ;;  %v2732_v42 = vld [vmem:[%s9841_s3 + $0x68] sm:$0xff] }
 0x5e4   : > { %1669 = vxpose.xlu1.b32.start.end [1/1] (short) (narrow) %v1668_v46, 8  ;;  %v8243_v46 = vpack.c.bf16 %v2393_v45, %v2392_v44  ;;  %v8285_v45 = vpack.c.bf16 %v2732_v42, %v2731_v41  ;;  %v7190_v42 = vld [vmem:[%s9846_s13 + $0x1] ss:$0 sm:$0xff] }
 0x664   : > { %v1685_v52 = vpop.trf.xlu1 }
 0x665   : > { %7667 = vmatmul.mubr.msk.f32.vlgmr.msra.gmra.mrb[4].mxu1 %vm1259_vm1, %v1685_v52 }
 0x666   : > { %8217 = vmatpush3.bf16.msra.mxu1 %v8216_v51  ;;  %7680 = vmatprep.mubr.msk.f32.mxu1 %vm8740_vm0, %v8739_v1  ;;  %v8255_v51 = vpack.c.bf16 %v2401_v50, %v2400_v49 }
 0x667   : > { %7678 = vmatprep.subr.mxu1 %v8739_v1 }
 0x66a   : > { %7679 = vmatpush3.msk.msra.mxu1 %vm1859_vm5, %v1847_v53 }
 0x66b   : > { %7681 = vmatmul.mubr.msk.f32.vlgmr.msra.gmra.mrb[6].mxu1 %vm1855_vm6, %v1841_v47  ;;  %8224 = vmatprep.subr.bf16.mxu1 %v8741_v3 }
 0x66c   : > { %7707 = vmatprep.mubr.msk.f32.mxu1 %vm8740_vm0, %v8739_v1  ;;  %8226 = vmatpush3.bf16.msra.mxu1 %v8225_v8 }
 0x66d   : > { %8227 = vmatprep.subr.bf16.mxu1 %v8741_v3 }
 0x670   : > { %8229 = vmatpush3.bf16.msra.mxu1 %v8228_v12  ;;  %v2721_v12 = vld [vmem:[%s9841_s3 + $0x10] sm:$0xff] }
 0x671   : > { %8230 = vmatprep.subr.bf16.mxu1 %v8741_v3 }
 0x738   : > { %v9082_v54 = vpop.f32.mrb[4].mxu1 }
 0x739   : > { %2290 = vst.msk [vmem:[%s9086_s16] sm:$0xf] %vm2289_vm7, %v9082_v54  ;;  %v7668_v55 = vpop.f32.mrb[5].mxu1 }
 0x73a   : > { %v2394_v55 = vld [vmem:[%s9838_s10 + $0x10] sm:$0xff] }
 0x73e   : > { %v1929_v57 = vpop.f32.mrb[6].mxu1 }
 0x73f   : > { %v1930_v60 = vadd.f32 %v7162_v56, %v1929_v57  ;;  %v7682_v61 = vpop.f32.mrb[7].mxu1  ;;  %v2395_v56 = vld [vmem:[%s9838_s10 + $0x18] sm:$0xff]  ;;  %v2402_v57 = vld [vmem:[%s9838_s10 + $0x50] sm:$0xff] }
 0x740   : > { %v8246_v58 = vpack.c.bf16 %v2395_v56, %v2394_v55  ;;  %v2396_v61 = vld [vmem:[%s9838_s10 + $0x20] sm:$0xff] }
 0x741   : > { %v1933_v62 = vmax.f32 %v1930_v60, 0.0  ;;  %v8258_v60 = vpack.c.bf16 %v2403_v59, %v2402_v57 }
 0x743   : > { %7684 = vmatpush3.msra.mxu0 %v1933_v62 }
 0x744   : > { %7686 = vmatmul.mubr.msk.f32.vlgmr.msra.gmra.mrb[8].mxu0 %vm1259_vm1, %v9023_v6  ;;  %8218 = vmatprep.subr.bf16.mxu0 %v8741_v3 }
 0x745   : > { %8220 = vmatpush3.bf16.msra.mxu0 %v8219_v63  ;;  %7696 = vmatprep.mubr.msk.f32.mxu0 %vm8740_vm0, %v8739_v1  ;;  %v2397_v63 = vld [vmem:[%s9838_s10 + $0x28] sm:$0xff] }
 0x746   : > { %8221 = vmatprep.subr.bf16.mxu0 %v8741_v3 }
 0x749   : > { %8223 = vmatpush3.bf16.msra.mxu0 %v8222_v4 }
 0x74a   : > { %7710 = vmatprep.subr.mxu0 %v8739_v1 }
 0x817   : > { %v2000_v6 = vpop.f32.mrb[8].mxu0 }
 0x818   : > { %7697 = vmatmul.mubr.msk.f32.vlgmr.msra.gmra.mrb[10].mxu0 %vm1498_vm3, %v2000_v6  ;;  %v7687_v9 = vpop.f32.mrb[9].mxu0  ;;  %v8249_v6 = vpack.c.bf16 %v2397_v63, %v2396_v61 }
 0x819   : > { %7712 = vmatprep.mubr.msk.f32.mxu0 %vm8740_vm0, %v8739_v1  ;;  %v8267_v9 = vpack.c.bf16 %v2720_v2, %v2719_v0 }
 0x8eb   : > { %v2084_v14 = vpop.f32.mrb[10].mxu0 }
 0x8ec   : > { %v2085_v15 = vadd.f32 %v7166_v13, %v2084_v14  ;;  %v7698_v16 = vpop.f32.mrb[11].mxu0  ;;  %v2722_v13 = vld [vmem:[%s9841_s3 + $0x18] sm:$0xff] }
 0x8ed   : > { %v8270_v16 = vpack.c.bf16 %v2722_v13, %v2721_v12 }
 0x8ee   : > { %v2088_v17 = vmax.f32 %v2085_v15, 0.0  ;;  %v8252_v15 = vpack.c.bf16 %v2399_v11, %v2398_v10  ;;  %v7173_v10 = vld [vmem:[%s9845_s9] ss:$0 sm:$0xff] }
 0x8f0   : > { %7708 = vmatmul.mubr.msk.f32.vlgmr.msra.gmra.mrb[8].mxu1 %vm1498_vm3, %v2088_v17  ;;  %7711 = vmatpush3.msra.mxu0 %v2088_v17  ;;  %v2404_v17 = vld [vmem:[%s9838_s10 + $0x60] sm:$0xff] }
 0x8f1   : > { %7731 = vmatprep.mubr.msk.f32.mxu1 %vm8740_vm0, %v8739_v1  ;;  %8242 = vmatprep.subr.bf16.mxu0 %v8741_v3 }
 0x8f2   : > { %8232 = vmatpush3.bf16.msra.mxu1 %v8231_v35  ;;  %v2725_v35 = vld [vmem:[%s9841_s3 + $0x30] sm:$0xff] }
 0x8f3   : > { %8233 = vmatprep.subr.bf16.mxu1 %v8741_v3  ;;  %v8276_v39 = vpack.c.bf16 %v2726_v36, %v2725_v35 }
 0x8f6   : > { %8235 = vmatpush3.bf16.msra.mxu1 %v8234_v37 }
 0x8f7   : > { %8236 = vmatprep.subr.bf16.mxu1 %v8741_v3 }
 0x8fa   : > { %8238 = vmatpush3.bf16.msra.mxu1 %v8237_v40 }
 0x8fb   : > { %8239 = vmatprep.subr.bf16.mxu1 %v8741_v3 }
 0x8fe   : > { %8241 = vmatpush3.bf16.msra.mxu1 %v8240_v43 }
 0x8ff   : > { %8254 = vmatprep.subr.bf16.mxu1 %v8741_v3 }
 0x9c3   : > { %v2169_v19 = vpop.f32.mrb[8].mxu1 }
 0x9c4   : > { %v2170_v20 = vadd.f32 %v7168_v18, %v2169_v19  ;;  %v7709_v21 = vpop.f32.mrb[9].mxu1  ;;  %v2405_v18 = vld [vmem:[%s9838_s10 + $0x68] sm:$0xff]  ;;  %v2727_v19 = vld [vmem:[%s9841_s3 + $0x40] sm:$0xff] }
 0x9c5   : > { %v8261_v21 = vpack.c.bf16 %v2405_v18, %v2404_v17 }
 0x9c6   : > { %v2173_v22 = vsel %vm1657_vm4, %v2170_v20, -inf }
 0x9c7   : > { %2174 = vmax.xlane.f32.xlu1 %v2173_v22 }
 0xa54   : > { %v2175_v23 = vpop.xlane.xlu1 %2174 }
 0xa55   : > { %v2176_v24 = vsub.f32 %v2170_v20, %v2175_v23  ;;  %v2728_v20 = vld [vmem:[%s9841_s3 + $0x48] sm:$0xff]  ;;  %v2406_v23 = vld [vmem:[%s9838_s10 + $0x70] sm:$0xff] }
 0xa56   : > { %v8279_v22 = vpack.c.bf16 %v2728_v20, %v2727_v19  ;;  %v7175_v19 = vld [vmem:[%s9845_s9 + $0x2] ss:$0 sm:$0xff] }
 0xa57   : > { %v2177_v25 = vmul.f32 1.442695, %v2176_v24  ;;  %v2407_v24 = vld [vmem:[%s9838_s10 + $0x78] sm:$0xff] }
 0xa59   : > { %8531 = vpow2.f32 %v2177_v25  ;;  %v2729_v25 = vld [vmem:[%s9841_s3 + $0x50] sm:$0xff] }
 0xa63   : > { %v8532_v26 = vpop.eup %8531 }
 0xa64   : > { %v2179_v27 = vsel %vm1657_vm4, %v8532_v26, 0.0 }
 0xa65   : > { %2180 = vadd.xlane.f32.xlu0 %v2179_v27  ;;  %v8264_v27 = vpack.c.bf16 %v2407_v24, %v2406_v23 }
 0xaf2   : > { %v2181_v28 = vpop.xlane.xlu0 %2180 }
 0xaf3   : > { %8533 = vrcp.f32 %v2181_v28 }
 0xafd   : > { %v8534_v29 = vpop.eup %8533 }
 0xafe   : > { %v2183_v30 = vmul.f32 %v8534_v29, %v8532_v26  ;;  %v2730_v26 = vld [vmem:[%s9841_s3 + $0x58] sm:$0xff]  ;;  %v2723_v29 = vld [vmem:[%s9841_s3 + $0x20] sm:$0xff] }
 0xaff   : > { %v8282_v28 = vpack.c.bf16 %v2730_v26, %v2729_v25  ;;  %v7189_v25 = vld [vmem:[%s9846_s13] ss:$0 sm:$0xff] }
 0xb00   : > { %2184 = vxpose.xlu0.b32.start.end [1/1] (short) (narrow) %v2183_v30, 8  ;;  %v2724_v30 = vld [vmem:[%s9841_s3 + $0x28] sm:$0xff] }
 0xb01   : > { %v8273_v33 = vpack.c.bf16 %v2724_v30, %v2723_v29 }
 0xb80   : > { %v2200_v31 = vpop.trf.xlu0 }
 0xb81   : > { %7713 = vmatmul.mubr.msk.f32.vlgmr.msra.gmra.mrb[12].mxu0 %vm1259_vm1, %v2200_v31 }
 0xb82   : > { %7742 = vmatprep.mubr.msk.f32.mxu0 %vm8740_vm0, %v8739_v1  ;;  %8244 = vmatpush3.bf16.msra.mxu0 %v8243_v46 }
 0xb83   : > { %8245 = vmatprep.subr.bf16.mxu0 %v8741_v3 }
 0xb86   : > { %8247 = vmatpush3.bf16.msra.mxu0 %v8246_v58 }
 0xb87   : > { %8248 = vmatprep.subr.bf16.mxu0 %v8741_v3 }
 0xc54   : > { %v2285_v47 = vpop.f32.mrb[12].mxu0 }
 0xc55   : > { %2291 = vst.msk [vmem:[%s9140_s5] sm:$0xf] %vm2289_vm7, %v2285_v47  ;;  %2293 = vrot.lane.b32.xlu1 %v2285_v47, %s8742_s6  ;;  %v7714_v48 = vpop.f32.mrb[13].mxu0  ;;  %s9842_s6 = sld [smem:[#allocation26_spill]]  ;;  %v2733_v47 = vld [vmem:[%s9841_s3 + $0x70] sm:$0xff] }
 0xc56   : > { %v2734_v48 = vld [vmem:[%s9841_s3 + $0x78] sm:$0xff] }
 0xc5b   : > { %v2386_v7 = vld [vmem:[%s9842_s6] sm:$0x1]  ;;  %s9844_s6 = sld [smem:[#allocation30_spill]] }
 0xc61   : > { %v7182_v24 = vld [vmem:[%s9844_s6 + $0x1] ss:$0 sm:$0xff] }
 0xcc7   : > { %v2294_v52 = vpop.permute.xlu1 %2293 }
 0xcc8   : > { %v2296_v53 = vsel %vm1498_vm3, %v9082_v54, %v2294_v52  ;;  %v7171_v54 = vld [vmem:[%s9840_s8] ss:$0 sm:$0xff]  ;;  %s9843_s8 = sld [smem:[#allocation31_spill]] }
 0xcc9   : > { %7732 = vmatmul.mubr.msk.f32.vlgmr.msra.gmra.mrb[10].mxu1 %vm2312_vm8, %v2296_v53 }
 0xcca   : > { %8256 = vmatpush3.bf16.msra.mxu1 %v8255_v51  ;;  %7764 = vmatprep.mubr.msk.f32.mxu1 %vm8740_vm0, %v8739_v1  ;;  %v8288_v51 = vpack.c.bf16 %v2734_v48, %v2733_v47 }
 0xccb   : > { %8257 = vmatprep.subr.bf16.mxu1 %v8741_v3 }
 0xcce   : > { %8259 = vmatpush3.bf16.msra.mxu1 %v8258_v60  ;;  %v3043_v31 = vld [vmem:[%s9843_s8] sm:$0xff]  ;;  %v3044_v32 = vld [vmem:[%s9843_s8 + $0x8] sm:$0xff]  ;;  %v3045_v37 = vld [vmem:[%s9843_s8 + $0x10] sm:$0xff] }
 0xccf   : > { %8266 = vmatprep.subr.bf16.mxu1 %v8741_v3  ;;  %v8291_v34 = vpack.c.bf16 %v3044_v32, %v3043_v31  ;;  %v3046_v38 = vld [vmem:[%s9843_s8 + $0x18] sm:$0xff]  ;;  %v3051_v43 = vld [vmem:[%s9843_s8 + $0x40] sm:$0xff]  ;;  %v3052_v44 = vld [vmem:[%s9843_s8 + $0x48] sm:$0xff] }
 0xcd0   : > { %v8294_v40 = vpack.c.bf16 %v3046_v38, %v3045_v37  ;;  %v8303_v46 = vpack.c.bf16 %v3052_v44, %v3051_v43  ;;  %v3053_v49 = vld [vmem:[%s9843_s8 + $0x50] sm:$0xff]  ;;  %v3054_v50 = vld [vmem:[%s9843_s8 + $0x58] sm:$0xff]  ;;  %v3047_v53 = vld [vmem:[%s9843_s8 + $0x20] sm:$0xff] }
 0xcd1   : > { %v8306_v52 = vpack.c.bf16 %v3054_v50, %v3053_v49  ;;  %v3048_v55 = vld [vmem:[%s9843_s8 + $0x28] sm:$0xff]  ;;  %v3049_v57 = vld [vmem:[%s9843_s8 + $0x30] sm:$0xff]  ;;  %v3050_v58 = vld [vmem:[%s9843_s8 + $0x38] sm:$0xff] }
 0xcd2   : > { %v8297_v56 = vpack.c.bf16 %v3048_v55, %v3047_v53  ;;  %v8300_v59 = vpack.c.bf16 %v3050_v58, %v3049_v57  ;;  %v3055_v60 = vld [vmem:[%s9843_s8 + $0x60] sm:$0xff]  ;;  %v3058_v63 = vld [vmem:[%s9843_s8 + $0x78] sm:$0xff] }
 0xcd3   : > { %v7176_v37 = vld [vmem:[%s9845_s9 + $0x3] ss:$0 sm:$0xff] }
 0xd9c   : > { %v2382_v62 = vpop.f32.mrb[10].mxu1 }
 0xd9d   : > { %v2383_v4 = vadd.f32 %v7171_v54, %v2382_v62  ;;  %v7733_v5 = vpop.f32.mrb[11].mxu1  ;;  %v3056_v54 = vld [vmem:[%s9843_s8 + $0x68] sm:$0xff]  ;;  %v3057_v62 = vld [vmem:[%s9843_s8 + $0x70] sm:$0xff] }
 0xd9e   : > { %v8309_v61 = vpack.c.bf16 %v3056_v54, %v3055_v60  ;;  %v8312_v0 = vpack.c.bf16 %v3058_v63, %v3057_v62 }
 0xd9f   : > { %v2388_v8 = vrot.slane %v2383_v4, 7 }
 0xda1   : > { %v9168_v14 = vsel %vm2390_vm9, %v2386_v7, %v2388_v8  ;;  %v7181_v8 = vld [vmem:[%s9844_s6] ss:$0 sm:$0xff] }
 0xda2   : > { %7743 = vmatmul.mubr.msk.f32.vlgmr.msra.gmra.mrb[14].mxu0 %vm1498_vm3, %v9168_v14  ;;  %7765 = vmatmul.mubr.msk.f32.vlgmr.msra.gmra.mrb[12].mxu1 %vm1498_vm3, %v9168_v14 }
 0xda3   : > { %8250 = vmatpush3.bf16.msra.mxu0 %v8249_v6  ;;  %8268 = vmatpush3.bf16.msra.mxu1 %v8267_v9 }
 0xda4   : > { %8251 = vmatprep.subr.bf16.mxu0 %v8741_v3  ;;  %8269 = vmatprep.subr.bf16.mxu1 %v8741_v3 }
 0xda5   : > { %7753 = vmatprep.mubr.msk.f32.mxu0 %vm8740_vm0, %v8739_v1  ;;  %7786 = vmatprep.mubr.msk.f32.mxu1 %vm8740_vm0, %v8739_v1 }
 0xda7   : > { %8253 = vmatpush3.bf16.msra.mxu0 %v8252_v15  ;;  %8271 = vmatpush3.bf16.msra.mxu1 %v8270_v16  ;;  %v7183_v16 = vld [vmem:[%s9844_s6 + $0x2] ss:$0 sm:$0xff] }
 0xda8   : > { %8260 = vmatprep.subr.bf16.mxu0 %v8741_v3  ;;  %8278 = vmatprep.subr.bf16.mxu1 %v8741_v3 }
 0xdaa   : > { %7754 = vmatmul.mubr.msk.f32.vlgmr.msra.gmra.mrb[16].mxu0 %vm1498_vm3, %v9168_v14  ;;  %7787 = vmatmul.mubr.msk.f32.vlgmr.msra.gmra.mrb[14].mxu1 %vm1498_vm3, %v9168_v14 }
 0xdab   : > { %8262 = vmatpush3.bf16.msra.mxu0 %v8261_v21  ;;  %8280 = vmatpush3.bf16.msra.mxu1 %v8279_v22 }
 0xdac   : > { %8263 = vmatprep.subr.bf16.mxu0 %v8741_v3  ;;  %8281 = vmatprep.subr.bf16.mxu1 %v8741_v3 }
 0xdad   : > { %7775 = vmatprep.mubr.msk.f32.mxu0 %vm8740_vm0, %v8739_v1  ;;  %7808 = vmatprep.mubr.msk.f32.mxu1 %vm8740_vm0, %v8739_v1 }
 0xdaf   : > { %8265 = vmatpush3.bf16.msra.mxu0 %v8264_v27  ;;  %8283 = vmatpush3.bf16.msra.mxu1 %v8282_v28  ;;  %v7174_v28 = vld [vmem:[%s9845_s9 + $0x1] ss:$0 sm:$0xff] }
 0xdb0   : > { %8272 = vmatprep.subr.bf16.mxu0 %v8741_v3  ;;  %8290 = vmatprep.subr.bf16.mxu1 %v8741_v3 }
 0xdb2   : > { %7776 = vmatmul.mubr.msk.f32.vlgmr.msra.gmra.mrb[18].mxu0 %vm1498_vm3, %v9168_v14  ;;  %7809 = vmatmul.mubr.msk.f32.vlgmr.msra.gmra.mrb[16].mxu1 %vm1498_vm3, %v9168_v14 }
 0xdb3   : > { %8274 = vmatpush3.bf16.msra.mxu0 %v8273_v33  ;;  %8292 = vmatpush3.bf16.msra.mxu1 %v8291_v34  ;;  %v7184_v34 = vld [vmem:[%s9844_s6 + $0x3] ss:$0 sm:$0xff] }
 0xdb4   : > { %8275 = vmatprep.subr.bf16.mxu0 %v8741_v3  ;;  %8293 = vmatprep.subr.bf16.mxu1 %v8741_v3 }
 0xdb5   : > { %7797 = vmatprep.mubr.msk.f32.mxu0 %vm8740_vm0, %v8739_v1  ;;  %7830 = vmatprep.mubr.msk.f32.mxu1 %vm8740_vm0, %v8739_v1 }
 0xdb7   : > { %8277 = vmatpush3.bf16.msra.mxu0 %v8276_v39  ;;  %8295 = vmatpush3.bf16.msra.mxu1 %v8294_v40 }
 0xdb8   : > { %8284 = vmatprep.subr.bf16.mxu0 %v8741_v3  ;;  %8302 = vmatprep.subr.bf16.mxu1 %v8741_v3 }
 0xdba   : > { %7798 = vmatmul.mubr.msk.f32.vlgmr.msra.gmra.mrb[20].mxu0 %vm1498_vm3, %v9168_v14  ;;  %7831 = vmatmul.mubr.msk.f32.vlgmr.msra.gmra.mrb[18].mxu1 %vm1498_vm3, %v9168_v14 }
 0xdbb   : > { %8286 = vmatpush3.bf16.msra.mxu0 %v8285_v45  ;;  %8304 = vmatpush3.bf16.msra.mxu1 %v8303_v46 }
 0xdbc   : > { %8287 = vmatprep.subr.bf16.mxu0 %v8741_v3  ;;  %8305 = vmatprep.subr.bf16.mxu1 %v8741_v3 }
 0xdbd   : > { %7819 = vmatprep.mubr.msk.f32.mxu0 %vm8740_vm0, %v8739_v1  ;;  %7852 = vmatprep.mubr.msk.f32.mxu1 %vm8740_vm0, %v8739_v1 }
 0xdbf   : > { %8289 = vmatpush3.bf16.msra.mxu0 %v8288_v51  ;;  %8307 = vmatpush3.bf16.msra.mxu1 %v8306_v52 }
 0xdc0   : > { %8296 = vmatprep.subr.bf16.mxu0 %v8741_v3  ;;  %7866 = vmatprep.subr.mxu1 %v8739_v1 }
 0xdc2   : > { %7820 = vmatmul.mubr.msk.f32.vlgmr.msra.gmra.mrb[22].mxu0 %vm1498_vm3, %v9168_v14  ;;  %7853 = vmatmul.mubr.msk.f32.vlgmr.msra.gmra.mrb[20].mxu1 %vm1498_vm3, %v9168_v14 }
 0xdc3   : > { %8298 = vmatpush3.bf16.msra.mxu0 %v8297_v56  ;;  %7841 = vmatprep.mubr.msk.f32.mxu0 %vm8740_vm0, %v8739_v1 }
 0xdc4   : > { %8299 = vmatprep.subr.bf16.mxu0 %v8741_v3  ;;  %7868 = vmatprep.mubr.msk.f32.mxu1 %vm8740_vm0, %v8739_v1 }
 0xdc7   : > { %8301 = vmatpush3.bf16.msra.mxu0 %v8300_v59 }
 0xdc8   : > { %8308 = vmatprep.subr.bf16.mxu0 %v8741_v3 }
 0xdca   : > { %7842 = vmatmul.mubr.msk.f32.vlgmr.msra.gmra.mrb[24].mxu0 %vm1498_vm3, %v9168_v14 }
 0xdcb   : > { %8310 = vmatpush3.bf16.msra.mxu0 %v8309_v61  ;;  %7863 = vmatprep.mubr.msk.f32.mxu0 %vm8740_vm0, %v8739_v1 }
 0xdcc   : > { %8311 = vmatprep.subr.bf16.mxu0 %v8741_v3 }
 0xdcf   : > { %8313 = vmatpush3.bf16.msra.mxu0 %v8312_v0 }
 0xdd0   : > { %7871 = vmatprep.subr.mxu0 %v8739_v1 }
 0xdd2   : > { %7864 = vmatmul.mubr.msk.f32.vlgmr.msra.gmra.mrb[26].mxu0 %vm1498_vm3, %v9168_v14 }
 0xdd3   : > { %7873 = vmatprep.mubr.msk.f32.mxu0 %vm8740_vm0, %v8739_v1 }
 0xe75   : > { %v2505_v2 = vpop.f32.mrb[14].mxu0  ;;  %v2645_v4 = vpop.f32.mrb[12].mxu1 }
 0xe76   : > { %v7744_v5 = vpop.f32.mrb[15].mxu0  ;;  %v7766_v7 = vpop.f32.mrb[13].mxu1  ;;  %v2506_v15 = vadd.f32 %v7173_v10, %v2505_v2  ;;  %v2646_v23 = vadd.f32 %v7175_v19, %v2645_v4 }
 0xe7d   : > { %v2575_v6 = vpop.f32.mrb[16].mxu0  ;;  %v2829_v9 = vpop.f32.mrb[14].mxu1 }
 0xe7e   : > { %v2830_v11 = vadd.f32 %v7181_v8, %v2829_v9  ;;  %v7755_v12 = vpop.f32.mrb[17].mxu0  ;;  %v7788_v13 = vpop.f32.mrb[15].mxu1  ;;  %v2576_v33 = vadd.f32 %v7174_v28, %v2575_v6 }
 0xe80   : > { %7867 = vmatpush3.xpose.msk.msra.mxu1 %vm1259_vm1, %v2830_v11 }
 0xe81   : > { %7876 = vmatprep.subr.mxu1 %v8739_v1 }
 0xe83   : > { %7869 = vmatmul.mubr.msk.f32.vlgmr.msra.gmra.mrb[22].mxu1 %vm1259_vm1, %v2506_v15 }
 0xe84   : > { %7878 = vmatprep.mubr.msk.f32.mxu1 %vm8740_vm0, %v8739_v1 }
 0xe85   : > { %v2715_v17 = vpop.f32.mrb[18].mxu0  ;;  %v2969_v18 = vpop.f32.mrb[16].mxu1 }
 0xe86   : > { %v2970_v20 = vadd.f32 %v7183_v16, %v2969_v18  ;;  %v7777_v21 = vpop.f32.mrb[19].mxu0  ;;  %v7810_v22 = vpop.f32.mrb[17].mxu1  ;;  %v2716_v41 = vadd.f32 %v7176_v37, %v2715_v17  ;;  %v4024_v37 = vld [vmem:[%s9847_s14 + $0x10] sm:$0xff] }
 0xe87   : > { %v7191_v21 = vld [vmem:[%s9846_s13 + $0x2] ss:$0 sm:$0xff] }
 0xe88   : > { %7877 = vmatpush3.xpose.msk.msra.mxu1 %vm1259_vm1, %v2970_v20 }
 0xe89   : > { %7886 = vmatprep.subr.mxu1 %v8739_v1 }
 0xe8b   : > { %7879 = vmatmul.mubr.msk.f32.vlgmr.msra.gmra.mrb[24].mxu1 %vm1259_vm1, %v2646_v23 }
 0xe8c   : > { %7888 = vmatprep.mubr.msk.f32.mxu1 %vm8740_vm0, %v8739_v1 }
 0xe8d   : > { %v2899_v26 = vpop.f32.mrb[20].mxu0  ;;  %v3153_v27 = vpop.f32.mrb[18].mxu1 }
 0xe8e   : > { %v2900_v29 = vadd.f32 %v7182_v24, %v2899_v26  ;;  %v3154_v30 = vadd.f32 %v7189_v25, %v3153_v27  ;;  %v7799_v31 = vpop.f32.mrb[21].mxu0  ;;  %v7832_v32 = vpop.f32.mrb[19].mxu1 }
 0xe90   : > { %7872 = vmatpush3.xpose.msk.msra.mxu0 %vm1259_vm1, %v2900_v29  ;;  %7887 = vmatpush3.msk.msra.mxu1 %vm3720_vm10, %v3154_v30  ;;  %v7192_v29 = vld [vmem:[%s9846_s13 + $0x3] ss:$0 sm:$0xff] }
 0xe91   : > { %7881 = vmatprep.subr.mxu0 %v8739_v1  ;;  %7896 = vmatprep.subr.mxu1 %v8739_v1 }
 0xe93   : > { %7874 = vmatmul.mubr.msk.f32.vlgmr.msra.gmra.mrb[28].mxu0 %vm1259_vm1, %v2576_v33 }
 0xe94   : > { %7883 = vmatprep.mubr.msk.f32.mxu0 %vm8740_vm0, %v8739_v1 }
 0xe95   : > { %v3039_v35 = vpop.f32.mrb[22].mxu0  ;;  %v9295_v36 = vpop.f32.mrb[20].mxu1 }
 0xe96   : > { %v3040_v38 = vadd.f32 %v7184_v34, %v3039_v35  ;;  %v7821_v39 = vpop.f32.mrb[23].mxu0  ;;  %v7854_v40 = vpop.f32.mrb[21].mxu1  ;;  %v3294_v24 = vadd.f32 %v7191_v21, %v9295_v36  ;;  %v4022_v35 = vld [vmem:[%s9847_s14] sm:$0xff]  ;;  %v4023_v36 = vld [vmem:[%s9847_s14 + $0x8] sm:$0xff] }
 0xe97   : > { %v4454_v21 = vld [vmem:[%s9850_s19 + $0x20] sm:$0xff] }
 0xe98   : > { %7882 = vmatpush3.xpose.msk.msra.mxu0 %vm1259_vm1, %v3040_v38 }
 0xe99   : > { %7891 = vmatprep.subr.mxu0 %v8739_v1 }
 0xe9b   : > { %7884 = vmatmul.mubr.msk.f32.vlgmr.msra.gmra.mrb[30].mxu0 %vm1259_vm1, %v2716_v41 }
 0xe9c   : > { %7893 = vmatprep.mubr.msk.f32.mxu0 %vm8740_vm0, %v8739_v1 }
 0xe9d   : > { %v3223_v43 = vpop.f32.mrb[24].mxu0 }
 0xe9e   : > { %v3224_v44 = vadd.f32 %v7190_v42, %v3223_v43  ;;  %v7843_v45 = vpop.f32.mrb[25].mxu0  ;;  %v4025_v42 = vld [vmem:[%s9847_s14 + $0x18] sm:$0xff] }
 0xea0   : > { %7892 = vmatpush3.msk.msra.mxu0 %vm3720_vm10, %v3224_v44 }
 0xea1   : > { %7901 = vmatprep.subr.mxu0 %v8739_v1 }
 0xea5   : > { %v9306_v46 = vpop.f32.mrb[26].mxu0 }
 0xea6   : > { %v7865_v47 = vpop.f32.mrb[27].mxu0  ;;  %v3364_v32 = vadd.f32 %v7192_v29, %v9306_v46 }
 0xf56   : > { %v3439_v48 = vpop.f32.mrb[22].mxu1 }
 0xf57   : > { %v7870_v49 = vpop.f32.mrb[23].mxu1  ;;  %v3672_v50 = vsel %vm3671_vm11, %v3439_v48, -inf }
 0xf58   : > { %3673 = vmax.xlane.f32.xlu0 %v3672_v50 }
 0xf5e   : > { %v3591_v51 = vpop.f32.mrb[24].mxu1 }
 0xf5f   : > { %v7880_v52 = vpop.f32.mrb[25].mxu1  ;;  %v3678_v53 = vsel %vm3671_vm11, %v3591_v51, -inf }
 0xf60   : > { %3679 = vmax.xlane.f32.xlu1 %v3678_v53 }
 0xf66   : > { %v3515_v55 = vpop.f32.mrb[28].mxu0 }
 0xf67   : > { %v7875_v56 = vpop.f32.mrb[29].mxu0  ;;  %v3675_v57 = vsel %vm3671_vm11, %v3515_v55, -inf }
 0xf68   : > { %3676 = vmax.xlane.f32.xlu1 %v3675_v57 }
 0xf6e   : > { %v3667_v58 = vpop.f32.mrb[30].mxu0 }
 0xf6f   : > { %v7885_v59 = vpop.f32.mrb[31].mxu0  ;;  %v3681_v60 = vsel %vm3671_vm11, %v3667_v58, -inf }
 0xf70   : > { %3682 = vmax.xlane.f32.xlu1 %v3681_v60 }
 0xfe5   : > { %v3674_v54 = vpop.xlane.xlu0 %3673 }
 0xfe6   : > { %v3684_v61 = vsub.f32 %v3439_v48, %v3674_v54  ;;  %v7217_v54 = vld [vmem:[%s9848_s15] ss:$0 sm:$0xff] }
 0xfe8   : > { %v3688_v62 = vmul.f32 1.442695, %v3684_v61 }
 0xfea   : > { %8535 = vpow2.f32 %v3688_v62 }
 0xfed   : > { %v3680_v63 = vpop.xlane.xlu1 %3679 }
 0xfee   : > { %v3686_v0 = vsub.f32 %v3591_v51, %v3680_v63 }
 0xff0   : > { %v3692_v2 = vmul.f32 1.442695, %v3686_v0 }
 0xff2   : > { %8537 = vpow2.f32 %v3692_v2 }
 0xff4   : > { %v8536_v4 = vpop.eup %8535 }
 0xff5   : > { %v3677_v5 = vpop.xlane.xlu1 %3676  ;;  %v3696_v7 = vsel %vm3671_vm11, %v8536_v4, 0.0 }
 0xff6   : > { %v3685_v8 = vsub.f32 %v3515_v55, %v3677_v5  ;;  %3697 = vadd.xlane.f32.xlu0 %v3696_v7 }
 0xff8   : > { %v3690_v6 = vmul.f32 1.442695, %v3685_v8 }
 0xffa   : > { %8539 = vpow2.f32 %v3690_v6 }
 0xffc   : > { %v8538_v9 = vpop.eup %8537 }
 0xffd   : > { %v3683_v10 = vpop.xlane.xlu1 %3682  ;;  %v3702_v11 = vsel %vm3671_vm11, %v8538_v9, 0.0 }
 0xffe   : > { %v3687_v12 = vsub.f32 %v3667_v58, %v3683_v10  ;;  %3703 = vadd.xlane.f32.xlu0 %v3702_v11  ;;  %v4366_v10 = vld [vmem:[%s9849_s17 + $0x8] sm:$0xff] }
0x1000   : > { %v3694_v13 = vmul.f32 1.442695, %v3687_v12  ;;  %v4368_v12 = vld [vmem:[%s9849_s17 + $0x18] sm:$0xff] }
0x1002   : > { %8541 = vpow2.f32 %v3694_v13 }
0x1004   : > { %v8540_v15 = vpop.eup %8539 }
0x1005   : > { %v3699_v16 = vsel %vm3671_vm11, %v8540_v15, 0.0 }
0x1006   : > { %3700 = vadd.xlane.f32.xlu1 %v3699_v16  ;;  %v4451_v16 = vld [vmem:[%s9850_s19 + $0x8] sm:$0xff] }
0x100c   : > { %v8542_v17 = vpop.eup %8541 }
0x100d   : > { %v3705_v18 = vsel %vm3671_vm11, %v8542_v17, 0.0 }
0x100e   : > { %3706 = vadd.xlane.f32.xlu1 %v3705_v18 }
0x1083   : > { %v3698_v19 = vpop.xlane.xlu0 %3697 }
0x1084   : > { %8543 = vrcp.f32 %v3698_v19  ;;  %v4453_v19 = vld [vmem:[%s9850_s19 + $0x18] sm:$0xff] }
0x108b   : > { %v3704_v20 = vpop.xlane.xlu0 %3703 }
0x108c   : > { %8545 = vrcp.f32 %v3704_v20 }
0x108e   : > { %v8544_v22 = vpop.eup %8543 }
0x108f   : > { %v3709_v23 = vmul.f32 %v8544_v22, %v8536_v4  ;;  %v4455_v22 = vld [vmem:[%s9850_s19 + $0x28] sm:$0xff] }
0x1091   : > { %7889 = vmatmul.mubr.msk.f32.vlgmr.msra.gmra.mrb[26].mxu1 %vm3716_vm12, %v3709_v23  ;;  %v8327_v23 = vpack.c.bf16 %v4455_v22, %v4454_v21 }
0x1092   : > { %7897 = vmatpush3.msk.msra.mxu1 %vm3720_vm10, %v3294_v24  ;;  %7898 = vmatprep.mubr.msk.f32.mxu1 %vm8740_vm0, %v8739_v1 }
0x1093   : > { %v3701_v25 = vpop.xlane.xlu1 %3700  ;;  %7906 = vmatprep.subr.mxu1 %v8739_v1 }
0x1094   : > { %8547 = vrcp.f32 %v3701_v25 }
0x1096   : > { %v8546_v26 = vpop.eup %8545 }
0x1097   : > { %v3713_v27 = vmul.f32 %v8546_v26, %v8538_v9  ;;  %v4365_v9 = vld [vmem:[%s9849_s17] sm:$0xff] }
0x1098   : > { %v8315_v11 = vpack.c.bf16 %v4366_v10, %v4365_v9  ;;  %v7231_v9 = vld [vmem:[%s9838_s10 + $0xa8] sm:$0xff]  ;;  %v7254_v10 = vld [vmem:[%s9841_s3 + $0x80] sm:$0xff] }
0x1099   : > { %7899 = vmatmul.mubr.msk.f32.vlgmr.msra.gmra.mrb[28].mxu1 %vm3716_vm12, %v3713_v27 }
0x109a   : > { %7908 = vmatprep.mubr.msk.f32.mxu1 %vm8740_vm0, %v8739_v1  ;;  %7907 = vmatpush3.msra.mxu1 %v4022_v35 }
0x109b   : > { %v3707_v28 = vpop.xlane.xlu1 %3706  ;;  %7916 = vmatprep.subr.mxu1 %v8739_v1 }
0x109c   : > { %8549 = vrcp.f32 %v3707_v28  ;;  %v7218_v28 = vld [vmem:[%s9851_s21] ss:$0 sm:$0xff] }
0x109e   : > { %v8548_v30 = vpop.eup %8547 }
0x109f   : > { %v3711_v31 = vmul.f32 %v8548_v30, %v8540_v15  ;;  %v4450_v15 = vld [vmem:[%s9850_s19] sm:$0xff] }
0x10a0   : > { %v8321_v18 = vpack.c.bf16 %v4451_v16, %v4450_v15  ;;  %v7219_v30 = vld [vmem:[%s9852_s24] ss:$0 sm:$0xff]  ;;  %v7232_v16 = vld [vmem:[%s9838_s10 + $0xb0] sm:$0xff] }
0x10a1   : > { %7894 = vmatmul.mubr.msk.f32.vlgmr.msra.gmra.mrb[32].mxu0 %vm3716_vm12, %v3711_v31 }
0x10a2   : > { %7902 = vmatpush3.msk.msra.mxu0 %vm3720_vm10, %v3364_v32  ;;  %7903 = vmatprep.mubr.msk.f32.mxu0 %vm8740_vm0, %v8739_v1 }
0x10a3   : > { %7911 = vmatprep.subr.mxu0 %v8739_v1 }
0x10a6   : > { %v8550_v33 = vpop.eup %8549 }
0x10a7   : > { %v3715_v34 = vmul.f32 %v8550_v33, %v8542_v17  ;;  %v4452_v17 = vld [vmem:[%s9850_s19 + $0x10] sm:$0xff] }
0x10a8   : > { %v8324_v20 = vpack.c.bf16 %v4453_v19, %v4452_v17  ;;  %v4456_v33 = vld [vmem:[%s9850_s19 + $0x30] sm:$0xff] }
0x10a9   : > { %7904 = vmatmul.mubr.msk.f32.vlgmr.msra.gmra.mrb[34].mxu0 %vm3716_vm12, %v3715_v34  ;;  %v4457_v34 = vld [vmem:[%s9850_s19 + $0x38] sm:$0xff]  ;;  %v7256_v19 = vld [vmem:[%s9841_s3 + $0x90] sm:$0xff] }
0x10aa   : > { %7913 = vmatprep.mubr.msk.f32.mxu0 %vm8740_vm0, %v8739_v1  ;;  %7912 = vmatpush3.msra.mxu0 %v4023_v36  ;;  %v8330_v35 = vpack.c.bf16 %v4457_v34, %v4456_v33  ;;  %v7220_v36 = vld [vmem:[%s9853_s25] ss:$0 sm:$0xff] }
0x10ab   : > { %7921 = vmatprep.subr.mxu0 %v8739_v1 }
0x1164   : > { %v3790_v38 = vpop.f32.mrb[26].mxu1 }
0x1165   : > { %v7890_v39 = vpop.f32.mrb[27].mxu1  ;;  %7909 = vmatmul.mubr.msk.f32.vlgmr.msra.gmra.mrb[30].mxu1 %vm1259_vm1, %v3790_v38 }
0x1166   : > { %7917 = vmatpush3.msra.mxu1 %v4024_v37  ;;  %7918 = vmatprep.mubr.msk.f32.mxu1 %vm8740_vm0, %v8739_v1 }
0x1167   : > { %8314 = vmatprep.subr.bf16.mxu1 %v8741_v3 }
0x116c   : > { %v3942_v40 = vpop.f32.mrb[28].mxu1 }
0x116d   : > { %v7900_v41 = vpop.f32.mrb[29].mxu1  ;;  %7919 = vmatmul.mubr.msk.f32.vlgmr.msra.gmra.mrb[32].mxu1 %vm1259_vm1, %v3942_v40 }
0x116e   : > { %7934 = vmatprep.mubr.msk.f32.mxu1 %vm8740_vm0, %v8739_v1  ;;  %8316 = vmatpush3.bf16.msra.mxu1 %v8315_v11  ;;  %v7222_v41 = vld [vmem:[%s9854_s29] ss:$0 sm:$0xff]  ;;  %v7255_v11 = vld [vmem:[%s9841_s3 + $0x88] sm:$0xff] }
0x116f   : > { %8317 = vmatprep.subr.bf16.mxu1 %v8741_v3  ;;  %v8357_v15 = vpack.c.bf16 %v7255_v11, %v7254_v10 }
0x1174   : > { %v3866_v43 = vpop.f32.mrb[32].mxu0 }
0x1175   : > { %v7895_v44 = vpop.f32.mrb[33].mxu0  ;;  %7914 = vmatmul.mubr.msk.f32.vlgmr.msra.gmra.mrb[36].mxu0 %vm1259_vm1, %v3866_v43 }
0x1176   : > { %7922 = vmatpush3.msra.mxu0 %v4025_v42  ;;  %7923 = vmatprep.mubr.msk.f32.mxu0 %vm8740_vm0, %v8739_v1 }
0x1177   : > { %8320 = vmatprep.subr.bf16.mxu0 %v8741_v3 }
0x117c   : > { %v4018_v45 = vpop.f32.mrb[34].mxu0 }
0x117d   : > { %v7905_v46 = vpop.f32.mrb[35].mxu0  ;;  %7924 = vmatmul.mubr.msk.f32.vlgmr.msra.gmra.mrb[38].mxu0 %vm1259_vm1, %v4018_v45 }
0x117e   : > { %7953 = vmatprep.mubr.msk.f32.mxu0 %vm8740_vm0, %v8739_v1  ;;  %8322 = vmatpush3.bf16.msra.mxu0 %v8321_v18  ;;  %v7233_v18 = vld [vmem:[%s9838_s10 + $0xb8] sm:$0xff] }
0x117f   : > { %8323 = vmatprep.subr.bf16.mxu0 %v8741_v3  ;;  %v8342_v21 = vpack.c.bf16 %v7233_v18, %v7232_v16  ;;  %v7246_v16 = vld [vmem:[%s9845_s9 + $0x4] ss:$0 sm:$0xff] }
0x1182   : > { %8325 = vmatpush3.bf16.msra.mxu0 %v8324_v20  ;;  %v7257_v20 = vld [vmem:[%s9841_s3 + $0x98] sm:$0xff] }
0x1183   : > { %8326 = vmatprep.subr.bf16.mxu0 %v8741_v3  ;;  %v8360_v22 = vpack.c.bf16 %v7257_v20, %v7256_v19 }
0x1186   : > { %8328 = vmatpush3.bf16.msra.mxu0 %v8327_v23  ;;  %v7238_v23 = vld [vmem:[%s9838_s10 + $0xe0] sm:$0xff] }
0x1187   : > { %8329 = vmatprep.subr.bf16.mxu0 %v8741_v3 }
0x118a   : > { %8331 = vmatpush3.bf16.msra.mxu0 %v8330_v35  ;;  %v7258_v35 = vld [vmem:[%s9841_s3 + $0xa0] sm:$0xff] }
0x118b   : > { %8344 = vmatprep.subr.bf16.mxu0 %v8741_v3 }
0x1238   : > { %v4095_v47 = vpop.f32.mrb[30].mxu1 }
0x1239   : > { %v7910_v48 = vpop.f32.mrb[31].mxu1  ;;  %v4319_v52 = vsel %vm4318_vm13, %v4095_v47, 0.0 }
0x1240   : > { %v4241_v49 = vpop.f32.mrb[32].mxu1 }
0x1241   : > { %v7920_v50 = vpop.f32.mrb[33].mxu1  ;;  %v4322_v57 = vsel %vm4318_vm13, %v4241_v49, 0.0 }
0x1248   : > { %v4168_v51 = vpop.f32.mrb[36].mxu0 }
0x1249   : > { %v4320_v53 = vsel %vm4318_vm13, %v4168_v51, 0.0  ;;  %v7915_v55 = vpop.f32.mrb[37].mxu0 }
0x124a   : > { %v4321_v56 = vadd.f32 %v4320_v53, %v4319_v52  ;;  %v7226_v52 = vld [vmem:[%s9838_s10 + $0x80] sm:$0xff]  ;;  %v7227_v53 = vld [vmem:[%s9838_s10 + $0x88] sm:$0xff] }
0x124b   : > { %v7234_v55 = vld [vmem:[%s9838_s10 + $0xc0] sm:$0xff] }
0x124c   : > { %v4323_v58 = vadd.f32 %v4322_v57, %v4321_v56  ;;  %v8333_v56 = vpack.c.bf16 %v7227_v53, %v7226_v52  ;;  %v7235_v57 = vld [vmem:[%s9838_s10 + $0xc8] sm:$0xff]  ;;  %v7268_v53 = vld [vmem:[%s9841_s3 + $0xf0] sm:$0xff] }
0x1250   : > { %v4314_v59 = vpop.f32.mrb[38].mxu0 }
0x1251   : > { %v4324_v60 = vsel %vm4318_vm13, %v4314_v59, 0.0  ;;  %v7925_v61 = vpop.f32.mrb[39].mxu0  ;;  %v7228_v59 = vld [vmem:[%s9838_s10 + $0x90] sm:$0xff] }
0x1252   : > { %v4325_v62 = vadd.f32 %v4324_v60, %v4323_v58  ;;  %v8345_v58 = vpack.c.bf16 %v7235_v57, %v7234_v55  ;;  %v7229_v60 = vld [vmem:[%s9838_s10 + $0x98] sm:$0xff] }
0x1253   : > { %v8336_v61 = vpack.c.bf16 %v7229_v60, %v7228_v59  ;;  %v7269_v55 = vld [vmem:[%s9841_s3 + $0xf8] sm:$0xff]  ;;  %v7286_v60 = vld [vmem:[%s9843_s8 + $0xa0] sm:$0xff] }
0x1254   : > { %v4333_v63 = vadd.f32 %v7217_v54, %v4325_v62  ;;  %v7236_v54 = vld [vmem:[%s9838_s10 + $0xd0] sm:$0xff]  ;;  %v7237_v62 = vld [vmem:[%s9838_s10 + $0xd8] sm:$0xff] }
0x1255   : > { %v7293_v57 = vld [vmem:[%s9843_s8 + $0xd8] sm:$0xff] }
0x1256   : > { %v4334_v0 = vadd.f32 %v4333_v63, %v9168_v14  ;;  %v4367_v14 = vld [vmem:[%s9849_s17 + $0x10] sm:$0xff]  ;;  %v8348_v63 = vpack.c.bf16 %v7237_v62, %v7236_v54  ;;  %v7287_v54 = vld [vmem:[%s9843_s8 + $0xa8] sm:$0xff] }
0x1257   : > { %v8318_v13 = vpack.c.bf16 %v4368_v12, %v4367_v14  ;;  %v7225_v14 = vld [vmem:[%s9856_s18] ss:$0 sm:$0xff]  ;;  %v7288_v62 = vld [vmem:[%s9843_s8 + $0xb0] sm:$0xff] }
0x1258   : > { %v4337_v2 = vsel %vm4318_vm13, %v4334_v0, 0.0 }
0x1259   : > { %4338 = vadd.xlane.f32.xlu0 %v4337_v2  ;;  %8319 = vmatpush3.bf16.msra.mxu1 %v8318_v13 }
0x125a   : > { %8332 = vmatprep.subr.bf16.mxu1 %v8741_v3 }
0x12e6   : > { %v4339_v4 = vpop.xlane.xlu0 %4338 }
0x12e7   : > { %v4341_v5 = vmul.f32 0.03125, %v4339_v4 }
0x12e9   : > { %v4342_v7 = vsub.f32 %v4334_v0, %v4341_v5 }
0x12eb   : > { %v4343_v8 = vmul.f32 %v4342_v7, %v4342_v7 }
0x12ed   : > { %v4344_v6 = vsel %vm4318_vm13, %v4343_v8, 0.0  ;;  %v7230_v8 = vld [vmem:[%s9838_s10 + $0xa0] sm:$0xff] }
0x12ee   : > { %4345 = vadd.xlane.f32.xlu1 %v4344_v6  ;;  %v8339_v13 = vpack.c.bf16 %v7231_v9, %v7230_v8  ;;  %v7297_v8 = vld [vmem:[%s9843_s8 + $0xf8] sm:$0xff] }
0x137b   : > { %v4346_v24 = vpop.xlane.xlu1 %4345 }
0x137c   : > { %v4347_v25 = vmul.f32 0.03125, %v4346_v24  ;;  %v7239_v24 = vld [vmem:[%s9838_s10 + $0xe8] sm:$0xff] }
0x137e   : > { %v4348_v26 = vadd.f32 1e-05, %v4347_v25  ;;  %v7262_v25 = vld [vmem:[%s9841_s3 + $0xc0] sm:$0xff] }
0x1380   : > { %8551 = vrsqrt.f32 %v4348_v26  ;;  %v7263_v26 = vld [vmem:[%s9841_s3 + $0xc8] sm:$0xff] }
0x138a   : > { %v8552_v27 = vpop.eup %8551 }
0x138b   : > { %v4350_v29 = vmul.f32 %v8552_v27, %v4342_v7  ;;  %v7224_v7 = vld [vmem:[%s9855_s30] ss:$0 sm:$0xff]  ;;  %v8351_v27 = vpack.c.bf16 %v7239_v24, %v7238_v23 }
0x138d   : > { %v4357_v31 = vmul.f32 %v7218_v28, %v4350_v29  ;;  %v8369_v28 = vpack.c.bf16 %v7263_v26, %v7262_v25  ;;  %v7240_v29 = vld [vmem:[%s9838_s10 + $0xf0] sm:$0xff]  ;;  %v7248_v25 = vld [vmem:[%s9845_s9 + $0x6] ss:$0 sm:$0xff] }
0x138f   : > { %v4364_v32 = vadd.f32 %v7219_v30, %v4357_v31  ;;  %v7241_v30 = vld [vmem:[%s9838_s10 + $0xf8] sm:$0xff]  ;;  %v7264_v31 = vld [vmem:[%s9841_s3 + $0xd0] sm:$0xff] }
0x1390   : > { %v8354_v33 = vpack.c.bf16 %v7241_v30, %v7240_v29  ;;  %v7275_v30 = vld [vmem:[%s9844_s6 + $0x5] ss:$0 sm:$0xff] }
0x1391   : > { %7935 = vmatmul.mubr.msk.f32.vlgmr.msra.gmra.mrb[34].mxu1 %vm1498_vm3, %v4364_v32 }
0x1392   : > { %7964 = vmatprep.mubr.msk.f32.mxu1 %vm8740_vm0, %v8739_v1  ;;  %8334 = vmatpush3.bf16.msra.mxu1 %v8333_v56  ;;  %v7292_v56 = vld [vmem:[%s9843_s8 + $0xd0] sm:$0xff] }
0x1393   : > { %8335 = vmatprep.subr.bf16.mxu1 %v8741_v3  ;;  %v8396_v59 = vpack.c.bf16 %v7293_v57, %v7292_v56 }
0x1396   : > { %8337 = vmatpush3.bf16.msra.mxu1 %v8336_v61  ;;  %v8387_v61 = vpack.c.bf16 %v7287_v54, %v7286_v60 }
0x1397   : > { %8338 = vmatprep.subr.bf16.mxu1 %v8741_v3 }
0x1464   : > { %v4445_v37 = vpop.f32.mrb[34].mxu1 }
0x1465   : > { %v4446_v38 = vadd.f32 %v7220_v36, %v4445_v37  ;;  %v7936_v39 = vpop.f32.mrb[35].mxu1  ;;  %v7259_v36 = vld [vmem:[%s9841_s3 + $0xa8] sm:$0xff]  ;;  %v7282_v37 = vld [vmem:[%s9843_s8 + $0x80] sm:$0xff] }
0x1466   : > { %v8363_v39 = vpack.c.bf16 %v7259_v36, %v7258_v35 }
0x1467   : > { %v4449_v40 = vmax.f32 %v4446_v38, 0.0  ;;  %v7283_v38 = vld [vmem:[%s9843_s8 + $0x88] sm:$0xff] }
0x1469   : > { %7954 = vmatmul.mubr.msk.f32.vlgmr.msra.gmra.mrb[40].mxu0 %vm2312_vm8, %v4449_v40  ;;  %v8381_v40 = vpack.c.bf16 %v7283_v38, %v7282_v37 }
0x146a   : > { %7986 = vmatprep.mubr.msk.f32.mxu0 %vm8740_vm0, %v8739_v1  ;;  %8346 = vmatpush3.bf16.msra.mxu0 %v8345_v58  ;;  %v8378_v58 = vpack.c.bf16 %v7269_v55, %v7268_v53 }
0x146b   : > { %8347 = vmatprep.subr.bf16.mxu0 %v8741_v3 }
0x146e   : > { %8349 = vmatpush3.bf16.msra.mxu0 %v8348_v63  ;;  %v7289_v63 = vld [vmem:[%s9843_s8 + $0xb8] sm:$0xff] }
0x146f   : > { %8356 = vmatprep.subr.bf16.mxu0 %v8741_v3 }
0x153c   : > { %v4534_v42 = vpop.f32.mrb[40].mxu0 }
0x153d   : > { %v4535_v43 = vadd.f32 %v7222_v41, %v4534_v42  ;;  %v7955_v44 = vpop.f32.mrb[41].mxu0  ;;  %v7260_v41 = vld [vmem:[%s9841_s3 + $0xb0] sm:$0xff]  ;;  %v7261_v42 = vld [vmem:[%s9841_s3 + $0xb8] sm:$0xff] }
0x153e   : > { %v7285_v44 = vld [vmem:[%s9843_s8 + $0x98] sm:$0xff] }
0x153f   : > { %v4538_v45 = vadd.f32 %v4535_v43, %v4364_v32  ;;  %v7265_v32 = vld [vmem:[%s9841_s3 + $0xd8] sm:$0xff]  ;;  %v7284_v43 = vld [vmem:[%s9843_s8 + $0x90] sm:$0xff] }
0x1540   : > { %v8372_v34 = vpack.c.bf16 %v7265_v32, %v7264_v31  ;;  %v7302_v31 = vld [vmem:[%s9846_s13 + $0x4] ss:$0 sm:$0xff] }
0x1541   : > { %v4541_v46 = vsel %vm4318_vm13, %v4538_v45, 0.0 }
0x1542   : > { %4542 = vadd.xlane.f32.xlu0 %v4541_v46  ;;  %v8384_v46 = vpack.c.bf16 %v7285_v44, %v7284_v43  ;;  %v7249_v43 = vld [vmem:[%s9845_s9 + $0x7] ss:$0 sm:$0xff] }
0x15cf   : > { %v4543_v47 = vpop.xlane.xlu0 %4542 }
0x15d0   : > { %v4544_v48 = vmul.f32 0.03125, %v4543_v47  ;;  %v7266_v47 = vld [vmem:[%s9841_s3 + $0xe0] sm:$0xff] }
0x15d2   : > { %v4545_v49 = vsub.f32 %v4538_v45, %v4544_v48  ;;  %v8366_v45 = vpack.c.bf16 %v7261_v42, %v7260_v41  ;;  %v7267_v48 = vld [vmem:[%s9841_s3 + $0xe8] sm:$0xff]  ;;  %s9857_s3 = sld [smem:[#allocation43_spill]] }
0x15d4   : > { %v4546_v50 = vmul.f32 %v4545_v49, %v4545_v49 }
0x15d6   : > { %v4547_v51 = vsel %vm4318_vm13, %v4546_v50, 0.0  ;;  %v7291_v50 = vld [vmem:[%s9843_s8 + $0xc8] sm:$0xff] }
0x15d7   : > { %4548 = vadd.xlane.f32.xlu1 %v4547_v51  ;;  %v8375_v51 = vpack.c.bf16 %v7267_v48, %v7266_v47  ;;  %v7303_v48 = vld [vmem:[%s9846_s13 + $0x5] ss:$0 sm:$0xff] }
0x1664   : > { %v4549_v0 = vpop.xlane.xlu1 %4548 }
0x1665   : > { %v4550_v2 = vmul.f32 0.03125, %v4549_v0  ;;  %v8390_v0 = vpack.c.bf16 %v7289_v63, %v7288_v62 }
0x1667   : > { %v4551_v4 = vadd.f32 1e-05, %v4550_v2  ;;  %v7294_v2 = vld [vmem:[%s9843_s8 + $0xe0] sm:$0xff] }
0x1669   : > { %8553 = vrsqrt.f32 %v4551_v4  ;;  %v7295_v4 = vld [vmem:[%s9843_s8 + $0xe8] sm:$0xff] }
0x1673   : > { %v8554_v5 = vpop.eup %8553 }
0x1674   : > { %v4553_v6 = vmul.f32 %v8554_v5, %v4545_v49  ;;  %v7290_v49 = vld [vmem:[%s9843_s8 + $0xc0] sm:$0xff]  ;;  %v8399_v5 = vpack.c.bf16 %v7295_v4, %v7294_v2 }
0x1675   : > { %v8393_v52 = vpack.c.bf16 %v7291_v50, %v7290_v49 }
0x1676   : > { %v4560_v12 = vmul.f32 %v7224_v7, %v4553_v6  ;;  %v7296_v7 = vld [vmem:[%s9843_s8 + $0xf0] sm:$0xff]  ;;  %s9859_s8 = sld [smem:[#allocation44_spill]] }
0x1677   : > { %v8402_v6 = vpack.c.bf16 %v7297_v8, %v7296_v7 }
0x1678   : > { %v9413_v17 = vadd.f32 %v7225_v14, %v4560_v12  ;;  %v7274_v12 = vld [vmem:[%s9844_s6 + $0x4] ss:$0 sm:$0xff] }
0x167a   : > { %7965 = vmatmul.mubr.msk.f32.vlgmr.msra.gmra.mrb[36].mxu1 %vm1498_vm3, %v9413_v17  ;;  %7987 = vmatmul.mubr.msk.f32.vlgmr.msra.gmra.mrb[42].mxu0 %vm1498_vm3, %v9413_v17 }
0x167b   : > { %8340 = vmatpush3.bf16.msra.mxu1 %v8339_v13  ;;  %8358 = vmatpush3.bf16.msra.mxu0 %v8357_v15 }
0x167c   : > { %8341 = vmatprep.subr.bf16.mxu1 %v8741_v3  ;;  %8359 = vmatprep.subr.bf16.mxu0 %v8741_v3 }
0x167d   : > { %7975 = vmatprep.mubr.msk.f32.mxu1 %vm8740_vm0, %v8739_v1  ;;  %8008 = vmatprep.mubr.msk.f32.mxu0 %vm8740_vm0, %v8739_v1 }
0x167f   : > { %8343 = vmatpush3.bf16.msra.mxu1 %v8342_v21  ;;  %8361 = vmatpush3.bf16.msra.mxu0 %v8360_v22  ;;  %v7276_v22 = vld [vmem:[%s9844_s6 + $0x6] ss:$0 sm:$0xff] }
0x1680   : > { %8350 = vmatprep.subr.bf16.mxu1 %v8741_v3  ;;  %8368 = vmatprep.subr.bf16.mxu0 %v8741_v3 }
0x1682   : > { %7976 = vmatmul.mubr.msk.f32.vlgmr.msra.gmra.mrb[38].mxu1 %vm1498_vm3, %v9413_v17  ;;  %8009 = vmatmul.mubr.msk.f32.vlgmr.msra.gmra.mrb[44].mxu0 %vm1498_vm3, %v9413_v17 }
0x1683   : > { %8352 = vmatpush3.bf16.msra.mxu1 %v8351_v27  ;;  %8370 = vmatpush3.bf16.msra.mxu0 %v8369_v28 }
0x1684   : > { %8353 = vmatprep.subr.bf16.mxu1 %v8741_v3  ;;  %8371 = vmatprep.subr.bf16.mxu0 %v8741_v3 }
0x1685   : > { %7997 = vmatprep.mubr.msk.f32.mxu1 %vm8740_vm0, %v8739_v1  ;;  %8030 = vmatprep.mubr.msk.f32.mxu0 %vm8740_vm0, %v8739_v1 }
0x1687   : > { %8355 = vmatpush3.bf16.msra.mxu1 %v8354_v33  ;;  %8373 = vmatpush3.bf16.msra.mxu0 %v8372_v34  ;;  %v7247_v34 = vld [vmem:[%s9845_s9 + $0x5] ss:$0 sm:$0xff]  ;;  %s7367_s9 = sshll.u32 %s8977_s0, 6 }
0x1688   : > { %8362 = vmatprep.subr.bf16.mxu1 %v8741_v3  ;;  %8380 = vmatprep.subr.bf16.mxu0 %v8741_v3  ;;  %s9662_s10 = scalar_lea.hbm %s8949_s20, %s7367_s9 }
0x168a   : > { %7998 = vmatmul.mubr.msk.f32.vlgmr.msra.gmra.mrb[40].mxu1 %vm1498_vm3, %v9413_v17  ;;  %8031 = vmatmul.mubr.msk.f32.vlgmr.msra.gmra.mrb[46].mxu0 %vm1498_vm3, %v9413_v17 }
0x168b   : > { %8364 = vmatpush3.bf16.msra.mxu1 %v8363_v39  ;;  %8382 = vmatpush3.bf16.msra.mxu0 %v8381_v40  ;;  %v7277_v40 = vld [vmem:[%s9844_s6 + $0x7] ss:$0 sm:$0xff]  ;;  %s9858_s6 = sld [smem:[#allocation45_spill]] }
0x168c   : > { %8365 = vmatprep.subr.bf16.mxu1 %v8741_v3  ;;  %8383 = vmatprep.subr.bf16.mxu0 %v8741_v3 }
0x168d   : > { %8019 = vmatprep.mubr.msk.f32.mxu1 %vm8740_vm0, %v8739_v1  ;;  %8052 = vmatprep.mubr.msk.f32.mxu0 %vm8740_vm0, %v8739_v1 }
0x168f   : > { %8367 = vmatpush3.bf16.msra.mxu1 %v8366_v45  ;;  %8385 = vmatpush3.bf16.msra.mxu0 %v8384_v46 }
0x1690   : > { %8374 = vmatprep.subr.bf16.mxu1 %v8741_v3  ;;  %8392 = vmatprep.subr.bf16.mxu0 %v8741_v3 }
0x1692   : > { %8020 = vmatmul.mubr.msk.f32.vlgmr.msra.gmra.mrb[42].mxu1 %vm1498_vm3, %v9413_v17  ;;  %8053 = vmatmul.mubr.msk.f32.vlgmr.msra.gmra.mrb[48].mxu0 %vm1498_vm3, %v9413_v17 }
0x1693   : > { %8376 = vmatpush3.bf16.msra.mxu1 %v8375_v51  ;;  %8394 = vmatpush3.bf16.msra.mxu0 %v8393_v52 }
0x1694   : > { %8377 = vmatprep.subr.bf16.mxu1 %v8741_v3  ;;  %8395 = vmatprep.subr.bf16.mxu0 %v8741_v3 }
0x1695   : > { %8041 = vmatprep.mubr.msk.f32.mxu1 %vm8740_vm0, %v8739_v1  ;;  %8074 = vmatprep.mubr.msk.f32.mxu0 %vm8740_vm0, %v8739_v1 }
0x1697   : > { %8379 = vmatpush3.bf16.msra.mxu1 %v8378_v58  ;;  %8397 = vmatpush3.bf16.msra.mxu0 %v8396_v59 }
0x1698   : > { %8386 = vmatprep.subr.bf16.mxu1 %v8741_v3  ;;  %8088 = vmatprep.subr.mxu0 %v8739_v1 }
0x169a   : > { %8042 = vmatmul.mubr.msk.f32.vlgmr.msra.gmra.mrb[44].mxu1 %vm1498_vm3, %v9413_v17  ;;  %8075 = vmatmul.mubr.msk.f32.vlgmr.msra.gmra.mrb[50].mxu0 %vm1498_vm3, %v9413_v17 }
0x169b   : > { %8388 = vmatpush3.bf16.msra.mxu1 %v8387_v61  ;;  %8063 = vmatprep.mubr.msk.f32.mxu1 %vm8740_vm0, %v8739_v1 }
0x169c   : > { %8389 = vmatprep.subr.bf16.mxu1 %v8741_v3  ;;  %8090 = vmatprep.mubr.msk.f32.mxu0 %vm8740_vm0, %v8739_v1 }
0x169f   : > { %8391 = vmatpush3.bf16.msra.mxu1 %v8390_v0 }
0x16a0   : > { %8398 = vmatprep.subr.bf16.mxu1 %v8741_v3 }
0x16a2   : > { %8064 = vmatmul.mubr.msk.f32.vlgmr.msra.gmra.mrb[46].mxu1 %vm1498_vm3, %v9413_v17 }
0x16a3   : > { %8400 = vmatpush3.bf16.msra.mxu1 %v8399_v5  ;;  %8085 = vmatprep.mubr.msk.f32.mxu1 %vm8740_vm0, %v8739_v1 }
0x16a4   : > { %8401 = vmatprep.subr.bf16.mxu1 %v8741_v3 }
0x16a7   : > { %8403 = vmatpush3.bf16.msra.mxu1 %v8402_v6 }
0x16a8   : > { %8098 = vmatprep.subr.mxu1 %v8739_v1 }
0x16aa   : > { %8086 = vmatmul.mubr.msk.f32.vlgmr.msra.gmra.mrb[48].mxu1 %vm1498_vm3, %v9413_v17 }
0x16ab   : > { %8100 = vmatprep.mubr.msk.f32.mxu1 %vm8740_vm0, %v8739_v1 }
0x174d   : > { %v4683_v9 = vpop.f32.mrb[36].mxu1  ;;  %v4823_v10 = vpop.f32.mrb[42].mxu0 }
0x174e   : > { %v7966_v11 = vpop.f32.mrb[37].mxu1  ;;  %v7988_v14 = vpop.f32.mrb[43].mxu0  ;;  %v4684_v21 = vadd.f32 %v7246_v16, %v4683_v9  ;;  %v4824_v29 = vadd.f32 %v7248_v25, %v4823_v10 }
0x1755   : > { %v4753_v13 = vpop.f32.mrb[38].mxu1  ;;  %v5009_v15 = vpop.f32.mrb[44].mxu0 }
0x1756   : > { %v5010_v18 = vadd.f32 %v7274_v12, %v5009_v15  ;;  %v7977_v19 = vpop.f32.mrb[39].mxu1  ;;  %v8010_v20 = vpop.f32.mrb[45].mxu0  ;;  %v4754_v39 = vadd.f32 %v7247_v34, %v4753_v13 }
0x1758   : > { %8089 = vmatpush3.xpose.msk.msra.mxu0 %vm1259_vm1, %v5010_v18 }
0x1759   : > { %8093 = vmatprep.subr.mxu0 %v8739_v1 }
0x175b   : > { %8091 = vmatmul.mubr.msk.f32.vlgmr.msra.gmra.mrb[52].mxu0 %vm1259_vm1, %v4684_v21 }
0x175c   : > { %8095 = vmatprep.mubr.msk.f32.mxu0 %vm8740_vm0, %v8739_v1 }
0x175d   : > { %v4893_v23 = vpop.f32.mrb[40].mxu1  ;;  %v5149_v24 = vpop.f32.mrb[46].mxu0 }
0x175e   : > { %v5150_v26 = vadd.f32 %v7276_v22, %v5149_v24  ;;  %v7999_v27 = vpop.f32.mrb[41].mxu1  ;;  %v8032_v28 = vpop.f32.mrb[47].mxu0  ;;  %v4894_v47 = vadd.f32 %v7249_v43, %v4893_v23  ;;  %v7328_v43 = vld [vmem:[%s9847_s14 + $0x30] sm:$0xff] }
0x175f   : > { %v7304_v27 = vld [vmem:[%s9846_s13 + $0x6] ss:$0 sm:$0xff] }
0x1760   : > { %8099 = vmatpush3.xpose.msk.msra.mxu1 %vm1259_vm1, %v5150_v26 }
0x1761   : > { %8108 = vmatprep.subr.mxu1 %v8739_v1 }
0x1763   : > { %8101 = vmatmul.mubr.msk.f32.vlgmr.msra.gmra.mrb[50].mxu1 %vm1259_vm1, %v4824_v29 }
0x1764   : > { %8110 = vmatprep.mubr.msk.f32.mxu1 %vm8740_vm0, %v8739_v1 }
0x1765   : > { %v5079_v32 = vpop.f32.mrb[42].mxu1  ;;  %v5335_v33 = vpop.f32.mrb[48].mxu0 }
0x1766   : > { %v5080_v35 = vadd.f32 %v7275_v30, %v5079_v32  ;;  %v5336_v36 = vadd.f32 %v7302_v31, %v5335_v33  ;;  %v8021_v37 = vpop.f32.mrb[43].mxu1  ;;  %v8054_v38 = vpop.f32.mrb[49].mxu0 }
0x1768   : > { %8094 = vmatpush3.xpose.msk.msra.mxu0 %vm1259_vm1, %v5080_v35  ;;  %8109 = vmatpush3.msk.msra.mxu1 %vm3720_vm10, %v5336_v36  ;;  %v7305_v35 = vld [vmem:[%s9846_s13 + $0x7] ss:$0 sm:$0xff]  ;;  %s6963_s13 = sshll.u32 %s9140_s5, 4  ;;  %s6964_s13 = int_to_ptr.vmem [resolvable:$true] %s6963_s13 }
0x1769   : > { %8103 = vmatprep.subr.mxu0 %v8739_v1  ;;  %8118 = vmatprep.subr.mxu1 %v8739_v1 }
0x176b   : > { %8096 = vmatmul.mubr.msk.f32.vlgmr.msra.gmra.mrb[54].mxu0 %vm1259_vm1, %v4754_v39 }
0x176c   : > { %8105 = vmatprep.mubr.msk.f32.mxu0 %vm8740_vm0, %v8739_v1 }
0x176d   : > { %v5219_v41 = vpop.f32.mrb[44].mxu1  ;;  %v9543_v42 = vpop.f32.mrb[50].mxu0 }
0x176e   : > { %v5220_v44 = vadd.f32 %v7277_v40, %v5219_v41  ;;  %v8043_v45 = vpop.f32.mrb[45].mxu1  ;;  %v8076_v46 = vpop.f32.mrb[51].mxu0  ;;  %v5476_v30 = vadd.f32 %v7304_v27, %v9543_v42  ;;  %v7326_v41 = vld [vmem:[%s9847_s14 + $0x20] sm:$0xff]  ;;  %v7327_v42 = vld [vmem:[%s9847_s14 + $0x28] sm:$0xff] }
0x176f   : > { %v7351_v27 = vld [vmem:[%s9850_s19 + $0x60] sm:$0xff] }
0x1770   : > { %8104 = vmatpush3.xpose.msk.msra.mxu0 %vm1259_vm1, %v5220_v44 }
0x1771   : > { %8113 = vmatprep.subr.mxu0 %v8739_v1 }
0x1773   : > { %8106 = vmatmul.mubr.msk.f32.vlgmr.msra.gmra.mrb[56].mxu0 %vm1259_vm1, %v4894_v47 }
0x1774   : > { %8115 = vmatprep.mubr.msk.f32.mxu0 %vm8740_vm0, %v8739_v1 }
0x1775   : > { %v5405_v49 = vpop.f32.mrb[46].mxu1 }
0x1776   : > { %v5406_v50 = vadd.f32 %v7303_v48, %v5405_v49  ;;  %v8065_v51 = vpop.f32.mrb[47].mxu1  ;;  %v7329_v48 = vld [vmem:[%s9847_s14 + $0x38] sm:$0xff]  ;;  %s6950_s14 = sshll.u32 %s9086_s16, 4  ;;  %s6951_s14 = int_to_ptr.vmem [resolvable:$true] %s6950_s14 }
0x1778   : > { %8114 = vmatpush3.msk.msra.mxu0 %vm3720_vm10, %v5406_v50 }
0x1779   : > { %8123 = vmatprep.subr.mxu0 %v8739_v1 }
0x177d   : > { %v9554_v52 = vpop.f32.mrb[48].mxu1 }
0x177e   : > { %v8087_v53 = vpop.f32.mrb[49].mxu1  ;;  %v5546_v38 = vadd.f32 %v7305_v35, %v9554_v52 }
0x182e   : > { %v5621_v55 = vpop.f32.mrb[52].mxu0 }
0x182f   : > { %v8092_v56 = vpop.f32.mrb[53].mxu0  ;;  %v5853_v57 = vsel %vm3671_vm11, %v5621_v55, -inf }
0x1830   : > { %5854 = vmax.xlane.f32.xlu0 %v5853_v57 }
0x1836   : > { %v5773_v58 = vpop.f32.mrb[50].mxu1 }
0x1837   : > { %v8102_v59 = vpop.f32.mrb[51].mxu1  ;;  %v5859_v60 = vsel %vm3671_vm11, %v5773_v58, -inf }
0x1838   : > { %5860 = vmax.xlane.f32.xlu0 %v5859_v60 }
0x183e   : > { %v5697_v54 = vpop.f32.mrb[54].mxu0 }
0x183f   : > { %v8097_v61 = vpop.f32.mrb[55].mxu0  ;;  %v5856_v62 = vsel %vm3671_vm11, %v5697_v54, -inf }
0x1840   : > { %5857 = vmax.xlane.f32.xlu1 %v5856_v62 }
0x1846   : > { %v5849_v63 = vpop.f32.mrb[56].mxu0 }
0x1847   : > { %v8107_v0 = vpop.f32.mrb[57].mxu0  ;;  %v5862_v2 = vsel %vm3671_vm11, %v5849_v63, -inf }
0x1848   : > { %5863 = vmax.xlane.f32.xlu1 %v5862_v2 }
0x18bd   : > { %v5855_v4 = vpop.xlane.xlu0 %5854 }
0x18be   : > { %v5865_v5 = vsub.f32 %v5621_v55, %v5855_v4  ;;  %v7335_v4 = vld [vmem:[%s9848_s15 + $0x1] ss:$0 sm:$0xff] }
0x18c0   : > { %v5869_v7 = vmul.f32 1.442695, %v5865_v5 }
0x18c2   : > { %8555 = vpow2.f32 %v5869_v7 }
0x18c5   : > { %v5861_v8 = vpop.xlane.xlu0 %5860 }
0x18c6   : > { %v5867_v6 = vsub.f32 %v5773_v58, %v5861_v8 }
0x18c8   : > { %v5873_v9 = vmul.f32 1.442695, %v5867_v6 }
0x18ca   : > { %8557 = vpow2.f32 %v5873_v9 }
0x18cc   : > { %v8556_v10 = vpop.eup %8555 }
0x18cd   : > { %v5858_v11 = vpop.xlane.xlu1 %5857  ;;  %v5877_v14 = vsel %vm3671_vm11, %v8556_v10, 0.0 }
0x18ce   : > { %v5866_v12 = vsub.f32 %v5697_v54, %v5858_v11  ;;  %5878 = vadd.xlane.f32.xlu0 %v5877_v14 }
0x18d0   : > { %v5871_v13 = vmul.f32 1.442695, %v5866_v12 }
0x18d2   : > { %8559 = vpow2.f32 %v5871_v13 }
0x18d4   : > { %v8558_v15 = vpop.eup %8557 }
0x18d5   : > { %v5864_v16 = vpop.xlane.xlu1 %5863  ;;  %v5883_v18 = vsel %vm3671_vm11, %v8558_v15, 0.0 }
0x18d6   : > { %v5868_v19 = vsub.f32 %v5849_v63, %v5864_v16  ;;  %5884 = vadd.xlane.f32.xlu0 %v5883_v18  ;;  %v7341_v16 = vld [vmem:[%s9849_s17 + $0x28] sm:$0xff] }
0x18d8   : > { %v5875_v20 = vmul.f32 1.442695, %v5868_v19  ;;  %v7343_v19 = vld [vmem:[%s9849_s17 + $0x38] sm:$0xff] }
0x18da   : > { %8561 = vpow2.f32 %v5875_v20 }
0x18dc   : > { %v8560_v21 = vpop.eup %8559 }
0x18dd   : > { %v5880_v22 = vsel %vm3671_vm11, %v8560_v21, 0.0 }
0x18de   : > { %5881 = vadd.xlane.f32.xlu1 %v5880_v22  ;;  %v7348_v22 = vld [vmem:[%s9850_s19 + $0x48] sm:$0xff] }
0x18e4   : > { %v8562_v23 = vpop.eup %8561 }
0x18e5   : > { %v5886_v24 = vsel %vm3671_vm11, %v8562_v23, 0.0 }
0x18e6   : > { %5887 = vadd.xlane.f32.xlu1 %v5886_v24 }
0x195b   : > { %v5879_v25 = vpop.xlane.xlu0 %5878 }
0x195c   : > { %8563 = vrcp.f32 %v5879_v25  ;;  %v7350_v25 = vld [vmem:[%s9850_s19 + $0x58] sm:$0xff] }
0x1963   : > { %v5885_v26 = vpop.xlane.xlu0 %5884 }
0x1964   : > { %8565 = vrcp.f32 %v5885_v26 }
0x1966   : > { %v8564_v28 = vpop.eup %8563 }
0x1967   : > { %v5890_v29 = vmul.f32 %v8564_v28, %v8556_v10  ;;  %v7352_v28 = vld [vmem:[%s9850_s19 + $0x68] sm:$0xff] }
0x1969   : > { %8111 = vmatmul.mubr.msk.f32.vlgmr.msra.gmra.mrb[52].mxu1 %vm3716_vm12, %v5890_v29  ;;  %v8417_v29 = vpack.c.bf16 %v7352_v28, %v7351_v27 }
0x196a   : > { %8119 = vmatpush3.msk.msra.mxu1 %vm3720_vm10, %v5476_v30  ;;  %8120 = vmatprep.mubr.msk.f32.mxu1 %vm8740_vm0, %v8739_v1 }
0x196b   : > { %v5882_v31 = vpop.xlane.xlu1 %5881  ;;  %8128 = vmatprep.subr.mxu1 %v8739_v1 }
0x196c   : > { %8567 = vrcp.f32 %v5882_v31 }
0x196e   : > { %v8566_v32 = vpop.eup %8565 }
0x196f   : > { %v5894_v33 = vmul.f32 %v8566_v32, %v8558_v15  ;;  %v7340_v15 = vld [vmem:[%s9849_s17 + $0x20] sm:$0xff] }
0x1970   : > { %v8405_v18 = vpack.c.bf16 %v7341_v16, %v7340_v15  ;;  %v6837_v15 = vld [vmem:[%s9858_s6 + $0x18] sm:$0xff] }
0x1971   : > { %8121 = vmatmul.mubr.msk.f32.vlgmr.msra.gmra.mrb[54].mxu1 %vm3716_vm12, %v5894_v33 }
0x1972   : > { %8130 = vmatprep.mubr.msk.f32.mxu1 %vm8740_vm0, %v8739_v1  ;;  %8129 = vmatpush3.msra.mxu1 %v7326_v41 }
0x1973   : > { %v5888_v34 = vpop.xlane.xlu1 %5887  ;;  %8138 = vmatprep.subr.mxu1 %v8739_v1 }
0x1974   : > { %8569 = vrcp.f32 %v5888_v34  ;;  %v7338_v34 = vld [vmem:[%s9851_s21 + $0x1] ss:$0 sm:$0xff] }
0x1976   : > { %v8568_v36 = vpop.eup %8567 }
0x1977   : > { %v5892_v37 = vmul.f32 %v8568_v36, %v8560_v21  ;;  %v7347_v21 = vld [vmem:[%s9850_s19 + $0x40] sm:$0xff] }
0x1978   : > { %v8411_v24 = vpack.c.bf16 %v7348_v22, %v7347_v21  ;;  %v7339_v36 = vld [vmem:[%s9852_s24 + $0x1] ss:$0 sm:$0xff] }
0x1979   : > { %8116 = vmatmul.mubr.msk.f32.vlgmr.msra.gmra.mrb[58].mxu0 %vm3716_vm12, %v5892_v37 }
0x197a   : > { %8124 = vmatpush3.msk.msra.mxu0 %vm3720_vm10, %v5546_v38  ;;  %8125 = vmatprep.mubr.msk.f32.mxu0 %vm8740_vm0, %v8739_v1 }
0x197b   : > { %8133 = vmatprep.subr.mxu0 %v8739_v1 }
0x197e   : > { %v8570_v39 = vpop.eup %8569 }
0x197f   : > { %v5896_v40 = vmul.f32 %v8570_v39, %v8562_v23  ;;  %v7349_v23 = vld [vmem:[%s9850_s19 + $0x50] sm:$0xff] }
0x1980   : > { %v8414_v26 = vpack.c.bf16 %v7350_v25, %v7349_v23  ;;  %v7353_v39 = vld [vmem:[%s9850_s19 + $0x70] sm:$0xff] }
0x1981   : > { %8126 = vmatmul.mubr.msk.f32.vlgmr.msra.gmra.mrb[60].mxu0 %vm3716_vm12, %v5896_v40  ;;  %v7354_v40 = vld [vmem:[%s9850_s19 + $0x78] sm:$0xff] }
0x1982   : > { %8135 = vmatprep.mubr.msk.f32.mxu0 %vm8740_vm0, %v8739_v1  ;;  %8134 = vmatpush3.msra.mxu0 %v7327_v42  ;;  %v8420_v41 = vpack.c.bf16 %v7354_v40, %v7353_v39  ;;  %v7345_v42 = vld [vmem:[%s9853_s25 + $0x1] ss:$0 sm:$0xff] }
0x1983   : > { %8143 = vmatprep.subr.mxu0 %v8739_v1 }
0x1a3c   : > { %v5969_v44 = vpop.f32.mrb[52].mxu1 }
0x1a3d   : > { %v8112_v45 = vpop.f32.mrb[53].mxu1  ;;  %8131 = vmatmul.mubr.msk.f32.vlgmr.msra.gmra.mrb[56].mxu1 %vm1259_vm1, %v5969_v44 }
0x1a3e   : > { %8139 = vmatpush3.msra.mxu1 %v7328_v43  ;;  %8140 = vmatprep.mubr.msk.f32.mxu1 %vm8740_vm0, %v8739_v1 }
0x1a3f   : > { %8404 = vmatprep.subr.bf16.mxu1 %v8741_v3 }
0x1a44   : > { %v6121_v46 = vpop.f32.mrb[54].mxu1 }
0x1a45   : > { %v8122_v47 = vpop.f32.mrb[55].mxu1  ;;  %8141 = vmatmul.mubr.msk.f32.vlgmr.msra.gmra.mrb[58].mxu1 %vm1259_vm1, %v6121_v46 }
0x1a46   : > { %8156 = vmatprep.mubr.msk.f32.mxu1 %vm8740_vm0, %v8739_v1  ;;  %8406 = vmatpush3.bf16.msra.mxu1 %v8405_v18  ;;  %v7356_v47 = vld [vmem:[%s9854_s29 + $0x1] ss:$0 sm:$0xff]  ;;  %v6759_v18 = vld [vmem:[%s9859_s8] sm:$0x1]  ;;  %s8743_s8 = smov [#allocation4]  }
0x1a47   : > { %8407 = vmatprep.subr.bf16.mxu1 %v8741_v3 }
0x1a4c   : > { %v6045_v49 = vpop.f32.mrb[58].mxu0 }
0x1a4d   : > { %v8117_v50 = vpop.f32.mrb[59].mxu0  ;;  %8136 = vmatmul.mubr.msk.f32.vlgmr.msra.gmra.mrb[62].mxu0 %vm1259_vm1, %v6045_v49 }
0x1a4e   : > { %8144 = vmatpush3.msra.mxu0 %v7329_v48  ;;  %8145 = vmatprep.mubr.msk.f32.mxu0 %vm8740_vm0, %v8739_v1 }
0x1a4f   : > { %8410 = vmatprep.subr.bf16.mxu0 %v8741_v3 }
0x1a54   : > { %v6197_v51 = vpop.f32.mrb[60].mxu0 }
0x1a55   : > { %v8127_v52 = vpop.f32.mrb[61].mxu0  ;;  %8146 = vmatmul.mubr.msk.f32.vlgmr.msra.gmra.mrb[64].mxu0 %vm1259_vm1, %v6197_v51 }
0x1a56   : > { %8175 = vmatprep.mubr.msk.f32.mxu0 %vm8740_vm0, %v8739_v1  ;;  %8412 = vmatpush3.bf16.msra.mxu0 %v8411_v24 }
0x1a57   : > { %8413 = vmatprep.subr.bf16.mxu0 %v8741_v3 }
0x1a5a   : > { %8415 = vmatpush3.bf16.msra.mxu0 %v8414_v26 }
0x1a5b   : > { %8416 = vmatprep.subr.bf16.mxu0 %v8741_v3 }
0x1a5e   : > { %8418 = vmatpush3.bf16.msra.mxu0 %v8417_v29 }
0x1a5f   : > { %8419 = vmatprep.subr.bf16.mxu0 %v8741_v3 }
0x1a62   : > { %8421 = vmatpush3.bf16.msra.mxu0 %v8420_v41 }
0x1b10   : > { %v6275_v53 = vpop.f32.mrb[56].mxu1 }
0x1b11   : > { %v8132_v55 = vpop.f32.mrb[57].mxu1  ;;  %v6498_v59 = vsel %vm4318_vm13, %v6275_v53, 0.0 }
0x1b18   : > { %v6421_v56 = vpop.f32.mrb[58].mxu1 }
0x1b19   : > { %v8142_v57 = vpop.f32.mrb[59].mxu1  ;;  %v6501_v62 = vsel %vm4318_vm13, %v6421_v56, 0.0 }
0x1b20   : > { %v6348_v58 = vpop.f32.mrb[62].mxu0 }
0x1b21   : > { %v6499_v60 = vsel %vm4318_vm13, %v6348_v58, 0.0  ;;  %v8137_v54 = vpop.f32.mrb[63].mxu0 }
0x1b22   : > { %v6500_v61 = vadd.f32 %v6499_v60, %v6498_v59  ;;  %v6755_v59 = vld [vmem:[%s9857_s3] sm:$0xff]  ;;  %v6756_v60 = vld [vmem:[%s9857_s3 + $0x8] sm:$0xff] }
0x1b23   : > { %v8423_v54 = vpack.c.bf16 %v6756_v60, %v6755_v59 }
0x1b24   : > { %v6502_v63 = vadd.f32 %v6501_v62, %v6500_v61  ;;  %v6757_v61 = vld [vmem:[%s9857_s3 + $0x10] sm:$0xff]  ;;  %v6758_v62 = vld [vmem:[%s9857_s3 + $0x18] sm:$0xff]  ;;  %s6918_s3 = sand.u32 1, %s8977_s0  }
0x1b25   : > { %s9666_s15 = scalar_lea.sflag [#allocation5], %s6918_s3 }
0x1b28   : > { %v6494_v0 = vpop.f32.mrb[64].mxu0 }
0x1b29   : > { %v6503_v2 = vsel %vm4318_vm13, %v6494_v0, 0.0  ;;  %v8147_v5 = vpop.f32.mrb[65].mxu0 }
0x1b2a   : > { %v6504_v7 = vadd.f32 %v6503_v2, %v6502_v63  ;;  %v8426_v63 = vpack.c.bf16 %v6758_v62, %v6757_v61 }
0x1b2c   : > { %v6513_v8 = vadd.f32 %v7335_v4, %v6504_v7  ;;  %v7360_v7 = vld [vmem:[%s9855_s30 + $0x1] ss:$0 sm:$0xff] }
0x1b2e   : > { %v6514_v6 = vadd.f32 %v6513_v8, %v9413_v17  ;;  %v7342_v17 = vld [vmem:[%s9849_s17 + $0x30] sm:$0xff]  ;;  %s8579_s17 = sshll.u32 %s8743_s8, 4  ;;  %s8580_s17 = int_to_ptr.vmem [resolvable:$false] %s8579_s17 }
0x1b2f   : > { %v8408_v20 = vpack.c.bf16 %v7343_v19, %v7342_v17  ;;  %p8582_p0 = scmp.lt.s32.totalorder %s6951_s14, %s8580_s17 }
0x1b30   : > { %v6519_v9 = vsel %vm4318_vm13, %v6514_v6, 0.0 }
0x1b31   : > { %6520 = vadd.xlane.f32.xlu0 %v6519_v9  ;;  %8409 = vmatpush3.bf16.msra.mxu1 %v8408_v20  ;;  %v6835_v9 = vld [vmem:[%s9858_s6 + $0x8] sm:$0xff] }
0x1b32   : > { %8422 = vmatprep.subr.bf16.mxu1 %v8741_v3 }
0x1bbe   : > { %v6521_v10 = vpop.xlane.xlu0 %6520 }
0x1bbf   : > { %v6522_v11 = vmul.f32 0.03125, %v6521_v10  ;;  %v7361_v10 = vld [vmem:[%s9856_s18 + $0x1] ss:$0 sm:$0xff]  ;;  %s8581_s18 = scalar_lea.vmem %s8580_s17, 128 }
0x1bc1   : > { %v6523_v14 = vsub.f32 %v6514_v6, %v6522_v11  ;;  %v6834_v6 = vld [vmem:[%s9858_s6] sm:$0xff] }
0x1bc3   : > { %v6524_v12 = vmul.f32 %v6523_v14, %v6523_v14 }
0x1bc5   : > { %v6525_v13 = vsel %vm4318_vm13, %v6524_v12, 0.0 }
0x1bc6   : > { %6526 = vadd.xlane.f32.xlu1 %v6525_v13  ;;  %v6836_v13 = vld [vmem:[%s9858_s6 + $0x10] sm:$0xff]  ;;  %s8575_s6 = scalar_lea.vmem %s6951_s14, 64 }
0x1bc7   : > { %v8432_v16 = vpack.c.bf16 %v6837_v15, %v6836_v13  ;;  %p8576_p11 = scmp.ne.s32.totalorder %s6951_s14, %s8575_s6  ;;  %p8583_p1 = scmp.lt.s32.totalorder %s8581_s18, %s8575_s6 }
0x1bc9   : > { %p8577_p12 = pnand %p8576_p11, %p8996_p5  ;;  %p8584_p2 = por %p8583_p1, %p8582_p0 }
0x1bcb   : > { %p8578_p13 = pneg %p8577_p12 }
0x1bcd   : > { %p8585_p3 = pnand %p8584_p2, %p8578_p13 }
0x1c53   : > { %v6527_v30 = vpop.xlane.xlu1 %6526 }
0x1c54   : > { %v6528_v31 = vmul.f32 0.03125, %v6527_v30 }
0x1c56   : > { %v6529_v32 = vadd.f32 1e-05, %v6528_v31 }
0x1c58   : > { %8571 = vrsqrt.f32 %v6529_v32 }
0x1c62   : > { %v8572_v33 = vpop.eup %8571 }
0x1c63   : > { %v6531_v35 = vmul.f32 %v8572_v33, %v6523_v14  ;;  %v8429_v14 = vpack.c.bf16 %v6835_v9, %v6834_v6 }
0x1c65   : > { %v6538_v37 = vmul.f32 %v7338_v34, %v6531_v35 }
0x1c67   : > { %v6545_v38 = vadd.f32 %v7339_v36, %v6538_v37 }
0x1c69   : > { %8157 = vmatmul.mubr.msk.f32.vlgmr.msra.gmra.mrb[60].mxu1 %vm1498_vm3, %v6545_v38 }
0x1c6a   : > { %8186 = vmatprep.mubr.msk.f32.mxu1 %vm8740_vm0, %v8739_v1  ;;  %8424 = vmatpush3.bf16.msra.mxu1 %v8423_v54 }
0x1c6b   : > { %8425 = vmatprep.subr.bf16.mxu1 %v8741_v3 }
0x1c6e   : > { %8427 = vmatpush3.bf16.msra.mxu1 %v8426_v63 }
0x1c6f   : > { %8428 = vmatprep.subr.bf16.mxu1 %v8741_v3 }
0x1d3c   : > { %v6628_v43 = vpop.f32.mrb[60].mxu1 }
0x1d3d   : > { %v6629_v44 = vadd.f32 %v7345_v42, %v6628_v43  ;;  %v8158_v45 = vpop.f32.mrb[61].mxu1 }
0x1d3f   : > { %v6632_v46 = vmax.f32 %v6629_v44, 0.0 }
0x1d41   : > { %8176 = vmatmul.mubr.msk.f32.vlgmr.msra.gmra.mrb[66].mxu0 %vm2312_vm8, %v6632_v46 }
0x1e14   : > { %v6719_v48 = vpop.f32.mrb[66].mxu0 }
0x1e15   : > { %v6720_v49 = vadd.f32 %v7356_v47, %v6719_v48  ;;  %v8177_v50 = vpop.f32.mrb[67].mxu0 }
0x1e17   : > { %v6723_v51 = vadd.f32 %v6720_v49, %v6545_v38 }
0x1e19   : > { %v6728_v52 = vsel %vm4318_vm13, %v6723_v51, 0.0 }
0x1e1a   : > { %6729 = vadd.xlane.f32.xlu0 %v6728_v52 }
0x1ea7   : > { %v6730_v53 = vpop.xlane.xlu0 %6729 }
0x1ea8   : > { %v6731_v55 = vmul.f32 0.03125, %v6730_v53 }
0x1eaa   : > { %v6732_v56 = vsub.f32 %v6723_v51, %v6731_v55 }
0x1eac   : > { %v6733_v57 = vmul.f32 %v6732_v56, %v6732_v56 }
0x1eae   : > { %v6734_v58 = vsel %vm4318_vm13, %v6733_v57, 0.0 }
0x1eaf   : > { %6735 = vadd.xlane.f32.xlu1 %v6734_v58 }
0x1f3c   : > { %v6736_v0 = vpop.xlane.xlu1 %6735 }
0x1f3d   : > { %v6737_v2 = vmul.f32 0.03125, %v6736_v0 }
0x1f3f   : > { %v6738_v4 = vadd.f32 1e-05, %v6737_v2 }
0x1f41   : > { %8573 = vrsqrt.f32 %v6738_v4 }
0x1f4b   : > { %v8574_v5 = vpop.eup %8573 }
0x1f4c   : > { %v6740_v8 = vmul.f32 %v8574_v5, %v6732_v56 }
0x1f4e   : > { %v6747_v11 = vmul.f32 %v7360_v7, %v6740_v8 }
0x1f50   : > { %v6754_v12 = vadd.f32 %v7361_v10, %v6747_v11 }
0x1f52   : > { %8187 = vmatmul.mubr.msk.f32.vlgmr.msra.gmra.mrb[62].mxu1 %vm1498_vm3, %v6754_v12 }
0x1f53   : > { %8430 = vmatpush3.bf16.msra.mxu1 %v8429_v14  ;;  %8197 = vmatprep.mubr.msk.f32.mxu1 %vm8740_vm0, %v8739_v1 }
0x1f54   : > { %8431 = vmatprep.subr.bf16.mxu1 %v8741_v3 }
0x1f57   : > { %8433 = vmatpush3.bf16.msra.mxu1 %v8432_v16 }
0x2025   : > { %v6829_v17 = vpop.f32.mrb[62].mxu1 }
0x2026   : > { %v6830_v19 = vadd.f32 %v6829_v17, %v6759_v18  ;;  %v8188_v20 = vpop.f32.mrb[63].mxu1 }
0x2028   : > { %v6833_v21 = vmax.f32 %v6830_v19, 0.0 }
0x202a   : > { %8198 = vmatmul.mubr.msk.f32.vlgmr.msra.gmra.mrb[64].mxu1 %vm1498_vm3, %v6833_v21 }
0x202b   : > { %8588 = shalt.err (!%p8585_p3)
}
0x202c   : > { %s8589_s16 = scalar_lea.hbm %s9662_s10, 64  ;;  %s8593_s3 = scalar_lea.hbm %s8949_s20, 128 }
0x202d   : > { %p8590_p4 = scmp.ne.s32.totalorder %s9662_s10, %s8589_s16  ;;  %p8594_p9 = scmp.lt.u32.totalorder %s9662_s10, %s8949_s20 }
0x202e   : > { %p8595_p10 = scmp.lt.u32.totalorder %s8593_s3, %s8589_s16  ;;  %p8597_p12 = scmp.lt.u32.totalorder %s8589_s16, %s9662_s10 }
0x202f   : > { %p8591_p7 = pnand %p8590_p4, %p8996_p5 }
0x2030   : > { %p8596_p11 = por %p8595_p10, %p8594_p9 }
0x2031   : > { %p8592_p8 = pneg %p8591_p7 }
0x2032   : > { %p8598_p0 = por %p8597_p12, %p8596_p11 }
0x2034   : > { %p8599_p13 = pnand %p8598_p0, %p8592_p8 }
0x2036   : > { %8602 = shalt.err (!%p8599_p13)
}
0x2037   : > { %8435 = dma.vmem_to_hbm [thread:$0]  (%p8996_p5), %s6951_s14, 64, %s9662_s10, %s9666_s15  }
0x2038   : > { %s6961_s17 = scalar_lea.hbm %s8954_s27, %s7367_s9  ;;  %s8603_s18 = scalar_lea.vmem %s6964_s13, 64 }
0x2039   : > { %p8604_p1 = scmp.ne.s32.totalorder %s6964_s13, %s8603_s18  ;;  %s8744_s6 = smov [#allocation6]  }
0x203a   : > { %s8607_s8 = sshll.u32 %s8744_s6, 4  ;;  %s8608_s8 = int_to_ptr.vmem [resolvable:$false] %s8607_s8 }
0x203b   : > { %p8605_p2 = pnand %p8604_p1, %p8996_p5  ;;  %s8609_s16 = scalar_lea.vmem %s8608_s8, 128 }
0x203c   : > { %p8610_p4 = scmp.lt.s32.totalorder %s6964_s13, %s8608_s8  ;;  %p8611_p7 = scmp.lt.s32.totalorder %s8609_s16, %s8603_s18 }
0x203d   : > { %p8606_p3 = pneg %p8605_p2 }
0x203e   : > { %p8612_p8 = por %p8611_p7, %p8610_p4 }
0x2040   : > { %p8613_p9 = pnand %p8612_p8, %p8606_p3 }
0x2042   : > { %8616 = shalt.err (!%p8613_p9)
}
0x2043   : > { %s8617_s3 = scalar_lea.hbm %s6961_s17, 64  ;;  %s8621_s5 = scalar_lea.hbm %s8954_s27, 128 }
0x2044   : > { %p8618_p10 = scmp.ne.s32.totalorder %s6961_s17, %s8617_s3  ;;  %p8622_p0 = scmp.lt.u32.totalorder %s6961_s17, %s8954_s27 }
0x2045   : > { %p8623_p13 = scmp.lt.u32.totalorder %s8621_s5, %s8617_s3  ;;  %p8625_p2 = scmp.lt.u32.totalorder %s8617_s3, %s6961_s17 }
0x2046   : > { %p8619_p11 = pnand %p8618_p10, %p8996_p5 }
0x2047   : > { %p8624_p1 = por %p8623_p13, %p8622_p0 }
0x2048   : > { %p8620_p12 = pneg %p8619_p11 }
0x2049   : > { %p8626_p6 = por %p8625_p2, %p8624_p1 }
0x204b   : > { %p8627_p4 = pnand %p8626_p6, %p8620_p12 }
0x204d   : > { %8630 = shalt.err (!%p8627_p4)
}
0x204e   : > { %8436 = dma.vmem_to_hbm [thread:$0]  (%p8996_p5), %s6964_s13, 64, %s6961_s17, %s9666_s15   ;;  %v6838_v1 = vld [vmem:[%s8939_s4] sm:$0x1]  ;;  %vm6912_vm14 = vcmask 253952  }
0x204f   : > { %s7366_s9 = sshll.u32 %s8977_s0, 4  ;;  %s1230_s14 = scalar_lea.vmem [#allocation2], %s9079_s26 }
0x2050   : > { %s6937_s10 = sshll.u32 %s1230_s14, 4  ;;  %s9700_s18 = scalar_lea.hbm %s8944_s12, %s7366_s9  ;;  %s9702_s10 = int_to_ptr.vmem [resolvable:$true] %s6937_s10 }
0x2051   : > { %s6915_s6 = scalar_lea.sflag [#allocation3], %s9079_s26  ;;  %s8631_s8 = scalar_lea.vmem %s9702_s10, 16 }
0x2052   : > { %p8632_p6 = scmp.ne.s32.totalorder %s9702_s10, %s8631_s8  ;;  %s8745_s13 = smov [#allocation2]  }
0x2053   : > { %s8635_s0 = sshll.u32 %s8745_s13, 4  ;;  %s8636_s0 = int_to_ptr.vmem [resolvable:$false] %s8635_s0 }
0x2054   : > { %p8633_p3 = pnand %p8632_p6, %p8996_p5  ;;  %s8637_s15 = scalar_lea.vmem %s8636_s0, 32 }
0x2055   : > { %p8638_p8 = scmp.lt.s32.totalorder %s9702_s10, %s8636_s0  ;;  %p8639_p9 = scmp.lt.s32.totalorder %s8637_s15, %s8631_s8 }
0x2056   : > { %p8634_p7 = pneg %p8633_p3 }
0x2057   : > { %p8640_p10 = por %p8639_p9, %p8638_p8 }
0x2059   : > { %p8641_p11 = pnand %p8640_p10, %p8634_p7 }
0x20fd   : > { %v6908_v3 = vpop.f32.mrb[64].mxu1 }
0x20fe   : > { %v6909_v22 = vadd.f32 %v6908_v3, %v6838_v1  ;;  %v8199_v23 = vpop.f32.mrb[65].mxu1 }
0x2100   : > { %6913 = vst.msk [vmem:[%s1230_s14] sm:$0x1] %vm6912_vm14, %v6909_v22 }
0x2101   : > { %8644 = shalt.err (!%p8641_p11)
}
0x2102   : > { %s8645_s26 = scalar_lea.hbm %s9700_s18, 16  ;;  %s8649_s17 = scalar_lea.hbm %s8944_s12, 32 }
0x2103   : > { %p8646_p12 = scmp.ne.s32.totalorder %s9700_s18, %s8645_s26  ;;  %p8650_p1 = scmp.lt.u32.totalorder %s9700_s18, %s8944_s12 }
0x2104   : > { %p8651_p2 = scmp.lt.u32.totalorder %s8649_s17, %s8645_s26  ;;  %p8653_p6 = scmp.lt.u32.totalorder %s8645_s26, %s9700_s18 }
0x2105   : > { %p8647_p0 = pnand %p8646_p12, %p8996_p5 }
0x2106   : > { %p8652_p4 = por %p8651_p2, %p8650_p1 }
0x2107   : > { %p8648_p13 = pneg %p8647_p0 }
0x2108   : > { %p8654_p3 = por %p8653_p6, %p8652_p4 }
0x210a   : > { %p8655_p7 = pnand %p8654_p3, %p8648_p13 }
0x210c   : > { %8658 = shalt.err (!%p8655_p7)
}
0x210d   : > { %8434 = dma.vmem_to_hbm [thread:$0]  (%p8996_p5), %s9702_s10, 16, %s9700_s18, %s6915_s6  }
0x210e PF: > { %p8450_p8 = scmp.ge.s32.totalorder %s8697_s7, 2  ;;  %s6975_s16 = sand.u32 1, %s8685_s28  }
0x210f   : > { %p9860_p9 = scmp.ne.s32.totalorder %s9827_s23, 0  ;;  %s6976_s3 = scalar_lea.sflag [#allocation3], %s6975_s16 }
0x2111   : > { %p8441_p10 = pnand %p8450_p8, %p9860_p9 }
0x2113   : > { %8676 = dma.done.wait (!%p8441_p10), %s6976_s3, 16  }
0x2114   : > { %8678 = vsyncadd (!%p8441_p10), %s6976_s3, 4294967280  ;;  %s9861_s5 = sadd.s32 4294967294, %s8697_s7  }
0x2115   : > { %s6983_s9 = sand.u32 1, %s9861_s5  }
0x2116   : > { %s6984_s14 = scalar_lea.sflag [#allocation5], %s6983_s9 }
0x2117   : > { %8680 = dma.done.wait (!%p8441_p10), %s6984_s14, 128  }
0x2118   : > { %8682 = vsyncadd (!%p8441_p10), %s6984_s14, 4294967168  ;;  %s9862_s22 = sld [smem:[#allocation46_spill]]  ;;  %p95_p5 = scmp.ge.s32.totalorder %s8981_s11, 4  }
0x2119   : > { %s9863_s28 = smov %s8689_s1  ;;  %s9864_s1 = smov %s8693_s2 }
0x211a   : > { %s9866_s7 = smov %s8981_s11  ;;  %97 = sbr.rel (!%p95_p5) target bundleno = 94 (0x5e), region = 301 }
0x211e   : > { %s9865_s2 = smov %s9862_s22 }
0x2121   :  { %6998 = vsyncpa [#allocation3], 1 }
0x2122   :  { %7000 = vsyncpa [#allocation3 + $0x1], 1 }
0x2123   :  { %7001 = vsyncpa [#allocation5], 1 }
0x2124   :  { %7003 = vsyncpa [#allocation5 + $0x1], 1 }

</bundles_post_ra>
